<compile_context>
chip_gen: v6e
topology: v6e:2x2x1
jax: 0.10.0
libtpu: 0.0.40
codegen_flags: <defaults>
</compile_context>

<pallas_src>
import functools

import jax
import jax.numpy as jnp
from jax.experimental import pallas as pl
from jax.experimental.pallas import tpu as pltpu


# ----------------------------------------------------------------------------
# Host-side helpers
# ----------------------------------------------------------------------------
def _fold_conv_bn(w, b, gamma, beta, mean, var, eps=1e-5):
    """Fold BatchNorm (eval) + conv bias: scale into weights, shift separate."""
    scale = gamma / jnp.sqrt(var + eps)
    w_f = w.astype(jnp.float32) * scale[:, None, None, None]
    shift = ((b - mean) * scale + beta).reshape(-1, 1).astype(jnp.float32)
    return w_f, shift


def _tap_major(w):
    """[Cout, Cin, 3, 3] -> [9, Cout, Cin], tap t = (dy+1)*3 + (dx+1)."""
    cout, cin = w.shape[0], w.shape[1]
    return jnp.transpose(w, (2, 3, 0, 1)).reshape(9, cout, cin)


def _choose_cin_chunk(c, max_chunks=4):
    """Chunk size for the Cin grid axis.  Must be a multiple of 128 (it tiles
    the last dim of the pre-contracted weight tensor A) or the full extent."""
    if c % 128 != 0 or c <= 128:
        return c
    n = min(max_chunks, c // 128)
    while n > 1 and (c // 128) % n != 0:
        n -= 1
    return c // n


def nearest_interp(x, out_h, out_w):
    """F.interpolate(mode='nearest') equivalent (floor(dst * in/out))."""
    B, C, H, W = x.shape
    ys = (jnp.arange(out_h) * H) // out_h
    xs = (jnp.arange(out_w) * W) // out_w
    return x[:, :, ys[:, None], xs[None, :]]


# ----------------------------------------------------------------------------
# Fused head kernel: post2(query-pre-contracted) -> post1 -> post0
# grid = (batch, Cin-chunk); the chunk axis is a reduction ("arbitrary").
# ----------------------------------------------------------------------------
def _fused_head_kernel(feat_ref, score_ref, row_ref, col_ref, a_ref,
                       shift2_ref, w1_ref, shift1_ref, w0_ref, shift0_ref,
                       out_ref, acc2_ref, h2_ref, h1_ref, *, height, width):
    # feat_ref:   (1, TC, P)      bf16 'sep' feature chunk, spatially flattened
    # score_ref:  (1, 1, P)       bf16 nearest-upsampled score
    # row_ref:    (1, P) f32      pixel row index;  col_ref: (1, P) pixel col
    # a_ref:      (1, 9, C2, TC)  bf16 query-pre-contracted post2 tap weights
    # shift2/1/0: (Cout, 1) f32   folded conv-bias + BN shift
    # w1_ref:     (9, C1, C2) bf16 ; w0_ref: (9, C0, C1) bf16 (tap-major)
    # out_ref:    (1, C0, P) f32
    # acc2_ref:   (C2, P) f32     post2 accumulator (persists across chunks)
    # h2_ref:     (C2, P) bf16 ;  h1_ref: (C1, P) bf16  inter-layer scratch
    c_idx = pl.program_id(1)
    n_chunks = pl.num_programs(1)
    p_tot = feat_ref.shape[-1]

    rowf = row_ref[...]
    colf = col_ref[...]

    def border_mask(dy, dx):
        conds = []
        if dy < 0:
            conds.append(rowf >= float(-dy))
        if dy > 0:
            conds.append(rowf < float(height - dy))
        if dx < 0:
            conds.append(colf >= float(-dx))
        if dx > 0:
            conds.append(colf < float(width - dx))
        ok = conds[0]
        for cond in conds[1:]:
            ok = jnp.logical_and(ok, cond)
        return ok.astype(jnp.float32)

    def conv3x3_taps(get_w, x, emit_row):
        # 9-tap conv on the whole (flattened) map: per tap one MXU matmul,
        # an XLU lane roll by the tap offset, and a border mask.  Taps are
        # grouped per kernel row before being emitted (fewer acc passes).
        t = 0
        for idy, dy in enumerate((-1, 0, 1)):
            rsum = None
            for dx in (-1, 0, 1):
                y = jnp.dot(get_w(t), x, preferred_element_type=jnp.float32)
                s = dy * width + dx
                if s != 0:
                    # out[p] needs y[p + s]; jnp/pltpu roll: out[p] = y[p - k]
                    y = pltpu.roll(y, shift=(-s) % p_tot, axis=1)
                    y = y * border_mask(dy, dx)
                rsum = y if rsum is None else rsum + y
                t += 1
            emit_row(rsum, idy == 0)

    def conv3x3_sum(get_w, x):
        box = [None]

        def emit(rsum, _first):
            box[0] = rsum if box[0] is None else box[0] + rsum

        conv3x3_taps(get_w, x, emit)
        return box[0]

    # ---- post2 (pre-contracted weights), accumulated over Cin chunks -------
    x2 = feat_ref[0] + score_ref[0]          # pixels = feat + score (bf16)

    def emit_post2(rsum, first_row):
        if first_row:
            @pl.when(c_idx == 0)
            def _():
                acc2_ref[...] = rsum

            @pl.when(c_idx > 0)
            def _():
                acc2_ref[...] += rsum
        else:
            acc2_ref[...] += rsum

    conv3x3_taps(lambda t: a_ref[0, t], x2, emit_post2)

    # ---- epilogue on the last chunk: BN shift + ReLU, then post1/post0 -----
    @pl.when(c_idx == n_chunks - 1)
    def _():
        h2 = jnp.maximum(acc2_ref[...] + shift2_ref[...], 0.0)
        h2_ref[...] = h2.astype(h2_ref.dtype)

        y1 = conv3x3_sum(lambda t: w1_ref[t], h2_ref[...])
        h1 = jnp.maximum(y1 + shift1_ref[...], 0.0)
        h1_ref[...] = h1.astype(h1_ref.dtype)

        y0 = conv3x3_sum(lambda t: w0_ref[t], h1_ref[...])
        out_ref[0] = (y0 + shift0_ref[...]).astype(out_ref.dtype)


def fused_mask_head(feat_flat, score_flat, row_f, col_f, A, shift2,
                    w1t, shift1, w0t, shift0, *, H, W):
    B, C, P = feat_flat.shape
    assert P == H * W
    c2 = A.shape[2]
    c1, cin1 = w1t.shape[1], w1t.shape[2]
    c0, cin0 = w0t.shape[1], w0t.shape[2]
    TC = _choose_cin_chunk(C)
    n_chunks = C // TC

    # working-set estimate -> scoped VMEM limit (headroom for tap partials)
    est = (2 * TC * P * 2 + 2 * P * 2 + 2 * 2 * P * 4
           + 2 * 9 * c2 * TC * 2
           + 2 * 9 * (c1 * cin1 + c0 * cin0) * 2
           + 2 * (c2 + c1 + c0) * 4
           + 2 * c0 * P * 4
           + c2 * P * 4 + c2 * P * 2 + c1 * P * 2
           + 2 * c2 * P * 4)
    vmem_limit = max(16 << 20, min(2 * est, 48 << 20))

    return pl.pallas_call(
        functools.partial(_fused_head_kernel, height=H, width=W),
        out_shape=jax.ShapeDtypeStruct((B, c0, P), jnp.float32),
        grid=(B, n_chunks),
        in_specs=[
            pl.BlockSpec((1, TC, P), lambda b, k: (b, k, 0)),         # feature
            pl.BlockSpec((1, 1, P), lambda b, k: (b, 0, 0)),          # score
            pl.BlockSpec((1, P), lambda b, k: (0, 0)),                # row idx
            pl.BlockSpec((1, P), lambda b, k: (0, 0)),                # col idx
            pl.BlockSpec((1, 9, c2, TC), lambda b, k: (b, 0, 0, k)),  # A chunk
            pl.BlockSpec((c2, 1), lambda b, k: (0, 0)),               # shift2
            pl.BlockSpec((9, c1, cin1), lambda b, k: (0, 0, 0)),      # w1 taps
            pl.BlockSpec((c1, 1), lambda b, k: (0, 0)),               # shift1
            pl.BlockSpec((9, c0, cin0), lambda b, k: (0, 0, 0)),      # w0 taps
            pl.BlockSpec((c0, 1), lambda b, k: (0, 0)),               # shift0
        ],
        out_specs=pl.BlockSpec((1, c0, P), lambda b, k: (b, 0, 0)),
        scratch_shapes=[
            pltpu.VMEM((c2, P), jnp.float32),    # post2 accumulator
            pltpu.VMEM((c2, P), jnp.bfloat16),   # post2 activation
            pltpu.VMEM((c1, P), jnp.bfloat16),   # post1 activation
        ],
        compiler_params=pltpu.CompilerParams(
            dimension_semantics=("parallel", "arbitrary"),
            vmem_limit_bytes=vmem_limit),
    )(feat_flat, score_flat, row_f, col_f, A, shift2, w1t, shift1, w0t, shift0)


# ----------------------------------------------------------------------------
# SegmNet.mask_head forward
# ----------------------------------------------------------------------------
def mask_head(params, test_feat, fg_query, bg_query, score):
    """test_feat: [B, C, H, W] ('sep'), fg_query: [B, 225, C],
    bg_query: [B, 84, C], score: [B, 1, h, w].  Returns [B, 2, H, W]."""
    B, C, H, W = test_feat.shape
    # torch quirk: interpolate(size=(W, H)); only consistent when H == W.
    assert H == W, "SegmNet.mask_head requires a square 'sep' feature map"
    P = H * W

    w2f, shift2 = _fold_conv_bn(*params["post2"])
    w1f, shift1 = _fold_conv_bn(*params["post1"])
    w0f, shift0 = _fold_conv_bn(*params["post0"])

    # Pre-contract post2's folded tap weights with the (fg|bg) queries:
    # A[b, t, o, c] = sum_n w2_fold[t, o, n] * q[b, n, c]   (tiny XLA matmul)
    q = jnp.concatenate([fg_query, bg_query], axis=1).astype(jnp.float32)
    w2t = _tap_major(w2f)                                    # [9, 32, 309]
    A = jnp.einsum("ton,bnc->btoc", w2t, q).astype(jnp.bfloat16)  # [B,9,32,C]

    w1t = _tap_major(w1f).astype(jnp.bfloat16)               # [9, 16, 32]
    w0t = _tap_major(w0f).astype(jnp.bfloat16)               # [9, 2, 16]

    score_up = nearest_interp(score, W, H)                   # torch (W, H) quirk
    feat_flat = test_feat.reshape(B, C, P).astype(jnp.bfloat16)
    score_flat = score_up.reshape(B, 1, P).astype(jnp.bfloat16)

    pos = jnp.arange(P, dtype=jnp.int32)
    row_f = (pos // W).astype(jnp.float32).reshape(1, P)
    col_f = (pos % W).astype(jnp.float32).reshape(1, P)

    out = fused_mask_head(feat_flat, score_flat, row_f, col_f, A, shift2,
                          w1t, shift1, w0t, shift0, H=H, W=W)
    return out.reshape(B, 2, H, W)


# ----------------------------------------------------------------------------
# Pure-JAX fp32 reference (mirrors the torch module exactly)
# ----------------------------------------------------------------------------
def _conv_bn_ref(x, w, b, gamma, beta, mean, var, *, relu, eps=1e-5):
    y = jax.lax.conv_general_dilated(
        x.astype(jnp.float32), w.astype(jnp.float32),
        window_strides=(1, 1), padding=((1, 1), (1, 1)),
        dimension_numbers=("NCHW", "OIHW", "NCHW"))
    y = y + b[None, :, None, None]
    y = (y - mean[None, :, None, None]) / jnp.sqrt(var[None, :, None, None] + eps)
    y = gamma[None, :, None, None] * y + beta[None, :, None, None]
    return jnp.maximum(y, 0.0) if relu else y


def reference_mask_head(params, test_feat, fg_query, bg_query, score):
    B, C, H, W = test_feat.shape
    score_up = nearest_interp(score, W, H)
    tf = test_feat + score_up
    pixels = tf.reshape(B, C, H * W)
    fg_mask = jnp.einsum("bnc,bcp->bnp", fg_query, pixels)
    bg_mask = jnp.einsum("bnc,bcp->bnp", bg_query, pixels)
    mask = jnp.concatenate([fg_mask, bg_mask], axis=1).reshape(B, -1, H, W)
    mask = _conv_bn_ref(mask, *params["post2"], relu=True)
    mask = _conv_bn_ref(mask, *params["post1"], relu=True)
    mask = _conv_bn_ref(mask, *params["post0"], relu=False)
    return mask


# ----------------------------------------------------------------------------
# Deterministic parameter init (Conv2d + BatchNorm2d per block)
# ----------------------------------------------------------------------------
def init_conv_bn(key, cin, cout):
    ks = jax.random.split(key, 6)
    w = 0.05 * jax.random.normal(ks[0], (cout, cin, 3, 3), jnp.float32)
    b = 0.05 * jax.random.normal(ks[1], (cout,), jnp.float32)
    gamma = 1.0 + 0.1 * jax.random.normal(ks[2], (cout,), jnp.float32)
    beta = 0.1 * jax.random.normal(ks[3], (cout,), jnp.float32)
    mean = 0.1 * jax.random.normal(ks[4], (cout,), jnp.float32)
    var = jnp.abs(jax.random.normal(ks[5], (cout,), jnp.float32)) + 0.5
    return (w, b, gamma, beta, mean, var)


if __name__ == "__main__":
    key = jax.random.PRNGKey(0)
    kp2, kp1, kp0, kf, kq1, kq2, ks = jax.random.split(key, 7)

    params = {
        "post2": init_conv_bn(kp2, 309, 32),
        "post1": init_conv_bn(kp1, 32, 16),
        "post0": init_conv_bn(kp0, 16, 2),
    }

    # Small synthetic shapes: 'sep' channel count (256) kept so the Cin-chunked
    # pipeline path is exercised, spatial size reduced to 16x16.
    B, C, H, W = 2, 256, 16, 16
    N_FG = 1 + 16 + 64 + 144      # fg_roi_dims [1,4,8,12] -> 225 fg queries
    N_BG = 1 + 9 + 25 + 49        # bg_roi_dims [1,3,5,7]  -> 84  bg queries

    test_feat = jax.random.normal(kf, (B, C, H, W), jnp.float32)
    fg_query = jax.random.normal(kq1, (B, N_FG, C), jnp.float32)
    bg_query = jax.random.normal(kq2, (B, N_BG, C), jnp.float32)
    score = jax.random.normal(ks, (B, 1, 8, 8), jnp.float32)

    out = jax.jit(mask_head)(params, test_feat, fg_query, bg_query, score)
    jax.block_until_ready(out)
    assert out.shape == (B, 2, H, W), out.shape

    ref = jax.jit(reference_mask_head)(params, test_feat, fg_query, bg_query,
                                       score)
    jax.block_until_ready(ref)
    err = float(jnp.max(jnp.abs(out - ref)) / (jnp.max(jnp.abs(ref)) + 1e-6))
    assert err < 5e-2, f"max-abs-normalized error too large: {err}"
    print("KERNEL_OK")
</pallas_src>

<mosaic_0001>
module attributes {stable_mosaic.version = 11 : i64} {
  func.func @_fused_head_kernel(%arg0: i32, %arg1: i32, %arg2: memref<1x128x256xbf16, #tpu.memory_space<vmem>>, %arg3: memref<1x1x256xbf16, #tpu.memory_space<vmem>>, %arg4: memref<1x256xf32, #tpu.memory_space<vmem>>, %arg5: memref<1x256xf32, #tpu.memory_space<vmem>>, %arg6: memref<1x9x32x128xbf16, #tpu.memory_space<vmem>>, %arg7: memref<32x1xf32, #tpu.memory_space<vmem>>, %arg8: memref<9x16x32xbf16, #tpu.memory_space<vmem>>, %arg9: memref<16x1xf32, #tpu.memory_space<vmem>>, %arg10: memref<9x2x16xbf16, #tpu.memory_space<vmem>>, %arg11: memref<2x1xf32, #tpu.memory_space<vmem>>, %arg12: memref<1x2x256xf32, #tpu.memory_space<vmem>>, %arg13: memref<32x256xf32, #tpu.memory_space<vmem>>, %arg14: memref<32x256xbf16, #tpu.memory_space<vmem>>, %arg15: memref<16x256xbf16, #tpu.memory_space<vmem>>) attributes {dimension_semantics = [#tpu.dimension_semantics<parallel>, #tpu.dimension_semantics<arbitrary>], iteration_bounds = array<i64: 2, 2>, scalar_prefetch = 0 : i64, scratch_operands = 3 : i64, tpu.core_type = #tpu.core_type<tc>, window_params = [{transform_indices = @transform_0, window_bounds = array<i64: 1, 128, 256>}, {transform_indices = @transform_1, window_bounds = array<i64: 1, 1, 256>}, {pipeline_mode = #tpu.pipeline_mode<synchronous>, transform_indices = @transform_2, window_bounds = array<i64: 1, 256>}, {pipeline_mode = #tpu.pipeline_mode<synchronous>, transform_indices = @transform_3, window_bounds = array<i64: 1, 256>}, {transform_indices = @transform_4, window_bounds = array<i64: 1, 9, 32, 128>}, {pipeline_mode = #tpu.pipeline_mode<synchronous>, transform_indices = @transform_5, window_bounds = array<i64: 32, 1>}, {pipeline_mode = #tpu.pipeline_mode<synchronous>, transform_indices = @transform_6, window_bounds = array<i64: 9, 16, 32>}, {pipeline_mode = #tpu.pipeline_mode<synchronous>, transform_indices = @transform_7, window_bounds = array<i64: 16, 1>}, {pipeline_mode = #tpu.pipeline_mode<synchronous>, transform_indices = @transform_8, window_bounds = array<i64: 9, 2, 16>}, {pipeline_mode = #tpu.pipeline_mode<synchronous>, transform_indices = @transform_9, window_bounds = array<i64: 2, 1>}, {transform_indices = @transform_10, window_bounds = array<i64: 1, 2, 256>}]} {
    %c0 = arith.constant 0 : index
    %c0_0 = arith.constant 0 : index
    %0 = vector.load %arg4[%c0, %c0_0] : memref<1x256xf32, #tpu.memory_space<vmem>>, vector<1x256xf32>
    %c0_1 = arith.constant 0 : index
    %c0_2 = arith.constant 0 : index
    %1 = vector.load %arg5[%c0_1, %c0_2] : memref<1x256xf32, #tpu.memory_space<vmem>>, vector<1x256xf32>
    %c0_3 = arith.constant 0 : index
    %c0_4 = arith.constant 0 : index
    %c0_5 = arith.constant 0 : index
    %2 = vector.load %arg2[%c0_3, %c0_4, %c0_5] : memref<1x128x256xbf16, #tpu.memory_space<vmem>>, vector<1x128x256xbf16>
    %3 = vector.shape_cast %2 : vector<1x128x256xbf16> to vector<128x256xbf16>
    %c0_6 = arith.constant 0 : index
    %c0_7 = arith.constant 0 : index
    %c0_8 = arith.constant 0 : index
    %4 = vector.load %arg3[%c0_6, %c0_7, %c0_8] : memref<1x1x256xbf16, #tpu.memory_space<vmem>>, vector<1x1x256xbf16>
    %5 = vector.shape_cast %4 : vector<1x1x256xbf16> to vector<1x256xbf16>
    %6 = vector.broadcast %5 : vector<1x256xbf16> to vector<128x256xbf16>
    %7 = arith.addf %3, %6 : vector<128x256xbf16>
    %c0_9 = arith.constant 0 : index
    %c0_10 = arith.constant 0 : index
    %c0_11 = arith.constant 0 : index
    %c0_12 = arith.constant 0 : index
    %8 = vector.load %arg6[%c0_9, %c0_10, %c0_11, %c0_12] : memref<1x9x32x128xbf16, #tpu.memory_space<vmem>>, vector<1x1x32x128xbf16>
    %9 = vector.shape_cast %8 : vector<1x1x32x128xbf16> to vector<32x128xbf16>
    %cst = arith.constant dense<0.000000e+00> : vector<32x256xf32>
    %10 = tpu.matmul %9, %7, %cst {dimension_numbers = #tpu.dot_dimension_numbers<[1], [0], [0], [1], [0, 0, 1, 1], [], []>} : vector<32x128xbf16>, vector<128x256xbf16>, vector<32x256xf32> -> vector<32x256xf32>
    %c17_i32 = arith.constant 17 : i32
    %11 = tpu.dynamic_rotate %10 by %c17_i32 dim 1 : vector<32x256xf32>, i32 -> vector<32x256xf32>
    %cst_13 = arith.constant 1.000000e+00 : f32
    %12 = vector.broadcast %cst_13 : f32 to vector<1x256xf32>
    %13 = arith.cmpf oge, %0, %12 : vector<1x256xf32>
    %cst_14 = arith.constant 1.000000e+00 : f32
    %14 = vector.broadcast %cst_14 : f32 to vector<1x256xf32>
    %15 = arith.cmpf oge, %1, %14 : vector<1x256xf32>
    %16 = arith.andi %13, %15 : vector<1x256xi1>
    %17 = arith.extui %16 : vector<1x256xi1> to vector<1x256xi32>
    %18 = arith.sitofp %17 : vector<1x256xi32> to vector<1x256xf32>
    %19 = vector.broadcast %18 : vector<1x256xf32> to vector<32x256xf32>
    %20 = arith.mulf %11, %19 : vector<32x256xf32>
    %c0_15 = arith.constant 0 : index
    %c1 = arith.constant 1 : index
    %c0_16 = arith.constant 0 : index
    %c0_17 = arith.constant 0 : index
    %21 = vector.load %arg6[%c0_15, %c1, %c0_16, %c0_17] : memref<1x9x32x128xbf16, #tpu.memory_space<vmem>>, vector<1x1x32x128xbf16>
    %22 = vector.shape_cast %21 : vector<1x1x32x128xbf16> to vector<32x128xbf16>
    %cst_18 = arith.constant dense<0.000000e+00> : vector<32x256xf32>
    %23 = tpu.matmul %22, %7, %cst_18 {dimension_numbers = #tpu.dot_dimension_numbers<[1], [0], [0], [1], [0, 0, 1, 1], [], []>} : vector<32x128xbf16>, vector<128x256xbf16>, vector<32x256xf32> -> vector<32x256xf32>
    %c16_i32 = arith.constant 16 : i32
    %24 = tpu.dynamic_rotate %23 by %c16_i32 dim 1 : vector<32x256xf32>, i32 -> vector<32x256xf32>
    %cst_19 = arith.constant 1.000000e+00 : f32
    %25 = vector.broadcast %cst_19 : f32 to vector<1x256xf32>
    %26 = arith.cmpf oge, %0, %25 : vector<1x256xf32>
    %27 = arith.extui %26 : vector<1x256xi1> to vector<1x256xi32>
    %28 = arith.sitofp %27 : vector<1x256xi32> to vector<1x256xf32>
    %29 = vector.broadcast %28 : vector<1x256xf32> to vector<32x256xf32>
    %30 = arith.mulf %24, %29 : vector<32x256xf32>
    %31 = arith.addf %20, %30 : vector<32x256xf32>
    %c0_20 = arith.constant 0 : index
    %c2 = arith.constant 2 : index
    %c0_21 = arith.constant 0 : index
    %c0_22 = arith.constant 0 : index
    %32 = vector.load %arg6[%c0_20, %c2, %c0_21, %c0_22] : memref<1x9x32x128xbf16, #tpu.memory_space<vmem>>, vector<1x1x32x128xbf16>
    %33 = vector.shape_cast %32 : vector<1x1x32x128xbf16> to vector<32x128xbf16>
    %cst_23 = arith.constant dense<0.000000e+00> : vector<32x256xf32>
    %34 = tpu.matmul %33, %7, %cst_23 {dimension_numbers = #tpu.dot_dimension_numbers<[1], [0], [0], [1], [0, 0, 1, 1], [], []>} : vector<32x128xbf16>, vector<128x256xbf16>, vector<32x256xf32> -> vector<32x256xf32>
    %c15_i32 = arith.constant 15 : i32
    %35 = tpu.dynamic_rotate %34 by %c15_i32 dim 1 : vector<32x256xf32>, i32 -> vector<32x256xf32>
    %cst_24 = arith.constant 1.000000e+00 : f32
    %36 = vector.broadcast %cst_24 : f32 to vector<1x256xf32>
    %37 = arith.cmpf oge, %0, %36 : vector<1x256xf32>
    %cst_25 = arith.constant 1.500000e+01 : f32
    %38 = vector.broadcast %cst_25 : f32 to vector<1x256xf32>
    %39 = arith.cmpf olt, %1, %38 : vector<1x256xf32>
    %40 = arith.andi %37, %39 : vector<1x256xi1>
    %41 = arith.extui %40 : vector<1x256xi1> to vector<1x256xi32>
    %42 = arith.sitofp %41 : vector<1x256xi32> to vector<1x256xf32>
    %43 = vector.broadcast %42 : vector<1x256xf32> to vector<32x256xf32>
    %44 = arith.mulf %35, %43 : vector<32x256xf32>
    %45 = arith.addf %31, %44 : vector<32x256xf32>
    %c0_i32 = arith.constant 0 : i32
    %46 = arith.cmpi eq, %arg1, %c0_i32 : i32
    %47 = arith.extui %46 : i1 to i32
    %c0_i32_26 = arith.constant 0 : i32
    %48 = arith.cmpi ne, %47, %c0_i32_26 : i32
    scf.if %48 {
      %c0_70 = arith.constant 0 : index
      %c0_71 = arith.constant 0 : index
      %124 = vector.load %arg13[%c0_70, %c0_71] : memref<32x256xf32, #tpu.memory_space<vmem>>, vector<32x256xf32>
      tpu.vector_store %arg13[%c0_70, %c0_71], %45 {strides = array<i32>} : memref<32x256xf32, #tpu.memory_space<vmem>>, vector<32x256xf32>,
    } else {
    }
    %c0_i32_27 = arith.constant 0 : i32
    %49 = arith.cmpi sgt, %arg1, %c0_i32_27 : i32
    %50 = arith.extui %49 : i1 to i32
    %c0_i32_28 = arith.constant 0 : i32
    %51 = arith.cmpi ne, %50, %c0_i32_28 : i32
    scf.if %51 {
      %c0_70 = arith.constant 0 : index
      %c0_71 = arith.constant 0 : index
      %124 = vector.load %arg13[%c0_70, %c0_71] : memref<32x256xf32, #tpu.memory_space<vmem>>, vector<32x256xf32>
      %125 = arith.addf %124, %45 : vector<32x256xf32>
      %c0_72 = arith.constant 0 : index
      %c0_73 = arith.constant 0 : index
      %126 = vector.load %arg13[%c0_72, %c0_73] : memref<32x256xf32, #tpu.memory_space<vmem>>, vector<32x256xf32>
      tpu.vector_store %arg13[%c0_72, %c0_73], %125 {strides = array<i32>} : memref<32x256xf32, #tpu.memory_space<vmem>>, vector<32x256xf32>,
    } else {
    }
    %c0_29 = arith.constant 0 : index
    %c3 = arith.constant 3 : index
    %c0_30 = arith.constant 0 : index
    %c0_31 = arith.constant 0 : index
    %52 = vector.load %arg6[%c0_29, %c3, %c0_30, %c0_31] : memref<1x9x32x128xbf16, #tpu.memory_space<vmem>>, vector<1x1x32x128xbf16>
    %53 = vector.shape_cast %52 : vector<1x1x32x128xbf16> to vector<32x128xbf16>
    %cst_32 = arith.constant dense<0.000000e+00> : vector<32x256xf32>
    %54 = tpu.matmul %53, %7, %cst_32 {dimension_numbers = #tpu.dot_dimension_numbers<[1], [0], [0], [1], [0, 0, 1, 1], [], []>} : vector<32x128xbf16>, vector<128x256xbf16>, vector<32x256xf32> -> vector<32x256xf32>
    %c1_i32 = arith.constant 1 : i32
    %55 = tpu.dynamic_rotate %54 by %c1_i32 dim 1 : vector<32x256xf32>, i32 -> vector<32x256xf32>
    %cst_33 = arith.constant 1.000000e+00 : f32
    %56 = vector.broadcast %cst_33 : f32 to vector<1x256xf32>
    %57 = arith.cmpf oge, %1, %56 : vector<1x256xf32>
    %58 = arith.extui %57 : vector<1x256xi1> to vector<1x256xi32>
    %59 = arith.sitofp %58 : vector<1x256xi32> to vector<1x256xf32>
    %60 = vector.broadcast %59 : vector<1x256xf32> to vector<32x256xf32>
    %61 = arith.mulf %55, %60 : vector<32x256xf32>
    %c0_34 = arith.constant 0 : index
    %c4 = arith.constant 4 : index
    %c0_35 = arith.constant 0 : index
    %c0_36 = arith.constant 0 : index
    %62 = vector.load %arg6[%c0_34, %c4, %c0_35, %c0_36] : memref<1x9x32x128xbf16, #tpu.memory_space<vmem>>, vector<1x1x32x128xbf16>
    %63 = vector.shape_cast %62 : vector<1x1x32x128xbf16> to vector<32x128xbf16>
    %cst_37 = arith.constant dense<0.000000e+00> : vector<32x256xf32>
    %64 = tpu.matmul %63, %7, %cst_37 {dimension_numbers = #tpu.dot_dimension_numbers<[1], [0], [0], [1], [0, 0, 1, 1], [], []>} : vector<32x128xbf16>, vector<128x256xbf16>, vector<32x256xf32> -> vector<32x256xf32>
    %65 = arith.addf %61, %64 : vector<32x256xf32>
    %c0_38 = arith.constant 0 : index
    %c5 = arith.constant 5 : index
    %c0_39 = arith.constant 0 : index
    %c0_40 = arith.constant 0 : index
    %66 = vector.load %arg6[%c0_38, %c5, %c0_39, %c0_40] : memref<1x9x32x128xbf16, #tpu.memory_space<vmem>>, vector<1x1x32x128xbf16>
    %67 = vector.shape_cast %66 : vector<1x1x32x128xbf16> to vector<32x128xbf16>
    %cst_41 = arith.constant dense<0.000000e+00> : vector<32x256xf32>
    %68 = tpu.matmul %67, %7, %cst_41 {dimension_numbers = #tpu.dot_dimension_numbers<[1], [0], [0], [1], [0, 0, 1, 1], [], []>} : vector<32x128xbf16>, vector<128x256xbf16>, vector<32x256xf32> -> vector<32x256xf32>
    %c255_i32 = arith.constant 255 : i32
    %69 = tpu.dynamic_rotate %68 by %c255_i32 dim 1 : vector<32x256xf32>, i32 -> vector<32x256xf32>
    %cst_42 = arith.constant 1.500000e+01 : f32
    %70 = vector.broadcast %cst_42 : f32 to vector<1x256xf32>
    %71 = arith.cmpf olt, %1, %70 : vector<1x256xf32>
    %72 = arith.extui %71 : vector<1x256xi1> to vector<1x256xi32>
    %73 = arith.sitofp %72 : vector<1x256xi32> to vector<1x256xf32>
    %74 = vector.broadcast %73 : vector<1x256xf32> to vector<32x256xf32>
    %75 = arith.mulf %69, %74 : vector<32x256xf32>
    %76 = arith.addf %65, %75 : vector<32x256xf32>
    %c0_43 = arith.constant 0 : index
    %c0_44 = arith.constant 0 : index
    %77 = vector.load %arg13[%c0_43, %c0_44] : memref<32x256xf32, #tpu.memory_space<vmem>>, vector<32x256xf32>
    %78 = arith.addf %77, %76 : vector<32x256xf32>
    %c0_45 = arith.constant 0 : index
    %c0_46 = arith.constant 0 : index
    %79 = vector.load %arg13[%c0_45, %c0_46] : memref<32x256xf32, #tpu.memory_space<vmem>>, vector<32x256xf32>
    tpu.vector_store %arg13[%c0_45, %c0_46], %78 {strides = array<i32>} : memref<32x256xf32, #tpu.memory_space<vmem>>, vector<32x256xf32>,
    %c0_47 = arith.constant 0 : index
    %c6 = arith.constant 6 : index
    %c0_48 = arith.constant 0 : index
    %c0_49 = arith.constant 0 : index
    %80 = vector.load %arg6[%c0_47, %c6, %c0_48, %c0_49] : memref<1x9x32x128xbf16, #tpu.memory_space<vmem>>, vector<1x1x32x128xbf16>
    %81 = vector.shape_cast %80 : vector<1x1x32x128xbf16> to vector<32x128xbf16>
    %cst_50 = arith.constant dense<0.000000e+00> : vector<32x256xf32>
    %82 = tpu.matmul %81, %7, %cst_50 {dimension_numbers = #tpu.dot_dimension_numbers<[1], [0], [0], [1], [0, 0, 1, 1], [], []>} : vector<32x128xbf16>, vector<128x256xbf16>, vector<32x256xf32> -> vector<32x256xf32>
    %c241_i32 = arith.constant 241 : i32
    %83 = tpu.dynamic_rotate %82 by %c241_i32 dim 1 : vector<32x256xf32>, i32 -> vector<32x256xf32>
    %cst_51 = arith.constant 1.500000e+01 : f32
    %84 = vector.broadcast %cst_51 : f32 to vector<1x256xf32>
    %85 = arith.cmpf olt, %0, %84 : vector<1x256xf32>
    %cst_52 = arith.constant 1.000000e+00 : f32
    %86 = vector.broadcast %cst_52 : f32 to vector<1x256xf32>
    %87 = arith.cmpf oge, %1, %86 : vector<1x256xf32>
    %88 = arith.andi %85, %87 : vector<1x256xi1>
    %89 = arith.extui %88 : vector<1x256xi1> to vector<1x256xi32>
    %90 = arith.sitofp %89 : vector<1x256xi32> to vector<1x256xf32>
    %91 = vector.broadcast %90 : vector<1x256xf32> to vector<32x256xf32>
    %92 = arith.mulf %83, %91 : vector<32x256xf32>
    %c0_53 = arith.constant 0 : index
    %c7 = arith.constant 7 : index
    %c0_54 = arith.constant 0 : index
    %c0_55 = arith.constant 0 : index
    %93 = vector.load %arg6[%c0_53, %c7, %c0_54, %c0_55] : memref<1x9x32x128xbf16, #tpu.memory_space<vmem>>, vector<1x1x32x128xbf16>
    %94 = vector.shape_cast %93 : vector<1x1x32x128xbf16> to vector<32x128xbf16>
    %cst_56 = arith.constant dense<0.000000e+00> : vector<32x256xf32>
    %95 = tpu.matmul %94, %7, %cst_56 {dimension_numbers = #tpu.dot_dimension_numbers<[1], [0], [0], [1], [0, 0, 1, 1], [], []>} : vector<32x128xbf16>, vector<128x256xbf16>, vector<32x256xf32> -> vector<32x256xf32>
    %c240_i32 = arith.constant 240 : i32
    %96 = tpu.dynamic_rotate %95 by %c240_i32 dim 1 : vector<32x256xf32>, i32 -> vector<32x256xf32>
    %cst_57 = arith.constant 1.500000e+01 : f32
    %97 = vector.broadcast %cst_57 : f32 to vector<1x256xf32>
    %98 = arith.cmpf olt, %0, %97 : vector<1x256xf32>
    %99 = arith.extui %98 : vector<1x256xi1> to vector<1x256xi32>
    %100 = arith.sitofp %99 : vector<1x256xi32> to vector<1x256xf32>
    %101 = vector.broadcast %100 : vector<1x256xf32> to vector<32x256xf32>
    %102 = arith.mulf %96, %101 : vector<32x256xf32>
    %103 = arith.addf %92, %102 : vector<32x256xf32>
    %c0_58 = arith.constant 0 : index
    %c8 = arith.constant 8 : index
    %c0_59 = arith.constant 0 : index
    %c0_60 = arith.constant 0 : index
    %104 = vector.load %arg6[%c0_58, %c8, %c0_59, %c0_60] : memref<1x9x32x128xbf16, #tpu.memory_space<vmem>>, vector<1x1x32x128xbf16>
    %105 = vector.shape_cast %104 : vector<1x1x32x128xbf16> to vector<32x128xbf16>
    %cst_61 = arith.constant dense<0.000000e+00> : vector<32x256xf32>
    %106 = tpu.matmul %105, %7, %cst_61 {dimension_numbers = #tpu.dot_dimension_numbers<[1], [0], [0], [1], [0, 0, 1, 1], [], []>} : vector<32x128xbf16>, vector<128x256xbf16>, vector<32x256xf32> -> vector<32x256xf32>
    %c239_i32 = arith.constant 239 : i32
    %107 = tpu.dynamic_rotate %106 by %c239_i32 dim 1 : vector<32x256xf32>, i32 -> vector<32x256xf32>
    %cst_62 = arith.constant 1.500000e+01 : f32
    %108 = vector.broadcast %cst_62 : f32 to vector<1x256xf32>
    %109 = arith.cmpf olt, %0, %108 : vector<1x256xf32>
    %cst_63 = arith.constant 1.500000e+01 : f32
    %110 = vector.broadcast %cst_63 : f32 to vector<1x256xf32>
    %111 = arith.cmpf olt, %1, %110 : vector<1x256xf32>
    %112 = arith.andi %109, %111 : vector<1x256xi1>
    %113 = arith.extui %112 : vector<1x256xi1> to vector<1x256xi32>
    %114 = arith.sitofp %113 : vector<1x256xi32> to vector<1x256xf32>
    %115 = vector.broadcast %114 : vector<1x256xf32> to vector<32x256xf32>
    %116 = arith.mulf %107, %115 : vector<32x256xf32>
    %117 = arith.addf %103, %116 : vector<32x256xf32>
    %c0_64 = arith.constant 0 : index
    %c0_65 = arith.constant 0 : index
    %118 = vector.load %arg13[%c0_64, %c0_65] : memref<32x256xf32, #tpu.memory_space<vmem>>, vector<32x256xf32>
    %119 = arith.addf %118, %117 : vector<32x256xf32>
    %c0_66 = arith.constant 0 : index
    %c0_67 = arith.constant 0 : index
    %120 = vector.load %arg13[%c0_66, %c0_67] : memref<32x256xf32, #tpu.memory_space<vmem>>, vector<32x256xf32>
    tpu.vector_store %arg13[%c0_66, %c0_67], %119 {strides = array<i32>} : memref<32x256xf32, #tpu.memory_space<vmem>>, vector<32x256xf32>,
    %c1_i32_68 = arith.constant 1 : i32
    %121 = arith.cmpi eq, %arg1, %c1_i32_68 : i32
    %122 = arith.extui %121 : i1 to i32
    %c0_i32_69 = arith.constant 0 : i32
    %123 = arith.cmpi ne, %122, %c0_i32_69 : i32
    scf.if %123 {
      %c0_70 = arith.constant 0 : index
      %c0_71 = arith.constant 0 : index
      %124 = vector.load %arg13[%c0_70, %c0_71] : memref<32x256xf32, #tpu.memory_space<vmem>>, vector<32x256xf32>
      %c0_72 = arith.constant 0 : index
      %c0_73 = arith.constant 0 : index
      %125 = vector.load %arg7[%c0_72, %c0_73] : memref<32x1xf32, #tpu.memory_space<vmem>>, vector<32x1xf32>
      %126 = vector.broadcast %125 : vector<32x1xf32> to vector<32x256xf32>
      %127 = arith.addf %124, %126 : vector<32x256xf32>
      %cst_74 = arith.constant 0.000000e+00 : f32
      %128 = vector.broadcast %cst_74 : f32 to vector<32x256xf32>
      %129 = arith.maximumf %127, %128 : vector<32x256xf32>
      %130 = arith.truncf %129 : vector<32x256xf32> to vector<32x256xbf16>
      %c0_75 = arith.constant 0 : index
      %c0_76 = arith.constant 0 : index
      %131 = vector.load %arg14[%c0_75, %c0_76] : memref<32x256xbf16, #tpu.memory_space<vmem>>, vector<32x256xbf16>
      tpu.vector_store %arg14[%c0_75, %c0_76], %130 {strides = array<i32>} : memref<32x256xbf16, #tpu.memory_space<vmem>>, vector<32x256xbf16>,
      %c0_77 = arith.constant 0 : index
      %c0_78 = arith.constant 0 : index
      %132 = vector.load %arg14[%c0_77, %c0_78] : memref<32x256xbf16, #tpu.memory_space<vmem>>, vector<32x256xbf16>
      %c0_79 = arith.constant 0 : index
      %c0_80 = arith.constant 0 : index
      %c0_81 = arith.constant 0 : index
      %133 = vector.load %arg8[%c0_79, %c0_80, %c0_81] : memref<9x16x32xbf16, #tpu.memory_space<vmem>>, vector<1x16x32xbf16>
      %134 = vector.shape_cast %133 : vector<1x16x32xbf16> to vector<16x32xbf16>
      %cst_82 = arith.constant dense<0.000000e+00> : vector<16x256xf32>
      %135 = tpu.matmul %134, %132, %cst_82 {dimension_numbers = #tpu.dot_dimension_numbers<[1], [0], [0], [1], [0, 0, 1, 1], [], []>} : vector<16x32xbf16>, vector<32x256xbf16>, vector<16x256xf32> -> vector<16x256xf32>
      %c17_i32_83 = arith.constant 17 : i32
      %136 = tpu.dynamic_rotate %135 by %c17_i32_83 dim 1 : vector<16x256xf32>, i32 -> vector<16x256xf32>
      %cst_84 = arith.constant 1.000000e+00 : f32
      %137 = vector.broadcast %cst_84 : f32 to vector<1x256xf32>
      %138 = arith.cmpf oge, %0, %137 : vector<1x256xf32>
      %cst_85 = arith.constant 1.000000e+00 : f32
      %139 = vector.broadcast %cst_85 : f32 to vector<1x256xf32>
      %140 = arith.cmpf oge, %1, %139 : vector<1x256xf32>
      %141 = arith.andi %138, %140 : vector<1x256xi1>
      %142 = arith.extui %141 : vector<1x256xi1> to vector<1x256xi32>
      %143 = arith.sitofp %142 : vector<1x256xi32> to vector<1x256xf32>
      %144 = vector.broadcast %143 : vector<1x256xf32> to vector<16x256xf32>
      %145 = arith.mulf %136, %144 : vector<16x256xf32>
      %c1_86 = arith.constant 1 : index
      %c0_87 = arith.constant 0 : index
      %c0_88 = arith.constant 0 : index
      %146 = vector.load %arg8[%c1_86, %c0_87, %c0_88] : memref<9x16x32xbf16, #tpu.memory_space<vmem>>, vector<1x16x32xbf16>
      %147 = vector.shape_cast %146 : vector<1x16x32xbf16> to vector<16x32xbf16>
      %cst_89 = arith.constant dense<0.000000e+00> : vector<16x256xf32>
      %148 = tpu.matmul %147, %132, %cst_89 {dimension_numbers = #tpu.dot_dimension_numbers<[1], [0], [0], [1], [0, 0, 1, 1], [], []>} : vector<16x32xbf16>, vector<32x256xbf16>, vector<16x256xf32> -> vector<16x256xf32>
      %c16_i32_90 = arith.constant 16 : i32
      %149 = tpu.dynamic_rotate %148 by %c16_i32_90 dim 1 : vector<16x256xf32>, i32 -> vector<16x256xf32>
      %cst_91 = arith.constant 1.000000e+00 : f32
      %150 = vector.broadcast %cst_91 : f32 to vector<1x256xf32>
      %151 = arith.cmpf oge, %0, %150 : vector<1x256xf32>
      %152 = arith.extui %151 : vector<1x256xi1> to vector<1x256xi32>
      %153 = arith.sitofp %152 : vector<1x256xi32> to vector<1x256xf32>
      %154 = vector.broadcast %153 : vector<1x256xf32> to vector<16x256xf32>
      %155 = arith.mulf %149, %154 : vector<16x256xf32>
      %156 = arith.addf %145, %155 : vector<16x256xf32>
      %c2_92 = arith.constant 2 : index
      %c0_93 = arith.constant 0 : index
      %c0_94 = arith.constant 0 : index
      %157 = vector.load %arg8[%c2_92, %c0_93, %c0_94] : memref<9x16x32xbf16, #tpu.memory_space<vmem>>, vector<1x16x32xbf16>
      %158 = vector.shape_cast %157 : vector<1x16x32xbf16> to vector<16x32xbf16>
      %cst_95 = arith.constant dense<0.000000e+00> : vector<16x256xf32>
      %159 = tpu.matmul %158, %132, %cst_95 {dimension_numbers = #tpu.dot_dimension_numbers<[1], [0], [0], [1], [0, 0, 1, 1], [], []>} : vector<16x32xbf16>, vector<32x256xbf16>, vector<16x256xf32> -> vector<16x256xf32>
      %c15_i32_96 = arith.constant 15 : i32
      %160 = tpu.dynamic_rotate %159 by %c15_i32_96 dim 1 : vector<16x256xf32>, i32 -> vector<16x256xf32>
      %cst_97 = arith.constant 1.000000e+00 : f32
      %161 = vector.broadcast %cst_97 : f32 to vector<1x256xf32>
      %162 = arith.cmpf oge, %0, %161 : vector<1x256xf32>
      %cst_98 = arith.constant 1.500000e+01 : f32
      %163 = vector.broadcast %cst_98 : f32 to vector<1x256xf32>
      %164 = arith.cmpf olt, %1, %163 : vector<1x256xf32>
      %165 = arith.andi %162, %164 : vector<1x256xi1>
      %166 = arith.extui %165 : vector<1x256xi1> to vector<1x256xi32>
      %167 = arith.sitofp %166 : vector<1x256xi32> to vector<1x256xf32>
      %168 = vector.broadcast %167 : vector<1x256xf32> to vector<16x256xf32>
      %169 = arith.mulf %160, %168 : vector<16x256xf32>
      %170 = arith.addf %156, %169 : vector<16x256xf32>
      %c3_99 = arith.constant 3 : index
      %c0_100 = arith.constant 0 : index
      %c0_101 = arith.constant 0 : index
      %171 = vector.load %arg8[%c3_99, %c0_100, %c0_101] : memref<9x16x32xbf16, #tpu.memory_space<vmem>>, vector<1x16x32xbf16>
      %172 = vector.shape_cast %171 : vector<1x16x32xbf16> to vector<16x32xbf16>
      %cst_102 = arith.constant dense<0.000000e+00> : vector<16x256xf32>
      %173 = tpu.matmul %172, %132, %cst_102 {dimension_numbers = #tpu.dot_dimension_numbers<[1], [0], [0], [1], [0, 0, 1, 1], [], []>} : vector<16x32xbf16>, vector<32x256xbf16>, vector<16x256xf32> -> vector<16x256xf32>
      %c1_i32_103 = arith.constant 1 : i32
      %174 = tpu.dynamic_rotate %173 by %c1_i32_103 dim 1 : vector<16x256xf32>, i32 -> vector<16x256xf32>
      %cst_104 = arith.constant 1.000000e+00 : f32
      %175 = vector.broadcast %cst_104 : f32 to vector<1x256xf32>
      %176 = arith.cmpf oge, %1, %175 : vector<1x256xf32>
      %177 = arith.extui %176 : vector<1x256xi1> to vector<1x256xi32>
      %178 = arith.sitofp %177 : vector<1x256xi32> to vector<1x256xf32>
      %179 = vector.broadcast %178 : vector<1x256xf32> to vector<16x256xf32>
      %180 = arith.mulf %174, %179 : vector<16x256xf32>
      %c4_105 = arith.constant 4 : index
      %c0_106 = arith.constant 0 : index
      %c0_107 = arith.constant 0 : index
      %181 = vector.load %arg8[%c4_105, %c0_106, %c0_107] : memref<9x16x32xbf16, #tpu.memory_space<vmem>>, vector<1x16x32xbf16>
      %182 = vector.shape_cast %181 : vector<1x16x32xbf16> to vector<16x32xbf16>
      %cst_108 = arith.constant dense<0.000000e+00> : vector<16x256xf32>
      %183 = tpu.matmul %182, %132, %cst_108 {dimension_numbers = #tpu.dot_dimension_numbers<[1], [0], [0], [1], [0, 0, 1, 1], [], []>} : vector<16x32xbf16>, vector<32x256xbf16>, vector<16x256xf32> -> vector<16x256xf32>
      %184 = arith.addf %180, %183 : vector<16x256xf32>
      %c5_109 = arith.constant 5 : index
      %c0_110 = arith.constant 0 : index
      %c0_111 = arith.constant 0 : index
      %185 = vector.load %arg8[%c5_109, %c0_110, %c0_111] : memref<9x16x32xbf16, #tpu.memory_space<vmem>>, vector<1x16x32xbf16>
      %186 = vector.shape_cast %185 : vector<1x16x32xbf16> to vector<16x32xbf16>
      %cst_112 = arith.constant dense<0.000000e+00> : vector<16x256xf32>
      %187 = tpu.matmul %186, %132, %cst_112 {dimension_numbers = #tpu.dot_dimension_numbers<[1], [0], [0], [1], [0, 0, 1, 1], [], []>} : vector<16x32xbf16>, vector<32x256xbf16>, vector<16x256xf32> -> vector<16x256xf32>
      %c255_i32_113 = arith.constant 255 : i32
      %188 = tpu.dynamic_rotate %187 by %c255_i32_113 dim 1 : vector<16x256xf32>, i32 -> vector<16x256xf32>
      %cst_114 = arith.constant 1.500000e+01 : f32
      %189 = vector.broadcast %cst_114 : f32 to vector<1x256xf32>
      %190 = arith.cmpf olt, %1, %189 : vector<1x256xf32>
      %191 = arith.extui %190 : vector<1x256xi1> to vector<1x256xi32>
      %192 = arith.sitofp %191 : vector<1x256xi32> to vector<1x256xf32>
      %193 = vector.broadcast %192 : vector<1x256xf32> to vector<16x256xf32>
      %194 = arith.mulf %188, %193 : vector<16x256xf32>
      %195 = arith.addf %184, %194 : vector<16x256xf32>
      %196 = arith.addf %170, %195 : vector<16x256xf32>
      %c6_115 = arith.constant 6 : index
      %c0_116 = arith.constant 0 : index
      %c0_117 = arith.constant 0 : index
      %197 = vector.load %arg8[%c6_115, %c0_116, %c0_117] : memref<9x16x32xbf16, #tpu.memory_space<vmem>>, vector<1x16x32xbf16>
      %198 = vector.shape_cast %197 : vector<1x16x32xbf16> to vector<16x32xbf16>
      %cst_118 = arith.constant dense<0.000000e+00> : vector<16x256xf32>
      %199 = tpu.matmul %198, %132, %cst_118 {dimension_numbers = #tpu.dot_dimension_numbers<[1], [0], [0], [1], [0, 0, 1, 1], [], []>} : vector<16x32xbf16>, vector<32x256xbf16>, vector<16x256xf32> -> vector<16x256xf32>
      %c241_i32_119 = arith.constant 241 : i32
      %200 = tpu.dynamic_rotate %199 by %c241_i32_119 dim 1 : vector<16x256xf32>, i32 -> vector<16x256xf32>
      %cst_120 = arith.constant 1.500000e+01 : f32
      %201 = vector.broadcast %cst_120 : f32 to vector<1x256xf32>
      %202 = arith.cmpf olt, %0, %201 : vector<1x256xf32>
      %cst_121 = arith.constant 1.000000e+00 : f32
      %203 = vector.broadcast %cst_121 : f32 to vector<1x256xf32>
      %204 = arith.cmpf oge, %1, %203 : vector<1x256xf32>
      %205 = arith.andi %202, %204 : vector<1x256xi1>
      %206 = arith.extui %205 : vector<1x256xi1> to vector<1x256xi32>
      %207 = arith.sitofp %206 : vector<1x256xi32> to vector<1x256xf32>
      %208 = vector.broadcast %207 : vector<1x256xf32> to vector<16x256xf32>
      %209 = arith.mulf %200, %208 : vector<16x256xf32>
      %c7_122 = arith.constant 7 : index
      %c0_123 = arith.constant 0 : index
      %c0_124 = arith.constant 0 : index
      %210 = vector.load %arg8[%c7_122, %c0_123, %c0_124] : memref<9x16x32xbf16, #tpu.memory_space<vmem>>, vector<1x16x32xbf16>
      %211 = vector.shape_cast %210 : vector<1x16x32xbf16> to vector<16x32xbf16>
      %cst_125 = arith.constant dense<0.000000e+00> : vector<16x256xf32>
      %212 = tpu.matmul %211, %132, %cst_125 {dimension_numbers = #tpu.dot_dimension_numbers<[1], [0], [0], [1], [0, 0, 1, 1], [], []>} : vector<16x32xbf16>, vector<32x256xbf16>, vector<16x256xf32> -> vector<16x256xf32>
      %c240_i32_126 = arith.constant 240 : i32
      %213 = tpu.dynamic_rotate %212 by %c240_i32_126 dim 1 : vector<16x256xf32>, i32 -> vector<16x256xf32>
      %cst_127 = arith.constant 1.500000e+01 : f32
      %214 = vector.broadcast %cst_127 : f32 to vector<1x256xf32>
      %215 = arith.cmpf olt, %0, %214 : vector<1x256xf32>
      %216 = arith.extui %215 : vector<1x256xi1> to vector<1x256xi32>
      %217 = arith.sitofp %216 : vector<1x256xi32> to vector<1x256xf32>
      %218 = vector.broadcast %217 : vector<1x256xf32> to vector<16x256xf32>
      %219 = arith.mulf %213, %218 : vector<16x256xf32>
      %220 = arith.addf %209, %219 : vector<16x256xf32>
      %c8_128 = arith.constant 8 : index
      %c0_129 = arith.constant 0 : index
      %c0_130 = arith.constant 0 : index
      %221 = vector.load %arg8[%c8_128, %c0_129, %c0_130] : memref<9x16x32xbf16, #tpu.memory_space<vmem>>, vector<1x16x32xbf16>
      %222 = vector.shape_cast %221 : vector<1x16x32xbf16> to vector<16x32xbf16>
      %cst_131 = arith.constant dense<0.000000e+00> : vector<16x256xf32>
      %223 = tpu.matmul %222, %132, %cst_131 {dimension_numbers = #tpu.dot_dimension_numbers<[1], [0], [0], [1], [0, 0, 1, 1], [], []>} : vector<16x32xbf16>, vector<32x256xbf16>, vector<16x256xf32> -> vector<16x256xf32>
      %c239_i32_132 = arith.constant 239 : i32
      %224 = tpu.dynamic_rotate %223 by %c239_i32_132 dim 1 : vector<16x256xf32>, i32 -> vector<16x256xf32>
      %cst_133 = arith.constant 1.500000e+01 : f32
      %225 = vector.broadcast %cst_133 : f32 to vector<1x256xf32>
      %226 = arith.cmpf olt, %0, %225 : vector<1x256xf32>
      %cst_134 = arith.constant 1.500000e+01 : f32
      %227 = vector.broadcast %cst_134 : f32 to vector<1x256xf32>
      %228 = arith.cmpf olt, %1, %227 : vector<1x256xf32>
      %229 = arith.andi %226, %228 : vector<1x256xi1>
      %230 = arith.extui %229 : vector<1x256xi1> to vector<1x256xi32>
      %231 = arith.sitofp %230 : vector<1x256xi32> to vector<1x256xf32>
      %232 = vector.broadcast %231 : vector<1x256xf32> to vector<16x256xf32>
      %233 = arith.mulf %224, %232 : vector<16x256xf32>
      %234 = arith.addf %220, %233 : vector<16x256xf32>
      %235 = arith.addf %196, %234 : vector<16x256xf32>
      %c0_135 = arith.constant 0 : index
      %c0_136 = arith.constant 0 : index
      %236 = vector.load %arg9[%c0_135, %c0_136] : memref<16x1xf32, #tpu.memory_space<vmem>>, vector<16x1xf32>
      %237 = vector.broadcast %236 : vector<16x1xf32> to vector<16x256xf32>
      %238 = arith.addf %235, %237 : vector<16x256xf32>
      %cst_137 = arith.constant 0.000000e+00 : f32
      %239 = vector.broadcast %cst_137 : f32 to vector<16x256xf32>
      %240 = arith.maximumf %238, %239 : vector<16x256xf32>
      %241 = arith.truncf %240 : vector<16x256xf32> to vector<16x256xbf16>
      %c0_138 = arith.constant 0 : index
      %c0_139 = arith.constant 0 : index
      %242 = vector.load %arg15[%c0_138, %c0_139] : memref<16x256xbf16, #tpu.memory_space<vmem>>, vector<16x256xbf16>
      tpu.vector_store %arg15[%c0_138, %c0_139], %241 {strides = array<i32>} : memref<16x256xbf16, #tpu.memory_space<vmem>>, vector<16x256xbf16>,
      %c0_140 = arith.constant 0 : index
      %c0_141 = arith.constant 0 : index
      %243 = vector.load %arg15[%c0_140, %c0_141] : memref<16x256xbf16, #tpu.memory_space<vmem>>, vector<16x256xbf16>
      %c0_142 = arith.constant 0 : index
      %c0_143 = arith.constant 0 : index
      %c0_144 = arith.constant 0 : index
      %244 = vector.load %arg10[%c0_142, %c0_143, %c0_144] : memref<9x2x16xbf16, #tpu.memory_space<vmem>>, vector<1x2x16xbf16>
      %245 = vector.shape_cast %244 : vector<1x2x16xbf16> to vector<2x16xbf16>
      %cst_145 = arith.constant dense<0.000000e+00> : vector<2x256xf32>
      %246 = tpu.matmul %245, %243, %cst_145 {dimension_numbers = #tpu.dot_dimension_numbers<[1], [0], [0], [1], [0, 0, 1, 1], [], []>} : vector<2x16xbf16>, vector<16x256xbf16>, vector<2x256xf32> -> vector<2x256xf32>
      %c17_i32_146 = arith.constant 17 : i32
      %247 = tpu.dynamic_rotate %246 by %c17_i32_146 dim 1 : vector<2x256xf32>, i32 -> vector<2x256xf32>
      %cst_147 = arith.constant 1.000000e+00 : f32
      %248 = vector.broadcast %cst_147 : f32 to vector<1x256xf32>
      %249 = arith.cmpf oge, %0, %248 : vector<1x256xf32>
      %cst_148 = arith.constant 1.000000e+00 : f32
      %250 = vector.broadcast %cst_148 : f32 to vector<1x256xf32>
      %251 = arith.cmpf oge, %1, %250 : vector<1x256xf32>
      %252 = arith.andi %249, %251 : vector<1x256xi1>
      %253 = arith.extui %252 : vector<1x256xi1> to vector<1x256xi32>
      %254 = arith.sitofp %253 : vector<1x256xi32> to vector<1x256xf32>
      %255 = vector.broadcast %254 : vector<1x256xf32> to vector<2x256xf32>
      %256 = arith.mulf %247, %255 : vector<2x256xf32>
      %c1_149 = arith.constant 1 : index
      %c0_150 = arith.constant 0 : index
      %c0_151 = arith.constant 0 : index
      %257 = vector.load %arg10[%c1_149, %c0_150, %c0_151] : memref<9x2x16xbf16, #tpu.memory_space<vmem>>, vector<1x2x16xbf16>
      %258 = vector.shape_cast %257 : vector<1x2x16xbf16> to vector<2x16xbf16>
      %cst_152 = arith.constant dense<0.000000e+00> : vector<2x256xf32>
      %259 = tpu.matmul %258, %243, %cst_152 {dimension_numbers = #tpu.dot_dimension_numbers<[1], [0], [0], [1], [0, 0, 1, 1], [], []>} : vector<2x16xbf16>, vector<16x256xbf16>, vector<2x256xf32> -> vector<2x256xf32>
      %c16_i32_153 = arith.constant 16 : i32
      %260 = tpu.dynamic_rotate %259 by %c16_i32_153 dim 1 : vector<2x256xf32>, i32 -> vector<2x256xf32>
      %cst_154 = arith.constant 1.000000e+00 : f32
      %261 = vector.broadcast %cst_154 : f32 to vector<1x256xf32>
      %262 = arith.cmpf oge, %0, %261 : vector<1x256xf32>
      %263 = arith.extui %262 : vector<1x256xi1> to vector<1x256xi32>
      %264 = arith.sitofp %263 : vector<1x256xi32> to vector<1x256xf32>
      %265 = vector.broadcast %264 : vector<1x256xf32> to vector<2x256xf32>
      %266 = arith.mulf %260, %265 : vector<2x256xf32>
      %267 = arith.addf %256, %266 : vector<2x256xf32>
      %c2_155 = arith.constant 2 : index
      %c0_156 = arith.constant 0 : index
      %c0_157 = arith.constant 0 : index
      %268 = vector.load %arg10[%c2_155, %c0_156, %c0_157] : memref<9x2x16xbf16, #tpu.memory_space<vmem>>, vector<1x2x16xbf16>
      %269 = vector.shape_cast %268 : vector<1x2x16xbf16> to vector<2x16xbf16>
      %cst_158 = arith.constant dense<0.000000e+00> : vector<2x256xf32>
      %270 = tpu.matmul %269, %243, %cst_158 {dimension_numbers = #tpu.dot_dimension_numbers<[1], [0], [0], [1], [0, 0, 1, 1], [], []>} : vector<2x16xbf16>, vector<16x256xbf16>, vector<2x256xf32> -> vector<2x256xf32>
      %c15_i32_159 = arith.constant 15 : i32
      %271 = tpu.dynamic_rotate %270 by %c15_i32_159 dim 1 : vector<2x256xf32>, i32 -> vector<2x256xf32>
      %cst_160 = arith.constant 1.000000e+00 : f32
      %272 = vector.broadcast %cst_160 : f32 to vector<1x256xf32>
      %273 = arith.cmpf oge, %0, %272 : vector<1x256xf32>
      %cst_161 = arith.constant 1.500000e+01 : f32
      %274 = vector.broadcast %cst_161 : f32 to vector<1x256xf32>
      %275 = arith.cmpf olt, %1, %274 : vector<1x256xf32>
      %276 = arith.andi %273, %275 : vector<1x256xi1>
      %277 = arith.extui %276 : vector<1x256xi1> to vector<1x256xi32>
      %278 = arith.sitofp %277 : vector<1x256xi32> to vector<1x256xf32>
      %279 = vector.broadcast %278 : vector<1x256xf32> to vector<2x256xf32>
      %280 = arith.mulf %271, %279 : vector<2x256xf32>
      %281 = arith.addf %267, %280 : vector<2x256xf32>
      %c3_162 = arith.constant 3 : index
      %c0_163 = arith.constant 0 : index
      %c0_164 = arith.constant 0 : index
      %282 = vector.load %arg10[%c3_162, %c0_163, %c0_164] : memref<9x2x16xbf16, #tpu.memory_space<vmem>>, vector<1x2x16xbf16>
      %283 = vector.shape_cast %282 : vector<1x2x16xbf16> to vector<2x16xbf16>
      %cst_165 = arith.constant dense<0.000000e+00> : vector<2x256xf32>
      %284 = tpu.matmul %283, %243, %cst_165 {dimension_numbers = #tpu.dot_dimension_numbers<[1], [0], [0], [1], [0, 0, 1, 1], [], []>} : vector<2x16xbf16>, vector<16x256xbf16>, vector<2x256xf32> -> vector<2x256xf32>
      %c1_i32_166 = arith.constant 1 : i32
      %285 = tpu.dynamic_rotate %284 by %c1_i32_166 dim 1 : vector<2x256xf32>, i32 -> vector<2x256xf32>
      %cst_167 = arith.constant 1.000000e+00 : f32
      %286 = vector.broadcast %cst_167 : f32 to vector<1x256xf32>
      %287 = arith.cmpf oge, %1, %286 : vector<1x256xf32>
      %288 = arith.extui %287 : vector<1x256xi1> to vector<1x256xi32>
      %289 = arith.sitofp %288 : vector<1x256xi32> to vector<1x256xf32>
      %290 = vector.broadcast %289 : vector<1x256xf32> to vector<2x256xf32>
      %291 = arith.mulf %285, %290 : vector<2x256xf32>
      %c4_168 = arith.constant 4 : index
      %c0_169 = arith.constant 0 : index
      %c0_170 = arith.constant 0 : index
      %292 = vector.load %arg10[%c4_168, %c0_169, %c0_170] : memref<9x2x16xbf16, #tpu.memory_space<vmem>>, vector<1x2x16xbf16>
      %293 = vector.shape_cast %292 : vector<1x2x16xbf16> to vector<2x16xbf16>
      %cst_171 = arith.constant dense<0.000000e+00> : vector<2x256xf32>
      %294 = tpu.matmul %293, %243, %cst_171 {dimension_numbers = #tpu.dot_dimension_numbers<[1], [0], [0], [1], [0, 0, 1, 1], [], []>} : vector<2x16xbf16>, vector<16x256xbf16>, vector<2x256xf32> -> vector<2x256xf32>
      %295 = arith.addf %291, %294 : vector<2x256xf32>
      %c5_172 = arith.constant 5 : index
      %c0_173 = arith.constant 0 : index
      %c0_174 = arith.constant 0 : index
      %296 = vector.load %arg10[%c5_172, %c0_173, %c0_174] : memref<9x2x16xbf16, #tpu.memory_space<vmem>>, vector<1x2x16xbf16>
      %297 = vector.shape_cast %296 : vector<1x2x16xbf16> to vector<2x16xbf16>
      %cst_175 = arith.constant dense<0.000000e+00> : vector<2x256xf32>
      %298 = tpu.matmul %297, %243, %cst_175 {dimension_numbers = #tpu.dot_dimension_numbers<[1], [0], [0], [1], [0, 0, 1, 1], [], []>} : vector<2x16xbf16>, vector<16x256xbf16>, vector<2x256xf32> -> vector<2x256xf32>
      %c255_i32_176 = arith.constant 255 : i32
      %299 = tpu.dynamic_rotate %298 by %c255_i32_176 dim 1 : vector<2x256xf32>, i32 -> vector<2x256xf32>
      %cst_177 = arith.constant 1.500000e+01 : f32
      %300 = vector.broadcast %cst_177 : f32 to vector<1x256xf32>
      %301 = arith.cmpf olt, %1, %300 : vector<1x256xf32>
      %302 = arith.extui %301 : vector<1x256xi1> to vector<1x256xi32>
      %303 = arith.sitofp %302 : vector<1x256xi32> to vector<1x256xf32>
      %304 = vector.broadcast %303 : vector<1x256xf32> to vector<2x256xf32>
      %305 = arith.mulf %299, %304 : vector<2x256xf32>
      %306 = arith.addf %295, %305 : vector<2x256xf32>
      %307 = arith.addf %281, %306 : vector<2x256xf32>
      %c6_178 = arith.constant 6 : index
      %c0_179 = arith.constant 0 : index
      %c0_180 = arith.constant 0 : index
      %308 = vector.load %arg10[%c6_178, %c0_179, %c0_180] : memref<9x2x16xbf16, #tpu.memory_space<vmem>>, vector<1x2x16xbf16>
      %309 = vector.shape_cast %308 : vector<1x2x16xbf16> to vector<2x16xbf16>
      %cst_181 = arith.constant dense<0.000000e+00> : vector<2x256xf32>
      %310 = tpu.matmul %309, %243, %cst_181 {dimension_numbers = #tpu.dot_dimension_numbers<[1], [0], [0], [1], [0, 0, 1, 1], [], []>} : vector<2x16xbf16>, vector<16x256xbf16>, vector<2x256xf32> -> vector<2x256xf32>
      %c241_i32_182 = arith.constant 241 : i32
      %311 = tpu.dynamic_rotate %310 by %c241_i32_182 dim 1 : vector<2x256xf32>, i32 -> vector<2x256xf32>
      %cst_183 = arith.constant 1.500000e+01 : f32
      %312 = vector.broadcast %cst_183 : f32 to vector<1x256xf32>
      %313 = arith.cmpf olt, %0, %312 : vector<1x256xf32>
      %cst_184 = arith.constant 1.000000e+00 : f32
      %314 = vector.broadcast %cst_184 : f32 to vector<1x256xf32>
      %315 = arith.cmpf oge, %1, %314 : vector<1x256xf32>
      %316 = arith.andi %313, %315 : vector<1x256xi1>
      %317 = arith.extui %316 : vector<1x256xi1> to vector<1x256xi32>
      %318 = arith.sitofp %317 : vector<1x256xi32> to vector<1x256xf32>
      %319 = vector.broadcast %318 : vector<1x256xf32> to vector<2x256xf32>
      %320 = arith.mulf %311, %319 : vector<2x256xf32>
      %c7_185 = arith.constant 7 : index
      %c0_186 = arith.constant 0 : index
      %c0_187 = arith.constant 0 : index
      %321 = vector.load %arg10[%c7_185, %c0_186, %c0_187] : memref<9x2x16xbf16, #tpu.memory_space<vmem>>, vector<1x2x16xbf16>
      %322 = vector.shape_cast %321 : vector<1x2x16xbf16> to vector<2x16xbf16>
      %cst_188 = arith.constant dense<0.000000e+00> : vector<2x256xf32>
      %323 = tpu.matmul %322, %243, %cst_188 {dimension_numbers = #tpu.dot_dimension_numbers<[1], [0], [0], [1], [0, 0, 1, 1], [], []>} : vector<2x16xbf16>, vector<16x256xbf16>, vector<2x256xf32> -> vector<2x256xf32>
      %c240_i32_189 = arith.constant 240 : i32
      %324 = tpu.dynamic_rotate %323 by %c240_i32_189 dim 1 : vector<2x256xf32>, i32 -> vector<2x256xf32>
      %cst_190 = arith.constant 1.500000e+01 : f32
      %325 = vector.broadcast %cst_190 : f32 to vector<1x256xf32>
      %326 = arith.cmpf olt, %0, %325 : vector<1x256xf32>
      %327 = arith.extui %326 : vector<1x256xi1> to vector<1x256xi32>
      %328 = arith.sitofp %327 : vector<1x256xi32> to vector<1x256xf32>
      %329 = vector.broadcast %328 : vector<1x256xf32> to vector<2x256xf32>
      %330 = arith.mulf %324, %329 : vector<2x256xf32>
      %331 = arith.addf %320, %330 : vector<2x256xf32>
      %c8_191 = arith.constant 8 : index
      %c0_192 = arith.constant 0 : index
      %c0_193 = arith.constant 0 : index
      %332 = vector.load %arg10[%c8_191, %c0_192, %c0_193] : memref<9x2x16xbf16, #tpu.memory_space<vmem>>, vector<1x2x16xbf16>
      %333 = vector.shape_cast %332 : vector<1x2x16xbf16> to vector<2x16xbf16>
      %cst_194 = arith.constant dense<0.000000e+00> : vector<2x256xf32>
      %334 = tpu.matmul %333, %243, %cst_194 {dimension_numbers = #tpu.dot_dimension_numbers<[1], [0], [0], [1], [0, 0, 1, 1], [], []>} : vector<2x16xbf16>, vector<16x256xbf16>, vector<2x256xf32> -> vector<2x256xf32>
      %c239_i32_195 = arith.constant 239 : i32
      %335 = tpu.dynamic_rotate %334 by %c239_i32_195 dim 1 : vector<2x256xf32>, i32 -> vector<2x256xf32>
      %cst_196 = arith.constant 1.500000e+01 : f32
      %336 = vector.broadcast %cst_196 : f32 to vector<1x256xf32>
      %337 = arith.cmpf olt, %0, %336 : vector<1x256xf32>
      %cst_197 = arith.constant 1.500000e+01 : f32
      %338 = vector.broadcast %cst_197 : f32 to vector<1x256xf32>
      %339 = arith.cmpf olt, %1, %338 : vector<1x256xf32>
      %340 = arith.andi %337, %339 : vector<1x256xi1>
      %341 = arith.extui %340 : vector<1x256xi1> to vector<1x256xi32>
      %342 = arith.sitofp %341 : vector<1x256xi32> to vector<1x256xf32>
      %343 = vector.broadcast %342 : vector<1x256xf32> to vector<2x256xf32>
      %344 = arith.mulf %335, %343 : vector<2x256xf32>
      %345 = arith.addf %331, %344 : vector<2x256xf32>
      %346 = arith.addf %307, %345 : vector<2x256xf32>
      %c0_198 = arith.constant 0 : index
      %c0_199 = arith.constant 0 : index
      %347 = vector.load %arg11[%c0_198, %c0_199] : memref<2x1xf32, #tpu.memory_space<vmem>>, vector<2x1xf32>
      %348 = vector.broadcast %347 : vector<2x1xf32> to vector<2x256xf32>
      %349 = arith.addf %346, %348 : vector<2x256xf32>
      %c0_200 = arith.constant 0 : index
      %c0_201 = arith.constant 0 : index
      %c0_202 = arith.constant 0 : index
      %350 = vector.load %arg12[%c0_200, %c0_201, %c0_202] : memref<1x2x256xf32, #tpu.memory_space<vmem>>, vector<1x2x256xf32>
      %351 = vector.shape_cast %350 : vector<1x2x256xf32> to vector<2x256xf32>
      %352 = vector.shape_cast %349 : vector<2x256xf32> to vector<1x2x256xf32>
      tpu.vector_store %arg12[%c0_200, %c0_201, %c0_202], %352 {strides = array<i32>} : memref<1x2x256xf32, #tpu.memory_space<vmem>>, vector<1x2x256xf32>,
    } else {
    }
    return
  }
  func.func @transform_0(%arg0: i32, %arg1: i32) -> (i32, i32, i32) {
    %c0_i32 = arith.constant 0 : i32
    %c0_i32_0 = arith.constant 0 : i32
    return %arg0, %arg1, %c0_i32 : i32, i32, i32
  }
  func.func @transform_1(%arg0: i32, %arg1: i32) -> (i32, i32, i32) {
    %c0_i32 = arith.constant 0 : i32
    %c0_i32_0 = arith.constant 0 : i32
    %c0_i32_1 = arith.constant 0 : i32
    return %arg0, %c0_i32, %c0_i32_0 : i32, i32, i32
  }
  func.func @transform_2(%arg0: i32, %arg1: i32) -> (i32, i32) {
    %c0_i32 = arith.constant 0 : i32
    %c0_i32_0 = arith.constant 0 : i32
    %c0_i32_1 = arith.constant 0 : i32
    return %c0_i32, %c0_i32_0 : i32, i32
  }
  func.func @transform_3(%arg0: i32, %arg1: i32) -> (i32, i32) {
    %c0_i32 = arith.constant 0 : i32
    %c0_i32_0 = arith.constant 0 : i32
    %c0_i32_1 = arith.constant 0 : i32
    return %c0_i32, %c0_i32_0 : i32, i32
  }
  func.func @transform_4(%arg0: i32, %arg1: i32) -> (i32, i32, i32, i32) {
    %c0_i32 = arith.constant 0 : i32
    %c0_i32_0 = arith.constant 0 : i32
    %c0_i32_1 = arith.constant 0 : i32
    return %arg0, %c0_i32, %c0_i32_0, %arg1 : i32, i32, i32, i32
  }
  func.func @transform_5(%arg0: i32, %arg1: i32) -> (i32, i32) {
    %c0_i32 = arith.constant 0 : i32
    %c0_i32_0 = arith.constant 0 : i32
    %c0_i32_1 = arith.constant 0 : i32
    return %c0_i32, %c0_i32_0 : i32, i32
  }
  func.func @transform_6(%arg0: i32, %arg1: i32) -> (i32, i32, i32) {
    %c0_i32 = arith.constant 0 : i32
    %c0_i32_0 = arith.constant 0 : i32
    %c0_i32_1 = arith.constant 0 : i32
    %c0_i32_2 = arith.constant 0 : i32
    return %c0_i32, %c0_i32_0, %c0_i32_1 : i32, i32, i32
  }
  func.func @transform_7(%arg0: i32, %arg1: i32) -> (i32, i32) {
    %c0_i32 = arith.constant 0 : i32
    %c0_i32_0 = arith.constant 0 : i32
    %c0_i32_1 = arith.constant 0 : i32
    return %c0_i32, %c0_i32_0 : i32, i32
  }
  func.func @transform_8(%arg0: i32, %arg1: i32) -> (i32, i32, i32) {
    %c0_i32 = arith.constant 0 : i32
    %c0_i32_0 = arith.constant 0 : i32
    %c0_i32_1 = arith.constant 0 : i32
    %c0_i32_2 = arith.constant 0 : i32
    return %c0_i32, %c0_i32_0, %c0_i32_1 : i32, i32, i32
  }
  func.func @transform_9(%arg0: i32, %arg1: i32) -> (i32, i32) {
    %c0_i32 = arith.constant 0 : i32
    %c0_i32_0 = arith.constant 0 : i32
    %c0_i32_1 = arith.constant 0 : i32
    return %c0_i32, %c0_i32_0 : i32, i32
  }
  func.func @transform_10(%arg0: i32, %arg1: i32) -> (i32, i32, i32) {
    %c0_i32 = arith.constant 0 : i32
    %c0_i32_0 = arith.constant 0 : i32
    %c0_i32_1 = arith.constant 0 : i32
    return %arg0, %c0_i32, %c0_i32_0 : i32, i32, i32
  }
}

</mosaic_0001>

<bundles_post_ra>
// kernel: mask_head.1
= control target key start
LH: loop header
LB: loop body
LE: loop exit
PB: predicated region body
PF: predicated region fallthrough
CT: control target
= control target key end

     0   :  { %s4919_s0 = inlined_call_operand.vmem [shape: bf16[2,256,256], index: 0, kind: input, shape index: {}]   ;;  %s4920_s1 = inlined_call_operand.vmem [shape: bf16[2,1,256], index: 1, kind: input, shape index: {}]   ;;  %s4921_s2 = inlined_call_operand.vmem [shape: f32[1,256], index: 2, kind: input, shape index: {}]   ;;  %s4922_s3 = inlined_call_operand.vmem [shape: f32[1,256], index: 3, kind: input, shape index: {}]   ;;  %s4923_s4 = inlined_call_operand.vmem [shape: bf16[2,9,32,256], index: 4, kind: input, shape index: {}]   ;;  %s4924_s5 = inlined_call_operand.vmem [shape: f32[32,1], index: 5, kind: input, shape index: {}]   ;;  %s4925_s6 = inlined_call_operand.vmem [shape: bf16[9,16,32], index: 6, kind: input, shape index: {}]   ;;  %s4926_s7 = inlined_call_operand.vmem [shape: f32[16,1], index: 7, kind: input, shape index: {}]   ;;  %s4927_s8 = inlined_call_operand.vmem [shape: bf16[9,2,16], index: 8, kind: input, shape index: {}]   ;;  %s4928_s9 = inlined_call_operand.vmem [shape: f32[2,1], index: 9, kind: input, shape index: {}]   ;;  %s4929_s10 = inlined_call_operand.vmem [shape: f32[2,2,256], index: 10, kind: output, shape index: {}]  }
   0x1   :  { %4936 = sst [smem:[#allocation10_spill]] %s4923_s4 }
   0x2   :  { %s3760_s13 = smov 0   ;;  %s3762_s14 = smov 0  }
   0x3   :  { %s3764_s15 = smov 0   ;;  %s3766_s16 = smov 0  }
   0x4   :  { %s3768_s17 = smov 0   ;;  %s3770_s18 = smov 0  }
   0x5   :  { %s3772_s19 = smov 0  }
   0x6 LB: > { %s29_s20 = sadd.s32 1, %s3675_s17  ;;  %s32_s21 = sadd.s32 1, %s3679_s18  ;;  %s3683_s19 = sphi %s3772_s19, %s20_s19   ;;  %s3679_s18 = sphi %s3770_s18, %s4951_s18   ;;  %s3675_s17 = sphi %s3768_s17, %s4950_s17   ;;  %s3671_s16 = sphi %s3766_s16, %s4949_s16   ;;  %s3667_s15 = sphi %s3764_s15, %s4948_s15   ;;  %s3663_s14 = sphi %s3762_s14, %s4947_s14   ;;  %s3659_s13 = sphi %s3760_s13, %s4946_s13  }
   0x7   : > { %p30_p0 = scmp.ge.s32.totalorder %s29_s20, 2  ;;  %p144_p1 = scmp.ne.s32.totalorder %s3663_s14, %s3659_s13 }
   0x8   : > { %p145_p2 = scmp.eq.s32.totalorder %s3683_s19, 0  ;;  %s137_s25 = sadd.s32 1, %s3663_s14 }
   0x9   : > { %s4953_s20 = smov (%p30_p0, %s29_s20), 0  ;;  %s4955_s21 = smov (!%p30_p0, %s32_s21), %s3679_s18 }
   0xa   : > { %4937 = sst [smem:[#allocation6_spill]] %s4953_s20  ;;  %p146_p3 = por %p145_p2, %p144_p1 }
   0xb   : > { %p34_p4 = scmp.ge.s32.totalorder %s4955_s21, 2  ;;  %s133_s22 = ssub.s32 %s3675_s17, %s4953_s20 }
   0xc   : > { %p3337_p6 = scmp.ge.s32.totalorder %s3683_s19, 4 }
   0xd   : > { %s4957_s21 = smov (%p34_p4, %s4955_s21), 0 }
   0xe   : > { %4938 = sst [smem:[#allocation7_spill]] %s4957_s21  ;;  %s132_s23 = ssub.s32 %s3679_s18, %s4957_s21 }
   0xf   : > { %s134_s24 = sor.u32 %s133_s22, %s132_s23  ;;  %322 = sbr.rel (%p3337_p6) target bundleno = 53 (0x35), region = 44 }
  0x10   : > { %p135_p5 = scmp.eq.s32.totalorder %s134_s24, 0 }
  0x12   : > { %s3811_s26 = scalar_select %p135_p5, %s3663_s14, %s137_s25  }
  0x14   : > { %346 = sbr.rel (!%p146_p3) target bundleno = 53 (0x35), region = 56  ;;  %s348_s27 = sand.u32 (%p146_p3), 1, %s3663_s14  }
  0x15   : > { %s3522_s28 = smul.u32 (%p146_p3), 72, %s3679_s18  ;;  %s4939_s4 = sld [smem:[#allocation10_spill]] (%p146_p3) }
  0x16   : > { %s3521_s29 = smul.u32 (%p146_p3), 144, %s348_s27 }
  0x17   : > { %s352_s30 = sadd.s32 (%p146_p3), %s3675_s17, %s3522_s28 }
  0x18   : > { %s3338_s11 = sshll.u32 (%p146_p3), %s352_s30, 2  ;;  %s3825_s23 = scalar_lea.vmem (%p146_p3), [#allocation5], %s3521_s29 }
  0x1b   : > { %s3820_s22 = scalar_lea.vmem %s4939_s4, %s3338_s11 }
  0x1c   : > { %v371_v0 = vld [vmem:[%s3820_s22] sm:$0xf]  ;;  %v373_v1 = vld [vmem:[%s3820_s22 + $0x8] sm:$0xf]  ;;  %v375_v2 = vld [vmem:[%s3820_s22 + $0x10] sm:$0xf] }
  0x1d   : > { %372 = vst [vmem:[%s3825_s23] sm:$0xf] %v371_v0  ;;  %374 = vst [vmem:[%s3825_s23 + $0x4] sm:$0xf] %v373_v1  ;;  %v377_v3 = vld [vmem:[%s3820_s22 + $0x18] sm:$0xf] }
  0x1e   : > { %376 = vst [vmem:[%s3825_s23 + $0x8] sm:$0xf] %v375_v2  ;;  %v379_v4 = vld [vmem:[%s3820_s22 + $0x20] sm:$0xf]  ;;  %v381_v5 = vld [vmem:[%s3820_s22 + $0x28] sm:$0xf] }
  0x1f   : > { %378 = vst [vmem:[%s3825_s23 + $0xc] sm:$0xf] %v377_v3  ;;  %380 = vst [vmem:[%s3825_s23 + $0x10] sm:$0xf] %v379_v4  ;;  %v383_v6 = vld [vmem:[%s3820_s22 + $0x30] sm:$0xf] }
  0x20   : > { %382 = vst [vmem:[%s3825_s23 + $0x14] sm:$0xf] %v381_v5  ;;  %v385_v7 = vld [vmem:[%s3820_s22 + $0x38] sm:$0xf]  ;;  %v387_v8 = vld [vmem:[%s3820_s22 + $0x40] sm:$0xf] }
  0x21   : > { %384 = vst [vmem:[%s3825_s23 + $0x18] sm:$0xf] %v383_v6  ;;  %386 = vst [vmem:[%s3825_s23 + $0x1c] sm:$0xf] %v385_v7  ;;  %v389_v9 = vld [vmem:[%s3820_s22 + $0x48] sm:$0xf] }
  0x22   : > { %388 = vst [vmem:[%s3825_s23 + $0x20] sm:$0xf] %v387_v8  ;;  %v391_v10 = vld [vmem:[%s3820_s22 + $0x50] sm:$0xf]  ;;  %v393_v11 = vld [vmem:[%s3820_s22 + $0x58] sm:$0xf] }
  0x23   : > { %390 = vst [vmem:[%s3825_s23 + $0x24] sm:$0xf] %v389_v9  ;;  %392 = vst [vmem:[%s3825_s23 + $0x28] sm:$0xf] %v391_v10  ;;  %v395_v12 = vld [vmem:[%s3820_s22 + $0x60] sm:$0xf] }
  0x24   : > { %394 = vst [vmem:[%s3825_s23 + $0x2c] sm:$0xf] %v393_v11  ;;  %v397_v13 = vld [vmem:[%s3820_s22 + $0x68] sm:$0xf]  ;;  %v399_v14 = vld [vmem:[%s3820_s22 + $0x70] sm:$0xf] }
  0x25   : > { %396 = vst [vmem:[%s3825_s23 + $0x30] sm:$0xf] %v395_v12  ;;  %398 = vst [vmem:[%s3825_s23 + $0x34] sm:$0xf] %v397_v13  ;;  %v401_v15 = vld [vmem:[%s3820_s22 + $0x78] sm:$0xf] }
  0x26   : > { %400 = vst [vmem:[%s3825_s23 + $0x38] sm:$0xf] %v399_v14  ;;  %v403_v16 = vld [vmem:[%s3820_s22 + $0x80] sm:$0xf]  ;;  %v405_v17 = vld [vmem:[%s3820_s22 + $0x88] sm:$0xf] }
  0x27   : > { %402 = vst [vmem:[%s3825_s23 + $0x3c] sm:$0xf] %v401_v15  ;;  %404 = vst [vmem:[%s3825_s23 + $0x40] sm:$0xf] %v403_v16  ;;  %v407_v18 = vld [vmem:[%s3820_s22 + $0x90] sm:$0xf] }
  0x28   : > { %406 = vst [vmem:[%s3825_s23 + $0x44] sm:$0xf] %v405_v17  ;;  %v409_v19 = vld [vmem:[%s3820_s22 + $0x98] sm:$0xf]  ;;  %v411_v20 = vld [vmem:[%s3820_s22 + $0xa0] sm:$0xf] }
  0x29   : > { %408 = vst [vmem:[%s3825_s23 + $0x48] sm:$0xf] %v407_v18  ;;  %410 = vst [vmem:[%s3825_s23 + $0x4c] sm:$0xf] %v409_v19  ;;  %v413_v21 = vld [vmem:[%s3820_s22 + $0xa8] sm:$0xf] }
  0x2a   : > { %412 = vst [vmem:[%s3825_s23 + $0x50] sm:$0xf] %v411_v20  ;;  %v415_v22 = vld [vmem:[%s3820_s22 + $0xb0] sm:$0xf]  ;;  %v417_v23 = vld [vmem:[%s3820_s22 + $0xb8] sm:$0xf] }
  0x2b   : > { %414 = vst [vmem:[%s3825_s23 + $0x54] sm:$0xf] %v413_v21  ;;  %416 = vst [vmem:[%s3825_s23 + $0x58] sm:$0xf] %v415_v22  ;;  %v419_v24 = vld [vmem:[%s3820_s22 + $0xc0] sm:$0xf] }
  0x2c   : > { %418 = vst [vmem:[%s3825_s23 + $0x5c] sm:$0xf] %v417_v23  ;;  %v421_v25 = vld [vmem:[%s3820_s22 + $0xc8] sm:$0xf]  ;;  %v423_v26 = vld [vmem:[%s3820_s22 + $0xd0] sm:$0xf] }
  0x2d   : > { %420 = vst [vmem:[%s3825_s23 + $0x60] sm:$0xf] %v419_v24  ;;  %422 = vst [vmem:[%s3825_s23 + $0x64] sm:$0xf] %v421_v25  ;;  %v425_v27 = vld [vmem:[%s3820_s22 + $0xd8] sm:$0xf] }
  0x2e   : > { %424 = vst [vmem:[%s3825_s23 + $0x68] sm:$0xf] %v423_v26  ;;  %v427_v28 = vld [vmem:[%s3820_s22 + $0xe0] sm:$0xf]  ;;  %v429_v29 = vld [vmem:[%s3820_s22 + $0xe8] sm:$0xf] }
  0x2f   : > { %426 = vst [vmem:[%s3825_s23 + $0x6c] sm:$0xf] %v425_v27  ;;  %428 = vst [vmem:[%s3825_s23 + $0x70] sm:$0xf] %v427_v28  ;;  %v431_v30 = vld [vmem:[%s3820_s22 + $0xf0] sm:$0xf] }
  0x30   : > { %430 = vst [vmem:[%s3825_s23 + $0x74] sm:$0xf] %v429_v29  ;;  %v433_v31 = vld [vmem:[%s3820_s22 + $0xf8] sm:$0xf]  ;;  %v435_v32 = vld [vmem:[%s3820_s22 + $0x100] sm:$0xf] }
  0x31   : > { %432 = vst [vmem:[%s3825_s23 + $0x78] sm:$0xf] %v431_v30  ;;  %434 = vst [vmem:[%s3825_s23 + $0x7c] sm:$0xf] %v433_v31  ;;  %v437_v33 = vld [vmem:[%s3820_s22 + $0x108] sm:$0xf] }
  0x32   : > { %436 = vst [vmem:[%s3825_s23 + $0x80] sm:$0xf] %v435_v32  ;;  %v439_v34 = vld [vmem:[%s3820_s22 + $0x110] sm:$0xf]  ;;  %v441_v35 = vld [vmem:[%s3820_s22 + $0x118] sm:$0xf] }
  0x33   : > { %438 = vst [vmem:[%s3825_s23 + $0x84] sm:$0xf] %v437_v33  ;;  %440 = vst [vmem:[%s3825_s23 + $0x88] sm:$0xf] %v439_v34 }
  0x34   : > { %442 = vst [vmem:[%s3825_s23 + $0x8c] sm:$0xf] %v441_v35 }
  0x35 PF: > { %p3339_p7 = scmp.ge.s32.totalorder %s3683_s19, 1  ;;  %p537_p8 = scmp.lt.s32.totalorder %s3683_s19, 5 }
  0x37   : > { %p538_p9 = pnand %p3339_p7, %p537_p8 }
  0x39   : > { %541 = sbr.rel (%p538_p9) target bundleno = 1842 (0x732), region = 97 }
  0x3e   : > { %s3340_s20 = sshll.u32 %s3667_s15, 4  ;;  %p596_p10 = scmp.lt.s32.totalorder %s3671_s16, 1  ;;  %v647_v36 = vlaneseq  ;;  %v3685_v37 = vmov 1966171168   ;;  %v3686_v39 = vmov 0  }
  0x3f   : > { %p598_p11 = scmp.lt.s32.totalorder %s3340_s20, 31  ;;  %v645_v38 = vunpack.c.l.s4 %v3685_v37  ;;  %822 = vmatprep.mubr.bf16.mxu0 %v3686_v39  ;;  %943 = vmatprep.mubr.bf16.mxu1 %v3686_v39  ;;  %s544_s24 = sand.u32 1, %s3659_s13  }
  0x40   : > { %s4959_s16 = smov (!%p596_p10, %s3671_s16), 1  ;;  %v3905_v40 = vshrl.u32 %v647_v36, 7  ;;  %p3382_p12 = scmp.ne.s32.totalorder %s3667_s15, 0 }
  0x41   : > { %s4961_s20 = smov (!%p598_p11, %s3340_s20), 31  ;;  %v646_v41 = vunpack.c.0.s8 %v645_v38  ;;  %s3342_s25 = sshll.u32 %s4959_s16, 6 }
  0x42   : > { %s3344_s27 = sshll.u32 %s4959_s16, 1  ;;  %s3341_s28 = sshll.u32 %s4961_s20, 1  ;;  %v3917_v46 = vsub.s32 0, %v3905_v40 }
  0x43   : > { %s609_s11 = scalar_lea.vmem %s4920_s1, %s3344_s27  ;;  %v649_v42 = vsub.s32 %v646_v41, %v3905_v40  ;;  %s602_s12 = sadd.s32 %s3342_s25, %s3341_s28 }
  0x44   : > { %s3492_s22 = sshll.u32 %s4959_s16, 2  ;;  %v3347_v43 = vld.sshfl [vmem:[%s609_s11] sm:$0x11 pattern:$0x75316420]  ;;  %s3343_s23 = sshll.u32 %s602_s12, 2 }
  0x45   : > { %s3914_s21 = scalar_lea.vmem %s4929_s10, %s3492_s22  ;;  %v643_v44 = vcombine.high %v3347_v43, %v3347_v43  ;;  %v650_v45 = vrot.slane %v3347_v43, %v649_v42  ;;  %s3523_s20 = smul.u32 144, %s544_s24 }
  0x46   : > { %s3922_s25 = scalar_lea.vmem %s4919_s0, %s3343_s23  ;;  %s3687_s16 = smov 17  }
  0x47   : > { %v657_v47 = vrot.slane %v643_v44, %v649_v42  ;;  %v659_v48 = vpack.i.b16 %v650_v45, %v650_v45  ;;  %v632_v51 = vld [vmem:[%s3922_s25 + $0x70] sm:$0xff]  ;;  %v633_v52 = vld [vmem:[%s3922_s25 + $0x78] sm:$0xff]  ;;  %v630_v54 = vld [vmem:[%s3922_s25 + $0x60] sm:$0xff]  ;;  %s3930_s4 = scalar_lea.vmem [#allocation5], %s3523_s20  ;;  %s3688_s24 = smov 16  }
  0x48   : > { %v631_v55 = vld [vmem:[%s3922_s25 + $0x68] sm:$0xff]  ;;  %v628_v57 = vld [vmem:[%s3922_s25 + $0x50] sm:$0xff]  ;;  %v629_v58 = vld [vmem:[%s3922_s25 + $0x58] sm:$0xff]  ;;  %s3689_s28 = smov 15  }
  0x49   : > { %v664_v49 = vrot.slane %v659_v48, %v3917_v46  ;;  %v666_v50 = vpack.i.b16 %v657_v47, %v657_v47  ;;  %v626_v4 = vld [vmem:[%s3922_s25 + $0x40] sm:$0xff]  ;;  %v627_v5 = vld [vmem:[%s3922_s25 + $0x48] sm:$0xff]  ;;  %v624_v10 = vld [vmem:[%s3922_s25 + $0x30] sm:$0xff] }
  0x4a   : > { %v625_v11 = vld [vmem:[%s3922_s25 + $0x38] sm:$0xff]  ;;  %v622_v16 = vld [vmem:[%s3922_s25 + $0x20] sm:$0xff]  ;;  %v623_v17 = vld [vmem:[%s3922_s25 + $0x28] sm:$0xff] }
  0x4b   : > { %v671_v53 = vrot.slane %v666_v50, %v3917_v46  ;;  %v620_v22 = vld [vmem:[%s3922_s25 + $0x10] sm:$0xff]  ;;  %v621_v23 = vld [vmem:[%s3922_s25 + $0x18] sm:$0xff]  ;;  %v618_v28 = vld [vmem:[%s3922_s25] sm:$0xff] }
  0x4c   : > { %v619_v29 = vld [vmem:[%s3922_s25 + $0x8] sm:$0xff]  ;;  %v3600_v38 = vld [vmem:[%s3930_s4] sm:$0xff]   ;;  %v3601_v41 = vld [vmem:[%s3930_s4 + $0x10] sm:$0xff]  }
  0x4d   : > { %v3932_v56 = vcombine.low %v664_v49, %v671_v53  ;;  %v3602_v42 = vld [vmem:[%s3930_s4 + $0x8] sm:$0xff]   ;;  %v3603_v43 = vld [vmem:[%s3930_s4 + $0x18] sm:$0xff]   ;;  %v3604_v44 = vld [vmem:[%s3930_s4 + $0x20] sm:$0xff]  }
  0x4e   : > { %v3605_v45 = vld [vmem:[%s3930_s4 + $0x28] sm:$0xff]  }
  0x4f   : > { %v692_v59 = vadd.bf16 %v3932_v56, %v632_v51  ;;  %v693_v60 = vadd.bf16 %v3932_v56, %v633_v52  ;;  %v690_v61 = vadd.bf16 %v3932_v56, %v630_v54  ;;  %v691_v62 = vadd.bf16 %v3932_v56, %v631_v55 }
  0x50   : > { %v688_v63 = vadd.bf16 %v3932_v56, %v628_v57  ;;  %v689_v3 = vadd.bf16 %v3932_v56, %v629_v58  ;;  %v686_v8 = vadd.bf16 %v3932_v56, %v626_v4  ;;  %v687_v9 = vadd.bf16 %v3932_v56, %v627_v5 }
  0x51   : > { %v3941_v0 = vcombine.high %v692_v59, %v693_v60  ;;  %v3943_v1 = vcombine.low %v692_v59, %v693_v60  ;;  %v3945_v2 = vcombine.high %v690_v61, %v691_v62  ;;  %v3954_v6 = vcombine.low %v690_v61, %v691_v62 }
  0x52   : > { %v3958_v7 = vcombine.high %v688_v63, %v689_v3  ;;  %v3966_v12 = vcombine.low %v688_v63, %v689_v3  ;;  %v3970_v13 = vcombine.high %v686_v8, %v687_v9  ;;  %v684_v14 = vadd.bf16 %v3932_v56, %v624_v10 }
  0x53   : > { %790 = vmatprep.subr.bf16.mxu0 %v3941_v0  ;;  %911 = vmatprep.subr.bf16.mxu1 %v3941_v0  ;;  %v685_v15 = vadd.bf16 %v3932_v56, %v625_v11  ;;  %v3978_v18 = vcombine.low %v686_v8, %v687_v9  ;;  %v682_v20 = vadd.bf16 %v3932_v56, %v622_v16 }
  0x54   : > { %791 = vmatpush1.bf16.msra.mxu0 %v3943_v1  ;;  %912 = vmatpush1.bf16.msra.mxu1 %v3943_v1  ;;  %v683_v21 = vadd.bf16 %v3932_v56, %v623_v17  ;;  %v680_v26 = vadd.bf16 %v3932_v56, %v620_v22  ;;  %v681_v27 = vadd.bf16 %v3932_v56, %v621_v23 }
  0x55   : > { %792 = vmatprep.subr.bf16.mxu0 %v3945_v2  ;;  %913 = vmatprep.subr.bf16.mxu1 %v3945_v2  ;;  %v3982_v19 = vcombine.high %v684_v14, %v685_v15  ;;  %v3990_v24 = vcombine.low %v684_v14, %v685_v15  ;;  %v678_v32 = vadd.bf16 %v3932_v56, %v618_v28  ;;  %v4060_v28 = vld [vmem:[%s4922_s3] sm:$0x3] }
  0x56   : > { %v3994_v25 = vcombine.high %v682_v20, %v683_v21  ;;  %v4002_v30 = vcombine.low %v682_v20, %v683_v21  ;;  %v4006_v31 = vcombine.high %v680_v26, %v681_v27  ;;  %v679_v33 = vadd.bf16 %v3932_v56, %v619_v29 }
  0x57   : > { %v4012_v34 = vcombine.low %v680_v26, %v681_v27  ;;  %v4055_v27 = vld [vmem:[%s4921_s2] sm:$0x3]  ;;  %vm871_vm1 = vcmp.ge.f32.partialorder %v4060_v28, 1.0  ;;  %vm1113_vm3 = vcmp.lt.f32.partialorder %v4060_v28, 15.0 }
  0x58   : > { %793 = vmatpush1.bf16.msra.mxu0 %v3954_v6  ;;  %914 = vmatpush1.bf16.msra.mxu1 %v3954_v6  ;;  %v4016_v35 = vcombine.high %v678_v32, %v679_v33  ;;  %v4020_v37 = vcombine.low %v678_v32, %v679_v33  ;;  %vm870_vm0 = vcmp.ge.f32.partialorder %v4055_v27, 1.0  ;;  %v4067_v33 = vand.u32 127, %v647_v36 }
  0x59   : > { %794 = vmatprep.subr.bf16.mxu0 %v3958_v7  ;;  %915 = vmatprep.subr.bf16.mxu1 %v3958_v7  ;;  %vm872_vm2 = vmand %vm870_vm0, %vm871_vm1 }
  0x5a   : > { %vm980_vm4 = vcmp.lt.s32.totalorder %v4067_v33, 16  ;;  %vm1114_vm5 = vmand %vm870_vm0, %vm1113_vm3  ;;  %vm861_vm6 = vcmp.lt.s32.totalorder %v4067_v33, 17  ;;  %vm1104_vm7 = vcmp.lt.s32.totalorder %v4067_v33, 15 }
  0x5c   : > { %795 = vmatpush1.bf16.msra.mxu0 %v3966_v12  ;;  %916 = vmatpush1.bf16.msra.mxu1 %v3966_v12 }
  0x5d   : > { %796 = vmatprep.subr.bf16.mxu0 %v3970_v13  ;;  %917 = vmatprep.subr.bf16.mxu1 %v3970_v13 }
  0x60   : > { %797 = vmatpush1.bf16.msra.mxu0 %v3978_v18  ;;  %918 = vmatpush1.bf16.msra.mxu1 %v3978_v18 }
  0x61   : > { %798 = vmatprep.subr.bf16.mxu0 %v3982_v19  ;;  %919 = vmatprep.subr.bf16.mxu1 %v3982_v19 }
  0x64   : > { %799 = vmatpush1.bf16.msra.mxu0 %v3990_v24  ;;  %920 = vmatpush1.bf16.msra.mxu1 %v3990_v24 }
  0x65   : > { %800 = vmatprep.subr.bf16.mxu0 %v3994_v25  ;;  %921 = vmatprep.subr.bf16.mxu1 %v3994_v25 }
  0x68   : > { %801 = vmatpush1.bf16.msra.mxu0 %v4002_v30  ;;  %922 = vmatpush1.bf16.msra.mxu1 %v4002_v30 }
  0x69   : > { %802 = vmatprep.subr.bf16.mxu0 %v4006_v31  ;;  %923 = vmatprep.subr.bf16.mxu1 %v4006_v31 }
  0x6c   : > { %803 = vmatpush1.bf16.msra.mxu0 %v4012_v34  ;;  %924 = vmatpush1.bf16.msra.mxu1 %v4012_v34 }
  0x6d   : > { %804 = vmatprep.subr.bf16.mxu0 %v4016_v35  ;;  %925 = vmatprep.subr.bf16.mxu1 %v4016_v35 }
  0x70   : > { %805 = vmatpush1.bf16.msra.mxu0 %v4020_v37  ;;  %926 = vmatpush1.bf16.msra.mxu1 %v4020_v37 }
  0x71   : > { %1035 = vmatprep.subr.bf16.mxu0 %v3941_v0 }
  0x73   : > { %823 = vmatmul.mubr.bf16.vlgmr.msra.gmra.mxu0 %v3600_v38  ;;  %944 = vmatmul.mubr.bf16.vlgmr.msra.gmra.mxu1 %v3601_v41 }
  0x74   : > { %1036 = vmatpush1.bf16.msra.mxu0 %v3943_v1  ;;  %832 = vmatprep.mubr.bf16.mxu0 %v3686_v39 }
  0x75   : > { %1037 = vmatprep.subr.bf16.mxu0 %v3945_v2  ;;  %953 = vmatprep.mubr.bf16.mxu1 %v3686_v39 }
  0x78   : > { %1038 = vmatpush1.bf16.msra.mxu0 %v3954_v6 }
  0x79   : > { %1039 = vmatprep.subr.bf16.mxu0 %v3958_v7 }
  0x7b   : > { %833 = vmatmul.mubr.bf16.gmra.mxu0 %v3602_v42  ;;  %954 = vmatmul.mubr.bf16.gmra.mxu1 %v3603_v43  ;;  %v3690_v42 = vmov 0.0  }
  0x7c   : > { %1040 = vmatpush1.bf16.msra.mxu0 %v3966_v12  ;;  %1067 = vmatprep.mubr.bf16.mxu0 %v3686_v39  ;;  %v3374_v43 = vsel %vm870_vm0, 1.0, %v3690_v42 }
  0x7d   : > { %1041 = vmatprep.subr.bf16.mxu0 %v3970_v13  ;;  %v4084_v36 = vrot.slane %v3374_v43, %v3917_v46 }
  0x80   : > { %1042 = vmatpush1.bf16.msra.mxu0 %v3978_v18 }
  0x81   : > { %1043 = vmatprep.subr.bf16.mxu0 %v3982_v19 }
  0x84   : > { %1044 = vmatpush1.bf16.msra.mxu0 %v3990_v24 }
  0x85   : > { %1045 = vmatprep.subr.bf16.mxu0 %v3994_v25 }
  0x88   : > { %1046 = vmatpush1.bf16.msra.mxu0 %v4002_v30 }
  0x89   : > { %1047 = vmatprep.subr.bf16.mxu0 %v4006_v31 }
  0x8c   : > { %1048 = vmatpush1.bf16.msra.mxu0 %v4012_v34 }
  0x8d   : > { %1049 = vmatprep.subr.bf16.mxu0 %v4016_v35 }
  0x90   : > { %1050 = vmatpush1.bf16.msra.mxu0 %v4020_v37 }
  0x93   : > { %1068 = vmatmul.mubr.bf16.vlgmr.msra.gmra.mxu0 %v3604_v44  ;;  %v4076_v44 = vsub.s32 1, %v3905_v40 }
  0x94   : > { %1077 = vmatprep.mubr.bf16.mxu0 %v3686_v39 }
  0x9b   : > { %1078 = vmatmul.mubr.bf16.gmra.mxu0 %v3605_v45  ;;  %v3367_v45 = vsel %vm872_vm2, 1.0, %v3690_v42 }
 0x133   : > { %v824_v47 = vpop.f32.mrf.mxu0  ;;  %v945_v48 = vpop.f32.mrf.mxu1 }
 0x134   : > { %843 = vrot.lane.b32.xlu0 %v824_v47, %s3687_s16  ;;  %v4087_v47 = vrot.slane %v3374_v43, %v4076_v44 }
 0x135   : > { %v826_v49 = vpop.f32.mrf.mxu0  ;;  %v947_v50 = vpop.f32.mrf.mxu1 }
 0x137   : > { %v828_v51 = vpop.f32.mrf.mxu0  ;;  %v949_v52 = vpop.f32.mrf.mxu1 }
 0x138   : > { %966 = vrot.lane.b32.xlu1 %v949_v52, %s3688_s24  ;;  %964 = vrot.lane.b32.xlu0 %v945_v48, %s3688_s24  ;;  %v4097_v52 = vrot.slane %v3367_v45, %v4076_v44 }
 0x139   : > { %v830_v53 = vpop.f32.mrf.mxu0  ;;  %v951_v54 = vpop.f32.mrf.mxu1 }
 0x13b   : > { %v834_v55 = vpop.f32.mrf.mxu0  ;;  %v955_v57 = vpop.f32.mrf.mxu1 }
 0x13c   : > { %851 = vrot.lane.b32.xlu0 %v826_v49, %s3687_s16  ;;  %853 = vrot.lane.b32.xlu1 %v830_v53, %s3687_s16  ;;  %v3381_v53 = vsel %vm1114_vm5, 1.0, %v3690_v42 }
 0x13d   : > { %v836_v56 = vpop.f32.mrf.mxu0  ;;  %v957_v59 = vpop.f32.mrf.mxu1 }
 0x13f   : > { %v838_v58 = vpop.f32.mrf.mxu0  ;;  %v959_v60 = vpop.f32.mrf.mxu1 }
 0x140   : > { %972 = vrot.lane.b32.xlu0 %v947_v50, %s3688_s24  ;;  %974 = vrot.lane.b32.xlu1 %v951_v54, %s3688_s24 }
 0x141   : > { %v840_v61 = vpop.f32.mrf.mxu0  ;;  %v961_v62 = vpop.f32.mrf.mxu1 }
 0x144   : > { %845 = vrot.lane.b32.xlu0 %v828_v51, %s3687_s16  ;;  %847 = vrot.lane.b32.xlu1 %v834_v55, %s3687_s16  ;;  %v4094_v51 = vrot.slane %v3367_v45, %v3917_v46 }
 0x148   : > { %968 = vrot.lane.b32.xlu0 %v955_v57, %s3688_s24  ;;  %849 = vrot.lane.b32.xlu1 %v838_v58, %s3687_s16 }
 0x14c   : > { %855 = vrot.lane.b32.xlu0 %v836_v56, %s3687_s16  ;;  %970 = vrot.lane.b32.xlu1 %v959_v60, %s3688_s24  ;;  %v4108_v60 = vrot.slane %v3381_v53, %v3917_v46 }
 0x14e   : > { %4940 = vst [vmem:[#allocation8_spill] sm:$0xff] %v4108_v60 }
 0x150   : > { %976 = vrot.lane.b32.xlu0 %v957_v59, %s3688_s24  ;;  %857 = vrot.lane.b32.xlu1 %v840_v61, %s3687_s16  ;;  %v4111_v61 = vrot.slane %v3381_v53, %v4076_v44 }
 0x152   : > { %4941 = vst [vmem:[#allocation9_spill] sm:$0xff] %v4111_v61 }
 0x153   : > { %v1069_v63 = vpop.f32.mrf.mxu0 }
 0x154   : > { %978 = vrot.lane.b32.xlu1 %v961_v62, %s3688_s24  ;;  %1088 = vrot.lane.b32.xlu0 %v1069_v63, %s3689_s28 }
 0x155   : > { %v1071_v3 = vpop.f32.mrf.mxu0 }
 0x157   : > { %v1073_v4 = vpop.f32.mrf.mxu0 }
 0x158   : > { %1096 = vrot.lane.b32.xlu0 %v1071_v3, %s3689_s28  ;;  %1090 = vrot.lane.b32.xlu1 %v1073_v4, %s3689_s28 }
 0x159   : > { %v1075_v5 = vpop.f32.mrf.mxu0 }
 0x15b   : > { %v1079_v8 = vpop.f32.mrf.mxu0 }
 0x15c   : > { %1098 = vrot.lane.b32.xlu1 %v1075_v5, %s3689_s28  ;;  %1092 = vrot.lane.b32.xlu0 %v1079_v8, %s3689_s28 }
 0x15d   : > { %v1081_v9 = vpop.f32.mrf.mxu0 }
 0x15f   : > { %v1083_v10 = vpop.f32.mrf.mxu0 }
 0x160   : > { %1100 = vrot.lane.b32.xlu0 %v1081_v9, %s3689_s28  ;;  %1094 = vrot.lane.b32.xlu1 %v1083_v10, %s3689_s28 }
 0x161   : > { %v1085_v11 = vpop.f32.mrf.mxu0 }
 0x164   : > { %1102 = vrot.lane.b32.xlu1 %v1085_v11, %s3689_s28 }
 0x1a6   : > { %v844_v14 = vpop.permute.xlu0 %843 }
 0x1aa   : > { %v967_v15 = vpop.permute.xlu1 %966  ;;  %v965_v16 = vpop.permute.xlu0 %964 }
 0x1ae   : > { %v852_v17 = vpop.permute.xlu0 %851  ;;  %v854_v20 = vpop.permute.xlu1 %853 }
 0x1af   : > { %v862_v54 = vsel %vm861_vm6, %v844_v14, %v852_v17  ;;  %v866_v55 = vsel %vm861_vm6, %v852_v17, %v844_v14 }
 0x1b0   : > { %v886_v62 = vmul.f32 %v4094_v51, %v866_v55  ;;  %v887_v63 = vmul.f32 %v4097_v52, %v862_v54 }
 0x1b2   : > { %v973_v21 = vpop.permute.xlu0 %972  ;;  %v975_v22 = vpop.permute.xlu1 %974 }
 0x1b3   : > { %v981_v40 = vsel %vm980_vm4, %v965_v16, %v973_v21  ;;  %v985_v50 = vsel %vm980_vm4, %v973_v21, %v965_v16  ;;  %v982_v9 = vsel %vm980_vm4, %v967_v15, %v975_v22  ;;  %v986_v10 = vsel %vm980_vm4, %v975_v22, %v967_v15 }
 0x1b4   : > { %v1002_v56 = vmul.f32 %v4084_v36, %v985_v50  ;;  %v1003_v57 = vmul.f32 %v4087_v47, %v981_v40  ;;  %v1004_v45 = vmul.f32 %v4084_v36, %v986_v10  ;;  %v1005_v40 = vmul.f32 %v4087_v47, %v982_v9 }
 0x1b6   : > { %v846_v23 = vpop.permute.xlu0 %845  ;;  %v848_v26 = vpop.permute.xlu1 %847  ;;  %v1010_v5 = vadd.f32 %v1002_v56, %v886_v62  ;;  %v1011_v8 = vadd.f32 %v1003_v57, %v887_v63 }
 0x1b7   : > { %v863_v3 = vsel %vm861_vm6, %v846_v23, %v854_v20  ;;  %v867_v4 = vsel %vm861_vm6, %v854_v20, %v846_v23 }
 0x1b8   : > { %v888_v16 = vmul.f32 %v4094_v51, %v867_v4  ;;  %v889_v17 = vmul.f32 %v4097_v52, %v863_v3 }
 0x1ba   : > { %v969_v29 = vpop.permute.xlu0 %968  ;;  %v4062_v32 = vpop.permute.xlu1 %849  ;;  %v1012_v63 = vadd.f32 %v1004_v45, %v888_v16  ;;  %v1013_v3 = vadd.f32 %v1005_v40, %v889_v17 }
 0x1be   : > { %v856_v38 = vpop.permute.xlu0 %855  ;;  %v4071_v41 = vpop.permute.xlu1 %970 }
 0x1bf   : > { %v864_v50 = vsel %vm861_vm6, %v848_v26, %v856_v38  ;;  %v868_v53 = vsel %vm861_vm6, %v856_v38, %v848_v26 }
 0x1c0   : > { %v890_v38 = vmul.f32 %v4094_v51, %v868_v53 }
 0x1c2   : > { %v977_v48 = vpop.permute.xlu0 %976  ;;  %v858_v49 = vpop.permute.xlu1 %857 }
 0x1c3   : > { %v983_v23 = vsel %vm980_vm4, %v969_v29, %v977_v48  ;;  %v987_v43 = vsel %vm980_vm4, %v977_v48, %v969_v29  ;;  %v865_v10 = vsel %vm861_vm6, %v4062_v32, %v858_v49 }
 0x1c4   : > { %v1006_v29 = vmul.f32 %v4084_v36, %v987_v43  ;;  %v1007_v48 = vmul.f32 %v4087_v47, %v983_v23  ;;  %v893_v45 = vmul.f32 %v4097_v52, %v865_v10 }
 0x1c6   : > { %v979_v58 = vpop.permute.xlu1 %978  ;;  %v1089_v59 = vpop.permute.xlu0 %1088 }
 0x1c7   : > { %v988_v9 = vsel %vm980_vm4, %v979_v58, %v4071_v41 }
 0x1ca   : > { %v1097_v11 = vpop.permute.xlu0 %1096  ;;  %v1091_v14 = vpop.permute.xlu1 %1090 }
 0x1cb   : > { %v1105_v21 = vsel %vm1104_vm7, %v1089_v59, %v1097_v11  ;;  %v1109_v20 = vsel %vm1104_vm7, %v1097_v11, %v1089_v59  ;;  %v869_v11 = vsel %vm861_vm6, %v858_v49, %v4062_v32 }
 0x1cc   : > { %v1128_v15 = vmul.f32 %v4108_v60, %v1109_v20  ;;  %v1129_v22 = vmul.f32 %v4111_v61, %v1105_v21  ;;  %v1014_v20 = vadd.f32 %v1006_v29, %v890_v38  ;;  %v892_v49 = vmul.f32 %v4094_v51, %v869_v11 }
 0x1ce   : > { %v1136_v54 = vadd.f32 %v1128_v15, %v1010_v5  ;;  %v1137_v55 = vadd.f32 %v1129_v22, %v1011_v8  ;;  %v1099_v56 = vpop.permute.xlu1 %1098  ;;  %v1093_v57 = vpop.permute.xlu0 %1092  ;;  %v891_v5 = vmul.f32 %v4097_v52, %v864_v50  ;;  %v984_v8 = vsel %vm980_vm4, %v4071_v41, %v979_v58 }
 0x1cf   : > { %v1106_v59 = vsel %vm1104_vm7, %v1091_v14, %v1099_v56  ;;  %v1110_v62 = vsel %vm1104_vm7, %v1099_v56, %v1091_v14  ;;  %v1008_v58 = vmul.f32 %v4084_v36, %v988_v9  ;;  %v1009_v15 = vmul.f32 %v4087_v47, %v984_v8 }
 0x1d0   : > { %v1130_v4 = vmul.f32 %v4108_v60, %v1110_v62  ;;  %v1131_v26 = vmul.f32 %v4111_v61, %v1106_v59  ;;  %v1015_v23 = vadd.f32 %v1007_v48, %v891_v5 }
 0x1d1   : > { %v1016_v29 = vadd.f32 %v1008_v58, %v892_v49  ;;  %v1017_v48 = vadd.f32 %v1009_v15, %v893_v45 }
 0x1d2   : > { %v1138_v14 = vadd.f32 %v1130_v4, %v1012_v63  ;;  %v1139_v16 = vadd.f32 %v1131_v26, %v1013_v3  ;;  %v1101_v17 = vpop.permute.xlu0 %1100  ;;  %v1095_v21 = vpop.permute.xlu1 %1094 }
 0x1d3   : > { %v1107_v43 = vsel %vm1104_vm7, %v1093_v57, %v1101_v17  ;;  %v1111_v41 = vsel %vm1104_vm7, %v1101_v17, %v1093_v57 }
 0x1d4   : > { %v1132_v22 = vmul.f32 %v4108_v60, %v1111_v41  ;;  %v1133_v32 = vmul.f32 %v4111_v61, %v1107_v43 }
 0x1d6   : > { %v1140_v40 = vadd.f32 %v1132_v22, %v1014_v20  ;;  %v1141_v50 = vadd.f32 %v1133_v32, %v1015_v23  ;;  %v1103_v53 = vpop.permute.xlu1 %1102  ;;  %1147 = sbr.rel (%p3382_p12) target bundleno = 479 (0x1df), region = 105 }
 0x1d7   : > { %v1108_v56 = vsel %vm1104_vm7, %v1095_v21, %v1103_v53  ;;  %v1112_v57 = vsel %vm1104_vm7, %v1103_v53, %v1095_v21 }
 0x1d8   : > { %v1134_v59 = vmul.f32 %v4108_v60, %v1112_v57  ;;  %v1135_v62 = vmul.f32 %v4111_v61, %v1108_v56 }
 0x1da   : > { %v1142_v63 = vadd.f32 %v1134_v59, %v1016_v29  ;;  %v1143_v3 = vadd.f32 %v1135_v62, %v1017_v48 }
 0x1db   : > { %1148 = vst [vmem:[#allocation2 + $0x30] sm:$0xff] %v1136_v54  ;;  %1149 = vst [vmem:[#allocation2] sm:$0xff] %v1137_v55 }
 0x1dc   : > { %1150 = vst [vmem:[#allocation2 + $0x18] sm:$0xff] %v1138_v14  ;;  %1151 = vst [vmem:[#allocation2 + $0x10] sm:$0xff] %v1139_v16 }
 0x1dd   : > { %1152 = vst [vmem:[#allocation2 + $0x8] sm:$0xff] %v1140_v40  ;;  %1153 = vst [vmem:[#allocation2 + $0x20] sm:$0xff] %v1141_v50 }
 0x1de   : > { %1154 = vst [vmem:[#allocation2 + $0x28] sm:$0xff] %v1142_v63  ;;  %1155 = vst [vmem:[#allocation2 + $0x38] sm:$0xff] %v1143_v3 }
 0x1df PF: > { %p3383_p13 = scmp.le.s32.totalorder %s3667_s15, 0 }
 0x1e1   : > { %1159 = sbr.rel (%p3383_p13) target bundleno = 493 (0x1ed), region = 109 }
 0x1e6   : > { %v1160_v4 = vld [vmem:[#allocation2 + $0x30] sm:$0xff]  ;;  %v1161_v26 = vld [vmem:[#allocation2] sm:$0xff]  ;;  %v1162_v38 = vld [vmem:[#allocation2 + $0x18] sm:$0xff] }
 0x1e7   : > { %v1168_v5 = vadd.f32 %v1160_v4, %v1136_v54  ;;  %v1169_v8 = vadd.f32 %v1161_v26, %v1137_v55  ;;  %v1170_v9 = vadd.f32 %v1162_v38, %v1138_v14  ;;  %v1163_v10 = vld [vmem:[#allocation2 + $0x10] sm:$0xff]  ;;  %v1164_v11 = vld [vmem:[#allocation2 + $0x8] sm:$0xff]  ;;  %v1165_v17 = vld [vmem:[#allocation2 + $0x20] sm:$0xff] }
 0x1e8   : > { %v1171_v21 = vadd.f32 %v1163_v10, %v1139_v16  ;;  %v1172_v20 = vadd.f32 %v1164_v11, %v1140_v40  ;;  %v1173_v23 = vadd.f32 %v1165_v17, %v1141_v50  ;;  %v1166_v43 = vld [vmem:[#allocation2 + $0x28] sm:$0xff]  ;;  %v1167_v41 = vld [vmem:[#allocation2 + $0x38] sm:$0xff] }
 0x1e9   : > { %1176 = vst [vmem:[#allocation2 + $0x30] sm:$0xff] %v1168_v5  ;;  %1177 = vst [vmem:[#allocation2] sm:$0xff] %v1169_v8  ;;  %v1174_v58 = vadd.f32 %v1166_v43, %v1142_v63  ;;  %v1175_v15 = vadd.f32 %v1167_v41, %v1143_v3 }
 0x1ea   : > { %1178 = vst [vmem:[#allocation2 + $0x18] sm:$0xff] %v1170_v9  ;;  %1179 = vst [vmem:[#allocation2 + $0x10] sm:$0xff] %v1171_v21 }
 0x1eb   : > { %1180 = vst [vmem:[#allocation2 + $0x8] sm:$0xff] %v1172_v20  ;;  %1181 = vst [vmem:[#allocation2 + $0x20] sm:$0xff] %v1173_v23 }
 0x1ec   : > { %1182 = vst [vmem:[#allocation2 + $0x28] sm:$0xff] %v1174_v58  ;;  %1183 = vst [vmem:[#allocation2 + $0x38] sm:$0xff] %v1175_v15 }
 0x1ed PF: > { %1201 = vmatprep.subr.bf16.mxu1 %v3941_v0  ;;  %1317 = vmatprep.subr.bf16.mxu0 %v3941_v0  ;;  %v3606_v54 = vld [vmem:[%s3930_s4 + $0x30] sm:$0xff]   ;;  %v3607_v55 = vld [vmem:[%s3930_s4 + $0x40] sm:$0xff]   ;;  %v3608_v14 = vld [vmem:[%s3930_s4 + $0x38] sm:$0xff]   ;;  %s3691_s23 = smov 1   ;;  %s3692_s13 = smov 127   ;;  %vm1270_vm8 = vcmp.lt.s32.totalorder %v4067_v33, 1 }
 0x1ee   : > { %1202 = vmatpush1.bf16.msra.mxu1 %v3943_v1  ;;  %1318 = vmatpush1.bf16.msra.mxu0 %v3943_v1  ;;  %v3609_v16 = vld [vmem:[%s3930_s4 + $0x48] sm:$0xff]   ;;  %v3610_v22 = vld [vmem:[%s3930_s4 + $0x50] sm:$0xff]   ;;  %v3611_v32 = vld [vmem:[%s3930_s4 + $0x60] sm:$0xff]   ;;  %s3693_s20 = smov 113   ;;  %s3694_s27 = smov 112   ;;  %vm1621_vm9 = vcmp.lt.f32.partialorder %v4055_v27, 15.0 }
 0x1ef   : > { %1203 = vmatprep.subr.bf16.mxu1 %v3945_v2  ;;  %1319 = vmatprep.subr.bf16.mxu0 %v3945_v2  ;;  %v3612_v49 = vld [vmem:[%s3930_s4 + $0x58] sm:$0xff]   ;;  %v3613_v45 = vld [vmem:[%s3930_s4 + $0x68] sm:$0xff]   ;;  %v3614_v40 = vld [vmem:[%s3930_s4 + $0x70] sm:$0xff]   ;;  %s3695_s29 = smov 111   ;;  %vm1464_vm12 = vcmp.lt.s32.totalorder %v4067_v33, 127  ;;  %vm1612_vm13 = vcmp.lt.s32.totalorder %v4067_v33, 113 }
 0x1f0   : > { %1233 = vmatprep.mubr.bf16.mxu1 %v3686_v39  ;;  %1349 = vmatprep.mubr.bf16.mxu0 %v3686_v39  ;;  %v3615_v50 = vld [vmem:[%s3930_s4 + $0x80] sm:$0xff]   ;;  %v3616_v53 = vld [vmem:[%s3930_s4 + $0x78] sm:$0xff]   ;;  %vm1622_vm10 = vmand %vm1621_vm9, %vm871_vm1  ;;  %vm1730_vm14 = vcmp.lt.s32.totalorder %v4067_v33, 112  ;;  %vm1854_vm15 = vcmp.lt.s32.totalorder %v4067_v33, 111  ;;  %p3425_p0 = scmp.ne.s32.totalorder %s3667_s15, 1 }
 0x1f1   : > { %vm1863_vm11 = vmand %vm1621_vm9, %vm1113_vm3  ;;  %s3701_s25 = smov (!%p3425_p0), 127   ;;  %s3703_s16 = smov (!%p3425_p0), 112  }
 0x1f2   : > { %1204 = vmatpush1.bf16.msra.mxu1 %v3954_v6  ;;  %1320 = vmatpush1.bf16.msra.mxu0 %v3954_v6  ;;  %s3704_s24 = smov (!%p3425_p0), 111  }
 0x1f3   : > { %1205 = vmatprep.subr.bf16.mxu1 %v3958_v7  ;;  %1321 = vmatprep.subr.bf16.mxu0 %v3958_v7 }
 0x1f6   : > { %1206 = vmatpush1.bf16.msra.mxu1 %v3966_v12  ;;  %1322 = vmatpush1.bf16.msra.mxu0 %v3966_v12 }
 0x1f7   : > { %1207 = vmatprep.subr.bf16.mxu1 %v3970_v13  ;;  %1323 = vmatprep.subr.bf16.mxu0 %v3970_v13 }
 0x1fa   : > { %1208 = vmatpush1.bf16.msra.mxu1 %v3978_v18  ;;  %1324 = vmatpush1.bf16.msra.mxu0 %v3978_v18 }
 0x1fb   : > { %1209 = vmatprep.subr.bf16.mxu1 %v3982_v19  ;;  %1325 = vmatprep.subr.bf16.mxu0 %v3982_v19 }
 0x1fe   : > { %1210 = vmatpush1.bf16.msra.mxu1 %v3990_v24  ;;  %1326 = vmatpush1.bf16.msra.mxu0 %v3990_v24 }
 0x1ff   : > { %1211 = vmatprep.subr.bf16.mxu1 %v3994_v25  ;;  %1327 = vmatprep.subr.bf16.mxu0 %v3994_v25 }
 0x202   : > { %1212 = vmatpush1.bf16.msra.mxu1 %v4002_v30  ;;  %1328 = vmatpush1.bf16.msra.mxu0 %v4002_v30 }
 0x203   : > { %1213 = vmatprep.subr.bf16.mxu1 %v4006_v31  ;;  %1329 = vmatprep.subr.bf16.mxu0 %v4006_v31 }
 0x206   : > { %1214 = vmatpush1.bf16.msra.mxu1 %v4012_v34  ;;  %1330 = vmatpush1.bf16.msra.mxu0 %v4012_v34 }
 0x207   : > { %1215 = vmatprep.subr.bf16.mxu1 %v4016_v35  ;;  %1331 = vmatprep.subr.bf16.mxu0 %v4016_v35 }
 0x20a   : > { %1216 = vmatpush1.bf16.msra.mxu1 %v4020_v37  ;;  %1332 = vmatpush1.bf16.msra.mxu0 %v4020_v37 }
 0x20b   : > { %1395 = vmatprep.subr.bf16.mxu1 %v3941_v0  ;;  %1543 = vmatprep.subr.bf16.mxu0 %v3941_v0 }
 0x20d   : > { %1234 = vmatmul.mubr.bf16.vlgmr.msra.gmra.mxu1 %v3606_v54  ;;  %1350 = vmatmul.mubr.bf16.vlgmr.msra.gmra.mxu0 %v3607_v55 }
 0x20e   : > { %1396 = vmatpush1.bf16.msra.mxu1 %v3943_v1  ;;  %1544 = vmatpush1.bf16.msra.mxu0 %v3943_v1 }
 0x20f   : > { %1397 = vmatprep.subr.bf16.mxu1 %v3945_v2  ;;  %1545 = vmatprep.subr.bf16.mxu0 %v3945_v2 }
 0x210   : > { %1243 = vmatprep.mubr.bf16.mxu1 %v3686_v39  ;;  %1359 = vmatprep.mubr.bf16.mxu0 %v3686_v39 }
 0x212   : > { %1398 = vmatpush1.bf16.msra.mxu1 %v3954_v6  ;;  %1546 = vmatpush1.bf16.msra.mxu0 %v3954_v6 }
 0x213   : > { %1399 = vmatprep.subr.bf16.mxu1 %v3958_v7  ;;  %1547 = vmatprep.subr.bf16.mxu0 %v3958_v7 }
 0x215   : > { %1244 = vmatmul.mubr.bf16.gmra.mxu1 %v3608_v14  ;;  %1360 = vmatmul.mubr.bf16.gmra.mxu0 %v3609_v16 }
 0x216   : > { %1400 = vmatpush1.bf16.msra.mxu1 %v3966_v12  ;;  %1548 = vmatpush1.bf16.msra.mxu0 %v3966_v12 }
 0x217   : > { %1401 = vmatprep.subr.bf16.mxu1 %v3970_v13  ;;  %1549 = vmatprep.subr.bf16.mxu0 %v3970_v13 }
 0x218   : > { %1427 = vmatprep.mubr.bf16.mxu1 %v3686_v39  ;;  %1575 = vmatprep.mubr.bf16.mxu0 %v3686_v39 }
 0x21a   : > { %1402 = vmatpush1.bf16.msra.mxu1 %v3978_v18  ;;  %1550 = vmatpush1.bf16.msra.mxu0 %v3978_v18 }
 0x21b   : > { %1403 = vmatprep.subr.bf16.mxu1 %v3982_v19  ;;  %1551 = vmatprep.subr.bf16.mxu0 %v3982_v19 }
 0x21e   : > { %1404 = vmatpush1.bf16.msra.mxu1 %v3990_v24  ;;  %1552 = vmatpush1.bf16.msra.mxu0 %v3990_v24 }
 0x21f   : > { %1405 = vmatprep.subr.bf16.mxu1 %v3994_v25  ;;  %1553 = vmatprep.subr.bf16.mxu0 %v3994_v25 }
 0x222   : > { %1406 = vmatpush1.bf16.msra.mxu1 %v4002_v30  ;;  %1554 = vmatpush1.bf16.msra.mxu0 %v4002_v30 }
 0x223   : > { %1407 = vmatprep.subr.bf16.mxu1 %v4006_v31  ;;  %1555 = vmatprep.subr.bf16.mxu0 %v4006_v31 }
 0x226   : > { %1408 = vmatpush1.bf16.msra.mxu1 %v4012_v34  ;;  %1556 = vmatpush1.bf16.msra.mxu0 %v4012_v34 }
 0x227   : > { %1409 = vmatprep.subr.bf16.mxu1 %v4016_v35  ;;  %1557 = vmatprep.subr.bf16.mxu0 %v4016_v35 }
 0x22a   : > { %1410 = vmatpush1.bf16.msra.mxu1 %v4020_v37  ;;  %1558 = vmatpush1.bf16.msra.mxu0 %v4020_v37 }
 0x22b   : > { %1661 = vmatprep.subr.bf16.mxu1 %v3941_v0  ;;  %1785 = vmatprep.subr.bf16.mxu0 %v3941_v0 }
 0x22d   : > { %1428 = vmatmul.mubr.bf16.vlgmr.msra.gmra.mxu1 %v3610_v22  ;;  %1576 = vmatmul.mubr.bf16.vlgmr.msra.gmra.mxu0 %v3611_v32 }
 0x22e   : > { %1662 = vmatpush1.bf16.msra.mxu1 %v3943_v1  ;;  %1786 = vmatpush1.bf16.msra.mxu0 %v3943_v1 }
 0x22f   : > { %1663 = vmatprep.subr.bf16.mxu1 %v3945_v2  ;;  %1787 = vmatprep.subr.bf16.mxu0 %v3945_v2 }
 0x230   : > { %1437 = vmatprep.mubr.bf16.mxu1 %v3686_v39  ;;  %1585 = vmatprep.mubr.bf16.mxu0 %v3686_v39 }
 0x232   : > { %1664 = vmatpush1.bf16.msra.mxu1 %v3954_v6  ;;  %1788 = vmatpush1.bf16.msra.mxu0 %v3954_v6 }
 0x233   : > { %1665 = vmatprep.subr.bf16.mxu1 %v3958_v7  ;;  %1789 = vmatprep.subr.bf16.mxu0 %v3958_v7 }
 0x235   : > { %1438 = vmatmul.mubr.bf16.gmra.mxu1 %v3612_v49  ;;  %1586 = vmatmul.mubr.bf16.gmra.mxu0 %v3613_v45 }
 0x236   : > { %1666 = vmatpush1.bf16.msra.mxu1 %v3966_v12  ;;  %1790 = vmatpush1.bf16.msra.mxu0 %v3966_v12 }
 0x237   : > { %1667 = vmatprep.subr.bf16.mxu1 %v3970_v13  ;;  %1791 = vmatprep.subr.bf16.mxu0 %v3970_v13 }
 0x238   : > { %1693 = vmatprep.mubr.bf16.mxu1 %v3686_v39  ;;  %1817 = vmatprep.mubr.bf16.mxu0 %v3686_v39 }
 0x23a   : > { %1668 = vmatpush1.bf16.msra.mxu1 %v3978_v18  ;;  %1792 = vmatpush1.bf16.msra.mxu0 %v3978_v18 }
 0x23b   : > { %1669 = vmatprep.subr.bf16.mxu1 %v3982_v19  ;;  %1793 = vmatprep.subr.bf16.mxu0 %v3982_v19 }
 0x23e   : > { %1670 = vmatpush1.bf16.msra.mxu1 %v3990_v24  ;;  %1794 = vmatpush1.bf16.msra.mxu0 %v3990_v24 }
 0x23f   : > { %1671 = vmatprep.subr.bf16.mxu1 %v3994_v25  ;;  %1795 = vmatprep.subr.bf16.mxu0 %v3994_v25 }
 0x242   : > { %1672 = vmatpush1.bf16.msra.mxu1 %v4002_v30  ;;  %1796 = vmatpush1.bf16.msra.mxu0 %v4002_v30 }
 0x243   : > { %1673 = vmatprep.subr.bf16.mxu1 %v4006_v31  ;;  %1797 = vmatprep.subr.bf16.mxu0 %v4006_v31 }
 0x246   : > { %1674 = vmatpush1.bf16.msra.mxu1 %v4012_v34  ;;  %1798 = vmatpush1.bf16.msra.mxu0 %v4012_v34 }
 0x247   : > { %1675 = vmatprep.subr.bf16.mxu1 %v4016_v35  ;;  %1799 = vmatprep.subr.bf16.mxu0 %v4016_v35 }
 0x24a   : > { %1676 = vmatpush1.bf16.msra.mxu1 %v4020_v37  ;;  %1800 = vmatpush1.bf16.msra.mxu0 %v4020_v37 }
 0x24b   : > { %3505 = vmatprep.subr.bf16.mxu1 %v3941_v0  ;;  %v3617_v0 = vld [vmem:[%s3930_s4 + $0x88] sm:$0xff]   ;;  %s3702_s4 = smov (!%p3425_p0), 113  }
 0x24d   : > { %1694 = vmatmul.mubr.bf16.vlgmr.msra.gmra.mxu1 %v3614_v40  ;;  %1818 = vmatmul.mubr.bf16.vlgmr.msra.gmra.mxu0 %v3615_v50 }
 0x24e   : > { %3513 = vmatpush1.bf16.msra.mxu1 %v3943_v1  ;;  %1703 = vmatprep.mubr.bf16.mxu1 %v3686_v39 }
 0x24f   : > { %3506 = vmatprep.subr.bf16.mxu1 %v3945_v2 }
 0x252   : > { %3514 = vmatpush1.bf16.msra.mxu1 %v3954_v6 }
 0x253   : > { %3507 = vmatprep.subr.bf16.mxu1 %v3958_v7 }
 0x255   : > { %1704 = vmatmul.mubr.bf16.gmra.mxu1 %v3616_v53 }
 0x256   : > { %3515 = vmatpush1.bf16.msra.mxu1 %v3966_v12  ;;  %1827 = vmatprep.mubr.bf16.mxu1 %v3686_v39 }
 0x257   : > { %3508 = vmatprep.subr.bf16.mxu1 %v3970_v13 }
 0x25a   : > { %3516 = vmatpush1.bf16.msra.mxu1 %v3978_v18 }
 0x25b   : > { %3509 = vmatprep.subr.bf16.mxu1 %v3982_v19 }
 0x25e   : > { %3517 = vmatpush1.bf16.msra.mxu1 %v3990_v24 }
 0x25f   : > { %3510 = vmatprep.subr.bf16.mxu1 %v3994_v25 }
 0x262   : > { %3518 = vmatpush1.bf16.msra.mxu1 %v4002_v30 }
 0x263   : > { %3511 = vmatprep.subr.bf16.mxu1 %v4006_v31 }
 0x266   : > { %3519 = vmatpush1.bf16.msra.mxu1 %v4012_v34 }
 0x267   : > { %3512 = vmatprep.subr.bf16.mxu1 %v4016_v35 }
 0x26a   : > { %3520 = vmatpush1.bf16.msra.mxu1 %v4020_v37 }
 0x26d   : > { %1828 = vmatmul.mubr.bf16.vlgmr.msra.gmra.mxu1 %v3617_v0 }
 0x2cd   : > { %v1235_v39 = vpop.f32.mrf.mxu1  ;;  %v4317_v2 = vpop.f32.mrf.mxu0 }
 0x2ce   : > { %1254 = vrot.lane.b32.xlu0 %v1235_v39, %s3691_s23 }
 0x2cf   : > { %v1237_v1 = vpop.f32.mrf.mxu1  ;;  %v4319_v12 = vpop.f32.mrf.mxu0 }
 0x2d1   : > { %v1239_v6 = vpop.f32.mrf.mxu1  ;;  %v4321_v18 = vpop.f32.mrf.mxu0 }
 0x2d2   : > { %1262 = vrot.lane.b32.xlu0 %v1237_v1, %s3691_s23 }
 0x2d3   : > { %v1241_v7 = vpop.f32.mrf.mxu1  ;;  %v4323_v25 = vpop.f32.mrf.mxu0 }
 0x2d4   : > { %1264 = vrot.lane.b32.xlu1 %v1241_v7, %s3691_s23 }
 0x2d5   : > { %v1245_v13 = vpop.f32.mrf.mxu1  ;;  %v4325_v31 = vpop.f32.mrf.mxu0 }
 0x2d6   : > { %1256 = vrot.lane.b32.xlu0 %v1239_v6, %s3691_s23 }
 0x2d7   : > { %v1247_v19 = vpop.f32.mrf.mxu1  ;;  %v4327_v34 = vpop.f32.mrf.mxu0 }
 0x2d8   : > { %1258 = vrot.lane.b32.xlu1 %v1245_v13, %s3691_s23 }
 0x2d9   : > { %v1249_v24 = vpop.f32.mrf.mxu1  ;;  %v4329_v35 = vpop.f32.mrf.mxu0 }
 0x2da   : > { %1266 = vrot.lane.b32.xlu0 %v1247_v19, %s3691_s23 }
 0x2db   : > { %v1251_v30 = vpop.f32.mrf.mxu1  ;;  %v4331_v37 = vpop.f32.mrf.mxu0 }
 0x2dc   : > { %1260 = vrot.lane.b32.xlu1 %v1249_v24, %s3691_s23 }
 0x2e0   : > { %1268 = vrot.lane.b32.xlu1 %v1251_v30, %s3691_s23 }
 0x2ed   : > { %v1429_v56 = vpop.f32.mrf.mxu1  ;;  %v1577_v57 = vpop.f32.mrf.mxu0 }
 0x2ee   : > { %1448 = vrot.lane.b32.xlu0 %v1429_v56, %s3692_s13 }
 0x2ef   : > { %v1431_v29 = vpop.f32.mrf.mxu1  ;;  %v1579_v48 = vpop.f32.mrf.mxu0 }
 0x2f1   : > { %v1433_v59 = vpop.f32.mrf.mxu1  ;;  %v1581_v62 = vpop.f32.mrf.mxu0 }
 0x2f2   : > { %1596 = vrot.lane.b32.xlu0 %v1577_v57, %s3693_s20  ;;  %1450 = vrot.lane.b32.xlu1 %v1433_v59, %s3692_s13 }
 0x2f3   : > { %v1435_v63 = vpop.f32.mrf.mxu1  ;;  %v1583_v4 = vpop.f32.mrf.mxu0 }
 0x2f5   : > { %v1439_v3 = vpop.f32.mrf.mxu1  ;;  %v1587_v38 = vpop.f32.mrf.mxu0 }
 0x2f6   : > { %1456 = vrot.lane.b32.xlu0 %v1431_v29, %s3692_s13  ;;  %1598 = vrot.lane.b32.xlu1 %v1581_v62, %s3693_s20 }
 0x2f7   : > { %v1441_v26 = vpop.f32.mrf.mxu1  ;;  %v1589_v8 = vpop.f32.mrf.mxu0 }
 0x2f9   : > { %v1443_v5 = vpop.f32.mrf.mxu1  ;;  %v1591_v9 = vpop.f32.mrf.mxu0 }
 0x2fa   : > { %1604 = vrot.lane.b32.xlu0 %v1579_v48, %s3693_s20  ;;  %1458 = vrot.lane.b32.xlu1 %v1435_v63, %s3692_s13 }
 0x2fb   : > { %v1445_v10 = vpop.f32.mrf.mxu1  ;;  %v1593_v11 = vpop.f32.mrf.mxu0 }
 0x2fe   : > { %1606 = vrot.lane.b32.xlu1 %v1583_v4, %s3693_s20  ;;  %1452 = vrot.lane.b32.xlu0 %v1439_v3, %s3692_s13 }
 0x302   : > { %1600 = vrot.lane.b32.xlu0 %v1587_v38, %s3693_s20  ;;  %1454 = vrot.lane.b32.xlu1 %v1443_v5, %s3692_s13 }
 0x306   : > { %1460 = vrot.lane.b32.xlu0 %v1441_v26, %s3692_s13  ;;  %1602 = vrot.lane.b32.xlu1 %v1591_v9, %s3693_s20 }
 0x30a   : > { %1608 = vrot.lane.b32.xlu0 %v1589_v8, %s3693_s20  ;;  %1462 = vrot.lane.b32.xlu1 %v1445_v10, %s3692_s13  ;;  %s3697_s13 = smov (!%p3425_p0), 17  }
 0x30d   : > { %v1695_v17 = vpop.f32.mrf.mxu1  ;;  %v1819_v21 = vpop.f32.mrf.mxu0 }
 0x30e   : > { %1610 = vrot.lane.b32.xlu1 %v1593_v11, %s3693_s20  ;;  %1714 = vrot.lane.b32.xlu0 %v1695_v17, %s3694_s27  ;;  %v3390_v11 = vsel %vm871_vm1, 1.0, %v3690_v42  ;;  %v3403_v17 = vsel %vm1113_vm3, 1.0, %v3690_v42  ;;  %s3698_s20 = smov (!%p3425_p0), 16  }
 0x30f   : > { %v1697_v20 = vpop.f32.mrf.mxu1  ;;  %v1821_v23 = vpop.f32.mrf.mxu0 }
 0x311   : > { %v1699_v43 = vpop.f32.mrf.mxu1  ;;  %v1823_v41 = vpop.f32.mrf.mxu0 }
 0x312   : > { %1838 = vrot.lane.b32.xlu0 %v1819_v21, %s3695_s29  ;;  %1716 = vrot.lane.b32.xlu1 %v1699_v43, %s3694_s27  ;;  %v4380_v21 = vrot.slane %v3390_v11, %v3917_v46 }
 0x313   : > { %v1701_v58 = vpop.f32.mrf.mxu1  ;;  %v1825_v55 = vpop.f32.mrf.mxu0 }
 0x315   : > { %v1705_v15 = vpop.f32.mrf.mxu1 }
 0x316   : > { %1722 = vrot.lane.b32.xlu0 %v1697_v20, %s3694_s27  ;;  %1840 = vrot.lane.b32.xlu1 %v1823_v41, %s3695_s29  ;;  %v4383_v20 = vrot.slane %v3390_v11, %v4076_v44 }
 0x317   : > { %v1707_v54 = vpop.f32.mrf.mxu1 }
 0x319   : > { %v1709_v14 = vpop.f32.mrf.mxu1 }
 0x31a   : > { %1846 = vrot.lane.b32.xlu0 %v1821_v23, %s3695_s29  ;;  %1724 = vrot.lane.b32.xlu1 %v1701_v58, %s3694_s27  ;;  %v3410_v23 = vsel %vm1622_vm10, 1.0, %v3690_v42 }
 0x31b   : > { %v1711_v16 = vpop.f32.mrf.mxu1 }
 0x31e   : > { %1848 = vrot.lane.b32.xlu1 %v1825_v55, %s3695_s29  ;;  %1718 = vrot.lane.b32.xlu0 %v1705_v15, %s3694_s27 }
 0x322   : > { %1726 = vrot.lane.b32.xlu0 %v1707_v54, %s3694_s27  ;;  %1720 = vrot.lane.b32.xlu1 %v1709_v14, %s3694_s27  ;;  %v4398_v54 = vrot.slane %v3403_v17, %v3917_v46  ;;  %v4405_v14 = vrot.slane %v3403_v17, %v4076_v44 }
 0x326   : > { %1728 = vrot.lane.b32.xlu1 %v1711_v16, %s3694_s27  ;;  %v3417_v16 = vsel %vm1621_vm9, 1.0, %v3690_v42  ;;  %s3699_s27 = smov (!%p3425_p0), 1  }
 0x32d   : > { %v1829_v22 = vpop.f32.mrf.mxu1 }
 0x32e   : > { %1842 = vrot.lane.b32.xlu0 %v1829_v22, %s3695_s29  ;;  %v4412_v22 = vrot.slane %v3410_v23, %v3917_v46 }
 0x32f   : > { %v1831_v32 = vpop.f32.mrf.mxu1 }
 0x331   : > { %v1833_v49 = vpop.f32.mrf.mxu1 }
 0x332   : > { %1850 = vrot.lane.b32.xlu0 %v1831_v32, %s3695_s29  ;;  %1844 = vrot.lane.b32.xlu1 %v1833_v49, %s3695_s29  ;;  %v4415_v32 = vrot.slane %v3410_v23, %v4076_v44  ;;  %v3424_v49 = vsel %vm1863_vm11, 1.0, %v3690_v42  ;;  %v4428_v42 = vrot.slane %v3417_v16, %v3917_v46 }
 0x333   : > { %v1835_v45 = vpop.f32.mrf.mxu1 }
 0x336   : > { %1852 = vrot.lane.b32.xlu1 %v1835_v45, %s3695_s29  ;;  %s3700_s29 = smov (!%p3425_p0), 15  }
 0x340   : > { %v1255_v40 = vpop.permute.xlu0 %1254 }
 0x344   : > { %v1263_v50 = vpop.permute.xlu0 %1262 }
 0x345   : > { %v1271_v58 = vsel %vm1270_vm8, %v1255_v40, %v1263_v50  ;;  %v1275_v15 = vsel %vm1270_vm8, %v1263_v50, %v1255_v40 }
 0x346   : > { %v1265_v53 = vpop.permute.xlu1 %1264  ;;  %v1292_v45 = vmul.f32 %v4380_v21, %v1275_v15  ;;  %v1293_v40 = vmul.f32 %v4383_v20, %v1271_v58 }
 0x348   : > { %v1257_v0 = vpop.permute.xlu0 %1256  ;;  %v1370_v58 = vadd.f32 %v4317_v2, %v1292_v45  ;;  %v1371_v15 = vadd.f32 %v4319_v12, %v1293_v40  ;;  %v1502_v40 = vld [vmem:[#allocation2 + $0x30] sm:$0xff] }
 0x349   : > { %v1272_v55 = vsel %vm1270_vm8, %v1257_v0, %v1265_v53  ;;  %v1276_v28 = vsel %vm1270_vm8, %v1265_v53, %v1257_v0 }
 0x34a   : > { %v1259_v39 = vpop.permute.xlu1 %1258 }
 0x34c   : > { %v1267_v1 = vpop.permute.xlu0 %1266 }
 0x34d   : > { %v4336_v6 = vsel %vm1270_vm8, %v1259_v39, %v1267_v1  ;;  %v4340_v7 = vsel %vm1270_vm8, %v1267_v1, %v1259_v39  ;;  %v1294_v39 = vmul.f32 %v4380_v21, %v1276_v28  ;;  %v1295_v1 = vmul.f32 %v4383_v20, %v1272_v55 }
 0x34e   : > { %v1261_v13 = vpop.permute.xlu1 %1260 }
 0x352   : > { %v1269_v19 = vpop.permute.xlu1 %1268 }
 0x353   : > { %v4344_v24 = vsel %vm1270_vm8, %v1261_v13, %v1269_v19  ;;  %v4348_v30 = vsel %vm1270_vm8, %v1269_v19, %v1261_v13  ;;  %v4431_v13 = vrot.slane %v3417_v16, %v4076_v44  ;;  %v4435_v19 = vrot.slane %v3424_v49, %v3917_v46 }
 0x354   : > { %v1372_v16 = vadd.f32 %v4321_v18, %v1294_v39 }
 0x360   : > { %v1449_v56 = vpop.permute.xlu0 %1448 }
 0x364   : > { %v1597_v57 = vpop.permute.xlu0 %1596  ;;  %v1451_v29 = vpop.permute.xlu1 %1450 }
 0x368   : > { %v1457_v48 = vpop.permute.xlu0 %1456  ;;  %v4350_v59 = vpop.permute.xlu1 %1598 }
 0x369   : > { %v1465_v50 = vsel %vm1464_vm12, %v1449_v56, %v1457_v48  ;;  %v1469_v27 = vsel %vm1464_vm12, %v1457_v48, %v1449_v56  ;;  %v4438_v56 = vrot.slane %v3424_v49, %v4076_v44  ;;  %v1373_v49 = vadd.f32 %v4323_v25, %v1295_v1 }
 0x36a   : > { %v1486_v48 = vmul.f32 %v4398_v54, %v1465_v50  ;;  %v1487_v11 = vmul.f32 %v4405_v14, %v1469_v27  ;;  %v1503_v27 = vld [vmem:[#allocation2] sm:$0xff] }
 0x36c   : > { %v1605_v62 = vpop.permute.xlu0 %1604  ;;  %v1459_v63 = vpop.permute.xlu1 %1458  ;;  %v1495_v45 = vadd.f32 %v1487_v11, %v1371_v15 }
 0x36d   : > { %v1613_v17 = vsel %vm1612_vm13, %v1597_v57, %v1605_v62  ;;  %v1617_v23 = vsel %vm1612_vm13, %v1605_v62, %v1597_v57  ;;  %v1466_v46 = vsel %vm1464_vm12, %v1451_v29, %v1459_v63  ;;  %v1470_v44 = vsel %vm1464_vm12, %v1459_v63, %v1451_v29 }
 0x36e   : > { %v1636_v12 = vmul.f32 %v4412_v22, %v1613_v17  ;;  %v1637_v57 = vmul.f32 %v4415_v32, %v1617_v23  ;;  %v1494_v63 = vadd.f32 %v1486_v48, %v1370_v58  ;;  %v1488_v18 = vmul.f32 %v4398_v54, %v1466_v46 }
 0x36f   : > { %v1489_v25 = vmul.f32 %v4405_v14, %v1470_v44 }
 0x370   : > { %v4352_v3 = vpop.permute.xlu1 %1606  ;;  %v4354_v4 = vpop.permute.xlu0 %1452 }
 0x371   : > { %v1618_v39 = vsel %vm1612_vm13, %v4352_v3, %v4350_v59 }
 0x374   : > { %v4356_v26 = vpop.permute.xlu0 %1600  ;;  %v4358_v38 = vpop.permute.xlu1 %1454 }
 0x378   : > { %v4360_v5 = vpop.permute.xlu0 %1460  ;;  %v4362_v8 = vpop.permute.xlu1 %1602 }
 0x37c   : > { %v4365_v9 = vpop.permute.xlu0 %1608  ;;  %v4367_v10 = vpop.permute.xlu1 %1462 }
 0x380   : > { %v4386_v43 = vpop.permute.xlu1 %1610  ;;  %v1715_v41 = vpop.permute.xlu0 %1714 }
 0x384   : > { %v1839_v53 = vpop.permute.xlu0 %1838  ;;  %v1717_v0 = vpop.permute.xlu1 %1716 }
 0x388   : > { %v1723_v55 = vpop.permute.xlu0 %1722  ;;  %v1841_v28 = vpop.permute.xlu1 %1840 }
 0x389   : > { %v1731_v50 = vsel %vm1730_vm14, %v1715_v41, %v1723_v55  ;;  %v1735_v2 = vsel %vm1730_vm14, %v1723_v55, %v1715_v41  ;;  %v1614_v41 = vsel %vm1612_vm13, %v4350_v59, %v4352_v3 }
 0x38a   : > { %v1752_v62 = vmul.f32 %v4428_v42, %v1731_v50  ;;  %v1753_v29 = vmul.f32 %v4431_v13, %v1735_v2  ;;  %v1510_v50 = vadd.f32 %v1502_v40, %v1494_v63  ;;  %v1511_v2 = vadd.f32 %v1503_v27, %v1495_v45 }
 0x38c   : > { %v1760_v1 = vadd.f32 %v1752_v62, %v1636_v12  ;;  %v1761_v17 = vadd.f32 %v1753_v29, %v1637_v57  ;;  %v1847_v48 = vpop.permute.xlu0 %1846  ;;  %v1725_v11 = vpop.permute.xlu1 %1724  ;;  %v1638_v12 = vmul.f32 %v4412_v22, %v1614_v41  ;;  %v1496_v57 = vadd.f32 %v1488_v18, %v1372_v16 }
 0x38d   : > { %v1855_v23 = vsel %vm1854_vm15, %v1839_v53, %v1847_v48  ;;  %v1859_v58 = vsel %vm1854_vm15, %v1847_v48, %v1839_v53  ;;  %v1732_v15 = vsel %vm1730_vm14, %v1717_v0, %v1725_v11  ;;  %v1736_v46 = vsel %vm1730_vm14, %v1725_v11, %v1717_v0  ;;  %v1504_v0 = vld [vmem:[#allocation2 + $0x18] sm:$0xff]  ;;  %v1505_v11 = vld [vmem:[#allocation2 + $0x10] sm:$0xff] }
 0x38e   : > { %v1877_v44 = vmul.f32 %v4435_v19, %v1855_v23  ;;  %v1878_v59 = vmul.f32 %v4438_v56, %v1859_v58  ;;  %v1754_v3 = vmul.f32 %v4428_v42, %v1732_v15  ;;  %v1755_v55 = vmul.f32 %v4431_v13, %v1736_v46 }
 0x38f   : > { %v1639_v53 = vmul.f32 %v4415_v32, %v1618_v39  ;;  %v1497_v62 = vadd.f32 %v1489_v25, %v1373_v49  ;;  %v1512_v49 = vadd.f32 %v1504_v0, %v1496_v57  ;;  %v1467_v46 = vsel %vm1464_vm12, %v4354_v4, %v4360_v5 }
 0x390   : > { %v1885_v29 = vadd.f32 %v1877_v44, %v1760_v1  ;;  %v1886_v48 = vadd.f32 %v1878_v59, %v1761_v17  ;;  %v1849_v61 = vpop.permute.xlu1 %1848  ;;  %v1762_v23 = vadd.f32 %v1754_v3, %v1638_v12  ;;  %v1719_v17 = vpop.permute.xlu0 %1718  ;;  %v1298_v59 = vmul.f32 %v4380_v21, %v4348_v30 }
 0x391   : > { %v1763_v60 = vadd.f32 %v1755_v55, %v1639_v53  ;;  %v1856_v58 = vsel %vm1854_vm15, %v1841_v28, %v1849_v61  ;;  %v1860_v63 = vsel %vm1854_vm15, %v1849_v61, %v1841_v28  ;;  %v1513_v18 = vadd.f32 %v1505_v11, %v1497_v62  ;;  %v1506_v11 = vld [vmem:[#allocation2 + $0x8] sm:$0xff] }
 0x392   : > { %v1901_v45 = vadd.f32 %v1885_v29, %v1510_v50  ;;  %v1902_v40 = vadd.f32 %v1886_v48, %v1511_v2  ;;  %v1879_v27 = vmul.f32 %v4435_v19, %v1856_v58  ;;  %v1880_v16 = vmul.f32 %v4438_v56, %v1860_v63 }
 0x393   : > { %v1296_v61 = vmul.f32 %v4380_v21, %v4340_v7  ;;  %v1297_v28 = vmul.f32 %v4383_v20, %v4336_v6  ;;  %v1299_v7 = vmul.f32 %v4383_v20, %v4344_v24  ;;  %v1490_v3 = vmul.f32 %v4398_v54, %v1467_v46 }
 0x394   : > { %1909 = vst [vmem:[#allocation2 + $0x30] sm:$0xff] %v1901_v45  ;;  %1910 = vst [vmem:[#allocation2] sm:$0xff] %v1902_v40  ;;  %v1887_v25 = vadd.f32 %v1879_v27, %v1762_v23  ;;  %v1888_v41 = vadd.f32 %v1880_v16, %v1763_v60  ;;  %v1721_v15 = vpop.permute.xlu1 %1720  ;;  %v1471_v60 = vsel %vm1464_vm12, %v4360_v5, %v4354_v4  ;;  %v1727_v44 = vpop.permute.xlu0 %1726  ;;  %v1507_v23 = vld [vmem:[#allocation2 + $0x20] sm:$0xff] }
 0x395   : > { %v1491_v6 = vmul.f32 %v4405_v14, %v1471_v60  ;;  %v1733_v55 = vsel %vm1730_vm14, %v1719_v17, %v1727_v44  ;;  %v1737_v50 = vsel %vm1730_vm14, %v1727_v44, %v1719_v17  ;;  %v1374_v4 = vadd.f32 %v4325_v31, %v1296_v61 }
 0x396   : > { %v1903_v39 = vadd.f32 %v1887_v25, %v1512_v49  ;;  %v1904_v1 = vadd.f32 %v1888_v41, %v1513_v18  ;;  %v1375_v5 = vadd.f32 %v4327_v34, %v1297_v28  ;;  %v1615_v24 = vsel %vm1612_vm13, %v4356_v26, %v4365_v9 }
 0x397   : > { %v1619_v30 = vsel %vm1612_vm13, %v4365_v9, %v4356_v26  ;;  %v1376_v53 = vadd.f32 %v4329_v35, %v1298_v59  ;;  %v1377_v57 = vadd.f32 %v4331_v37, %v1299_v7  ;;  %v1468_v31 = vsel %vm1464_vm12, %v4358_v38, %v4367_v10  ;;  %v1508_v59 = vld [vmem:[#allocation2 + $0x28] sm:$0xff]  ;;  %v1509_v7 = vld [vmem:[#allocation2 + $0x38] sm:$0xff] }
 0x398   : > { %1911 = vst [vmem:[#allocation2 + $0x18] sm:$0xff] %v1903_v39  ;;  %1912 = vst [vmem:[#allocation2 + $0x10] sm:$0xff] %v1904_v1  ;;  %v1729_v2 = vpop.permute.xlu1 %1728  ;;  %v1472_v34 = vsel %vm1464_vm12, %v4367_v10, %v4358_v38  ;;  %v1756_v62 = vmul.f32 %v4428_v42, %v1733_v55  ;;  %v1757_v29 = vmul.f32 %v4431_v13, %v1737_v50 }
 0x399   : > { %v1734_v26 = vsel %vm1730_vm14, %v1721_v15, %v1729_v2  ;;  %v1738_v35 = vsel %vm1730_vm14, %v1729_v2, %v1721_v15  ;;  %v1498_v37 = vadd.f32 %v1490_v3, %v1374_v4  ;;  %v1499_v9 = vadd.f32 %v1491_v6, %v1375_v5 }
 0x39a   : > { %v1640_v48 = vmul.f32 %v4412_v22, %v1615_v24  ;;  %v1641_v0 = vmul.f32 %v4415_v32, %v1619_v30  ;;  %v1492_v38 = vmul.f32 %v4398_v54, %v1468_v31  ;;  %v1493_v10 = vmul.f32 %v4405_v14, %v1472_v34 }
 0x39b   : > { %v1616_v58 = vsel %vm1612_vm13, %v4362_v8, %v4386_v43  ;;  %v1620_v63 = vsel %vm1612_vm13, %v4386_v43, %v4362_v8  ;;  %v1758_v27 = vmul.f32 %v4428_v42, %v1734_v26  ;;  %v1759_v16 = vmul.f32 %v4431_v13, %v1738_v35 }
 0x39c   : > { %v1764_v25 = vadd.f32 %v1756_v62, %v1640_v48  ;;  %v1765_v41 = vadd.f32 %v1757_v29, %v1641_v0  ;;  %v1514_v17 = vadd.f32 %v1506_v11, %v1498_v37  ;;  %v1515_v8 = vadd.f32 %v1507_v23, %v1499_v9 }
 0x39d   : > { %v1642_v43 = vmul.f32 %v4412_v22, %v1616_v58  ;;  %v1643_v15 = vmul.f32 %v4415_v32, %v1620_v63  ;;  %v1500_v61 = vadd.f32 %v1492_v38, %v1376_v53  ;;  %v1501_v28 = vadd.f32 %v1493_v10, %v1377_v57 }
 0x39f   : > { %v1766_v3 = vadd.f32 %v1758_v27, %v1642_v43  ;;  %v1767_v6 = vadd.f32 %v1759_v16, %v1643_v15  ;;  %v1516_v30 = vadd.f32 %v1508_v59, %v1500_v61 }
 0x3a0   : > { %v1843_v12 = vpop.permute.xlu0 %1842 }
 0x3a4   : > { %v1851_v45 = vpop.permute.xlu0 %1850  ;;  %v1845_v40 = vpop.permute.xlu1 %1844 }
 0x3a5   : > { %v1857_v49 = vsel %vm1854_vm15, %v1843_v12, %v1851_v45  ;;  %v1861_v18 = vsel %vm1854_vm15, %v1851_v45, %v1843_v12  ;;  %v1517_v12 = vadd.f32 %v1509_v7, %v1501_v28 }
 0x3a6   : > { %v1881_v39 = vmul.f32 %v4435_v19, %v1857_v49  ;;  %v1882_v1 = vmul.f32 %v4438_v56, %v1861_v18 }
 0x3a8   : > { %v1889_v46 = vadd.f32 %v1881_v39, %v1764_v25  ;;  %v1890_v60 = vadd.f32 %v1882_v1, %v1765_v41  ;;  %v1853_v44 = vpop.permute.xlu1 %1852 }
 0x3a9   : > { %v1858_v55 = vsel %vm1854_vm15, %v1845_v40, %v1853_v44  ;;  %v1862_v50 = vsel %vm1854_vm15, %v1853_v44, %v1845_v40 }
 0x3aa   : > { %v1905_v2 = vadd.f32 %v1889_v46, %v1514_v17  ;;  %v1906_v4 = vadd.f32 %v1890_v60, %v1515_v8  ;;  %v1883_v5 = vmul.f32 %v4435_v19, %v1858_v55  ;;  %v1884_v24 = vmul.f32 %v4438_v56, %v1862_v50 }
 0x3ac   : > { %1913 = vst [vmem:[#allocation2 + $0x8] sm:$0xff] %v1905_v2  ;;  %1914 = vst [vmem:[#allocation2 + $0x20] sm:$0xff] %v1906_v4  ;;  %v1891_v53 = vadd.f32 %v1883_v5, %v1766_v3  ;;  %v1892_v57 = vadd.f32 %v1884_v24, %v1767_v6  ;;  %1920 = sbr.rel (%p3425_p0) target bundleno = 1842 (0x732), region = 113 }
 0x3ae   : > { %v1907_v31 = vadd.f32 %v1891_v53, %v1516_v30  ;;  %v1908_v34 = vadd.f32 %v1892_v57, %v1517_v12 }
 0x3b0   : > { %1915 = vst [vmem:[#allocation2 + $0x28] sm:$0xff] %v1907_v31  ;;  %1916 = vst [vmem:[#allocation2 + $0x38] sm:$0xff] %v1908_v34 }
 0x3b1   : > { %v1931_v62 = vld [vmem:[%s4924_s5 + $0x10] sm:$0xff]  ;;  %v1929_v29 = vld [vmem:[%s4924_s5] sm:$0xff]  ;;  %v3696_v26 = vmov 0   ;;  %v1932_v35 = vld [vmem:[%s4924_s5 + $0x18] sm:$0xff]  ;;  %vm2028_vm0 = vcmask 261120   ;;  %vm2714_vm1 = vcmask 130048  }
 0x3b2   : > { %3619 = vset.pattern.permute.xlu1 %v3696_v26  ;;  %3618 = vset.pattern.permute.xlu0 %v3696_v26  ;;  %v1930_v37 = vld [vmem:[%s4924_s5 + $0x8] sm:$0xff]  ;;  %v1922_v23 = vld [vmem:[#allocation2] sm:$0xff]  ;;  %v1924_v45 = vld [vmem:[#allocation2 + $0x10] sm:$0xff] }
 0x3b3   : > { %1945 = vperm.xlu0 %3618, %v1931_v62   ;;  %1935 = vperm.xlu1 %3619, %v1929_v29   ;;  %v1925_v9 = vld [vmem:[#allocation2 + $0x8] sm:$0xff]  ;;  %v1926_v48 = vld [vmem:[#allocation2 + $0x20] sm:$0xff]  ;;  %v1921_v40 = vld [vmem:[#allocation2 + $0x30] sm:$0xff] }
 0x3b4   : > { %2064 = vmatprep.mubr.bf16.mxu0 %v3696_v26  ;;  %2134 = vmatprep.mubr.bf16.mxu1 %v3696_v26  ;;  %v1923_v16 = vld [vmem:[#allocation2 + $0x18] sm:$0xff]  ;;  %v3620_v55 = vld [vmem:[%s4925_s6] sm:$0xff]   ;;  %v3621_v50 = vld [vmem:[%s4925_s6 + $0x8] sm:$0xff]  }
 0x3b5   : > { %v3622_v2 = vld [vmem:[%s4925_s6 + $0x10] sm:$0xff]   ;;  %v3623_v4 = vld [vmem:[%s4925_s6 + $0x18] sm:$0xff]   ;;  %v3624_v5 = vld [vmem:[%s4925_s6 + $0x20] sm:$0xff]  }
 0x3b6   : > { %v3625_v24 = vld [vmem:[%s4925_s6 + $0x28] sm:$0xff]   ;;  %v3626_v30 = vld [vmem:[%s4925_s6 + $0x30] sm:$0xff]   ;;  %v3627_v12 = vld [vmem:[%s4925_s6 + $0x38] sm:$0xff]  }
 0x3b7   : > { %1950 = vperm.xlu0 %3618, %v1932_v35   ;;  %1940 = vperm.xlu1 %3619, %v1930_v37   ;;  %v1927_v58 = vld [vmem:[#allocation2 + $0x28] sm:$0xff]  ;;  %v1928_v63 = vld [vmem:[#allocation2 + $0x38] sm:$0xff]  ;;  %v3628_v53 = vld [vmem:[%s4925_s6 + $0x40] sm:$0xff]  }
 0x42e   : > { %v1946_v0 = vpop.permute.xlu0 %1945  ;;  %v1936_v11 = vpop.permute.xlu1 %1935 }
 0x42f   : > { %v1957_v38 = vadd.f32 %v1946_v0, %v1925_v9  ;;  %v1958_v10 = vadd.f32 %v1946_v0, %v1926_v48  ;;  %v1954_v27 = vadd.f32 %v1936_v11, %v1922_v23  ;;  %v1953_v8 = vadd.f32 %v1936_v11, %v1921_v40 }
 0x431   : > { %v1965_v1 = vmax.f32 %v1957_v38, 0.0  ;;  %v1966_v17 = vmax.f32 %v1958_v10, 0.0  ;;  %v1962_v15 = vmax.f32 %v1954_v27, 0.0  ;;  %v1961_v59 = vmax.f32 %v1953_v8, 0.0 }
 0x432   : > { %v1951_v49 = vpop.permute.xlu0 %1950  ;;  %v1941_v18 = vpop.permute.xlu1 %1940 }
 0x433   : > { %v1959_v25 = vadd.f32 %v1951_v49, %v1927_v58  ;;  %v1960_v41 = vadd.f32 %v1951_v49, %v1928_v63  ;;  %v1956_v39 = vadd.f32 %v1941_v18, %v1924_v45  ;;  %v1955_v43 = vadd.f32 %v1941_v18, %v1923_v16 }
 0x435   : > { %v1967_v61 = vmax.f32 %v1959_v25, 0.0  ;;  %v1968_v28 = vmax.f32 %v1960_v41, 0.0  ;;  %v1964_v46 = vmax.f32 %v1956_v39, 0.0  ;;  %v1963_v7 = vmax.f32 %v1955_v43, 0.0 }
 0x437   : > { %v3501_v60 = vpack.c.bf16 %v1967_v61, %v1965_v1  ;;  %v3502_v44 = vpack.c.bf16 %v1968_v28, %v1966_v17  ;;  %v3500_v3 = vpack.c.bf16 %v1964_v46, %v1962_v15  ;;  %v3499_v6 = vpack.c.bf16 %v1963_v7, %v1961_v59  ;;  %v2667_v59 = vld [vmem:[%s4926_s7] sm:$0xff] }
 0x439   : > { %2044 = vmatprep.subr.bf16.mxu0 %v3502_v44  ;;  %2114 = vmatprep.subr.bf16.mxu1 %v3502_v44 }
 0x43a   : > { %2045 = vmatpush1.bf16.msra.mxu0 %v3501_v60  ;;  %2115 = vmatpush1.bf16.msra.mxu1 %v3501_v60 }
 0x43b   : > { %2046 = vmatprep.subr.bf16.mxu0 %v3500_v3  ;;  %2116 = vmatprep.subr.bf16.mxu1 %v3500_v3 }
 0x43e   : > { %2047 = vmatpush1.bf16.msra.mxu0 %v3499_v6  ;;  %2117 = vmatpush1.bf16.msra.mxu1 %v3499_v6 }
 0x43f   : > { %2188 = vmatprep.subr.bf16.mxu0 %v3502_v44  ;;  %2262 = vmatprep.subr.bf16.mxu1 %v3502_v44 }
 0x441   : > { %3435 = vmatmul.mubr.msk.bf16.vlgmr.msra.gmra.mxu0 %vm2028_vm0, %v3620_v55  ;;  %3439 = vmatmul.mubr.msk.bf16.vlgmr.msra.gmra.mxu1 %vm2028_vm0, %v3621_v50 }
 0x442   : > { %2189 = vmatpush1.bf16.msra.mxu0 %v3501_v60  ;;  %2263 = vmatpush1.bf16.msra.mxu1 %v3501_v60 }
 0x443   : > { %2190 = vmatprep.subr.bf16.mxu0 %v3500_v3  ;;  %2264 = vmatprep.subr.bf16.mxu1 %v3500_v3 }
 0x444   : > { %2208 = vmatprep.mubr.bf16.mxu0 %v3696_v26  ;;  %2282 = vmatprep.mubr.bf16.mxu1 %v3696_v26 }
 0x446   : > { %2191 = vmatpush1.bf16.msra.mxu0 %v3499_v6  ;;  %2265 = vmatpush1.bf16.msra.mxu1 %v3499_v6 }
 0x447   : > { %2332 = vmatprep.subr.bf16.mxu0 %v3502_v44  ;;  %2390 = vmatprep.subr.bf16.mxu1 %v3502_v44 }
 0x449   : > { %3443 = vmatmul.mubr.msk.bf16.vlgmr.msra.gmra.mxu0 %vm2028_vm0, %v3622_v2  ;;  %3447 = vmatmul.mubr.msk.bf16.vlgmr.msra.gmra.mxu1 %vm2028_vm0, %v3623_v4 }
 0x44a   : > { %2333 = vmatpush1.bf16.msra.mxu0 %v3501_v60  ;;  %2391 = vmatpush1.bf16.msra.mxu1 %v3501_v60 }
 0x44b   : > { %2334 = vmatprep.subr.bf16.mxu0 %v3500_v3  ;;  %2392 = vmatprep.subr.bf16.mxu1 %v3500_v3 }
 0x44c   : > { %2352 = vmatprep.mubr.bf16.mxu0 %v3696_v26  ;;  %2410 = vmatprep.mubr.bf16.mxu1 %v3696_v26 }
 0x44e   : > { %2335 = vmatpush1.bf16.msra.mxu0 %v3499_v6  ;;  %2393 = vmatpush1.bf16.msra.mxu1 %v3499_v6 }
 0x44f   : > { %2468 = vmatprep.subr.bf16.mxu0 %v3502_v44  ;;  %2538 = vmatprep.subr.bf16.mxu1 %v3502_v44 }
 0x451   : > { %3451 = vmatmul.mubr.msk.bf16.vlgmr.msra.gmra.mxu0 %vm2028_vm0, %v3624_v5  ;;  %3455 = vmatmul.mubr.msk.bf16.vlgmr.msra.gmra.mxu1 %vm2028_vm0, %v3625_v24 }
 0x452   : > { %2469 = vmatpush1.bf16.msra.mxu0 %v3501_v60  ;;  %2539 = vmatpush1.bf16.msra.mxu1 %v3501_v60 }
 0x453   : > { %2470 = vmatprep.subr.bf16.mxu0 %v3500_v3  ;;  %2540 = vmatprep.subr.bf16.mxu1 %v3500_v3 }
 0x454   : > { %2488 = vmatprep.mubr.bf16.mxu0 %v3696_v26  ;;  %2558 = vmatprep.mubr.bf16.mxu1 %v3696_v26 }
 0x456   : > { %2471 = vmatpush1.bf16.msra.mxu0 %v3499_v6  ;;  %2541 = vmatpush1.bf16.msra.mxu1 %v3499_v6 }
 0x457   : > { %2612 = vmatprep.subr.bf16.mxu0 %v3502_v44 }
 0x459   : > { %3459 = vmatmul.mubr.msk.bf16.vlgmr.msra.gmra.mxu0 %vm2028_vm0, %v3626_v30  ;;  %3463 = vmatmul.mubr.msk.bf16.vlgmr.msra.gmra.mxu1 %vm2028_vm0, %v3627_v12 }
 0x45a   : > { %2613 = vmatpush1.bf16.msra.mxu0 %v3501_v60  ;;  %2632 = vmatprep.mubr.bf16.mxu0 %v3696_v26 }
 0x45b   : > { %2614 = vmatprep.subr.bf16.mxu0 %v3500_v3  ;;  %2750 = vmatprep.mubr.bf16.mxu1 %v3696_v26  ;;  %v2668_v3 = vld [vmem:[%s4926_s7 + $0x8] sm:$0xff] }
 0x45e   : > { %2615 = vmatpush1.bf16.msra.mxu0 %v3499_v6 }
 0x461   : > { %3467 = vmatmul.mubr.msk.bf16.vlgmr.msra.gmra.mxu0 %vm2028_vm0, %v3628_v53 }
 0x462   : > { %2804 = vmatprep.mubr.bf16.mxu0 %v3696_v26 }
 0x501   : > { %v2066_v57 = vpop.f32.mrf.mxu0  ;;  %v2136_v31 = vpop.f32.mrf.mxu1 }
 0x502   : > { %2075 = vrot.lane.b32.xlu0 %v2066_v57, %s3697_s13 }
 0x503   : > { %v2068_v34 = vpop.f32.mrf.mxu0  ;;  %v2138_v62 = vpop.f32.mrf.mxu1 }
 0x505   : > { %v2070_v29 = vpop.f32.mrf.mxu0  ;;  %v2140_v35 = vpop.f32.mrf.mxu1 }
 0x506   : > { %2145 = vrot.lane.b32.xlu0 %v2136_v31, %s3698_s20  ;;  %2077 = vrot.lane.b32.xlu1 %v2070_v29, %s3697_s13 }
 0x507   : > { %v2072_v37 = vpop.f32.mrf.mxu0  ;;  %v2142_v48 = vpop.f32.mrf.mxu1 }
 0x509   : > { %v2210_v9 = vpop.f32.mrf.mxu0  ;;  %v2284_v11 = vpop.f32.mrf.mxu1 }
 0x50a   : > { %2079 = vrot.lane.b32.xlu0 %v2068_v34, %s3697_s13  ;;  %2147 = vrot.lane.b32.xlu1 %v2140_v35, %s3698_s20 }
 0x50b   : > { %v2212_v0 = vpop.f32.mrf.mxu0  ;;  %v2286_v38 = vpop.f32.mrf.mxu1 }
 0x50d   : > { %v2214_v23 = vpop.f32.mrf.mxu0  ;;  %v2288_v58 = vpop.f32.mrf.mxu1 }
 0x50e   : > { %2149 = vrot.lane.b32.xlu0 %v2138_v62, %s3698_s20  ;;  %2081 = vrot.lane.b32.xlu1 %v2072_v37, %s3697_s13 }
 0x50f   : > { %v2216_v10 = vpop.f32.mrf.mxu0  ;;  %v2290_v45 = vpop.f32.mrf.mxu1 }
 0x511   : > { %v4639_v63 = vpop.f32.mrf.mxu0  ;;  %v2412_v27 = vpop.f32.mrf.mxu1 }
 0x512   : > { %2293 = vrot.lane.b32.xlu0 %v2284_v11, %s3699_s27  ;;  %2151 = vrot.lane.b32.xlu1 %v2142_v48, %s3698_s20 }
 0x513   : > { %v4643_v40 = vpop.f32.mrf.mxu0  ;;  %v2414_v49 = vpop.f32.mrf.mxu1 }
 0x515   : > { %v4647_v16 = vpop.f32.mrf.mxu0  ;;  %v2416_v25 = vpop.f32.mrf.mxu1 }
 0x516   : > { %2295 = vrot.lane.b32.xlu1 %v2288_v58, %s3699_s27  ;;  %2219 = vrot.lane.b32.xlu0 %v2210_v9, %s3700_s29 }
 0x517   : > { %v4651_v18 = vpop.f32.mrf.mxu0  ;;  %v2418_v39 = vpop.f32.mrf.mxu1 }
 0x519   : > { %v2490_v41 = vpop.f32.mrf.mxu0  ;;  %v2560_v17 = vpop.f32.mrf.mxu1 }
 0x51a   : > { %2297 = vrot.lane.b32.xlu0 %v2286_v38, %s3699_s27  ;;  %2221 = vrot.lane.b32.xlu1 %v2214_v23, %s3700_s29 }
 0x51b   : > { %v2492_v1 = vpop.f32.mrf.mxu0  ;;  %v2562_v43 = vpop.f32.mrf.mxu1 }
 0x51d   : > { %v2494_v8 = vpop.f32.mrf.mxu0  ;;  %v2564_v15 = vpop.f32.mrf.mxu1 }
 0x51e   : > { %2223 = vrot.lane.b32.xlu0 %v2212_v0, %s3700_s29  ;;  %2299 = vrot.lane.b32.xlu1 %v2290_v45, %s3699_s27 }
 0x51f   : > { %v2496_v61 = vpop.f32.mrf.mxu0  ;;  %v2566_v46 = vpop.f32.mrf.mxu1 }
 0x521   : > { %v2634_v28 = vpop.f32.mrf.mxu0 }
 0x522   : > { %2421 = vrot.lane.b32.xlu0 %v2412_v27, %s3701_s25  ;;  %2225 = vrot.lane.b32.xlu1 %v2216_v10, %s3700_s29 }
 0x523   : > { %v2636_v60 = vpop.f32.mrf.mxu0 }
 0x525   : > { %v2638_v44 = vpop.f32.mrf.mxu0 }
 0x526   : > { %2425 = vrot.lane.b32.xlu0 %v2414_v49, %s3701_s25  ;;  %2423 = vrot.lane.b32.xlu1 %v2416_v25, %s3701_s25 }
 0x527   : > { %v2640_v7 = vpop.f32.mrf.mxu0 }
 0x52a   : > { %2427 = vrot.lane.b32.xlu1 %v2418_v39, %s3701_s25  ;;  %2499 = vrot.lane.b32.xlu0 %v2490_v41, %s3702_s4 }
 0x52e   : > { %2569 = vrot.lane.b32.xlu0 %v2560_v17, %s3703_s16  ;;  %2501 = vrot.lane.b32.xlu1 %v2494_v8, %s3702_s4 }
 0x532   : > { %2503 = vrot.lane.b32.xlu0 %v2492_v1, %s3702_s4  ;;  %2571 = vrot.lane.b32.xlu1 %v2564_v15, %s3703_s16 }
 0x536   : > { %2573 = vrot.lane.b32.xlu0 %v2562_v43, %s3703_s16  ;;  %2505 = vrot.lane.b32.xlu1 %v2496_v61, %s3702_s4 }
 0x53a   : > { %2575 = vrot.lane.b32.xlu1 %v2566_v46, %s3703_s16  ;;  %2643 = vrot.lane.b32.xlu0 %v2634_v28, %s3704_s24 }
 0x53e   : > { %2647 = vrot.lane.b32.xlu0 %v2636_v60, %s3704_s24  ;;  %2645 = vrot.lane.b32.xlu1 %v2638_v44, %s3704_s24 }
 0x542   : > { %2671 = vperm.xlu0 %3618, %v2667_v59   ;;  %2649 = vrot.lane.b32.xlu1 %v2640_v7, %s3704_s24 }
 0x546   : > { %2676 = vperm.xlu1 %3619, %v2668_v3  }
 0x574   : > { %v2076_v6 = vpop.permute.xlu0 %2075 }
 0x578   : > { %v2146_v55 = vpop.permute.xlu0 %2145  ;;  %v2078_v50 = vpop.permute.xlu1 %2077 }
 0x57c   : > { %v2080_v2 = vpop.permute.xlu0 %2079  ;;  %v2148_v4 = vpop.permute.xlu1 %2147 }
 0x57d   : > { %v2083_v49 = vsel %vm861_vm6, %v2076_v6, %v2080_v2  ;;  %v2085_v25 = vsel %vm861_vm6, %v2080_v2, %v2076_v6 }
 0x57e   : > { %v2087_v15 = vmul.f32 %v2085_v25, %v4094_v51  ;;  %v2088_v61 = vmul.f32 %v2083_v49, %v4097_v52 }
 0x580   : > { %v2150_v5 = vpop.permute.xlu0 %2149  ;;  %v2082_v24 = vpop.permute.xlu1 %2081 }
 0x581   : > { %v2153_v10 = vsel %vm980_vm4, %v2146_v55, %v2150_v5  ;;  %v2155_v58 = vsel %vm980_vm4, %v2150_v5, %v2146_v55  ;;  %v2084_v28 = vsel %vm861_vm6, %v2078_v50, %v2082_v24  ;;  %v2086_v46 = vsel %vm861_vm6, %v2082_v24, %v2078_v50 }
 0x582   : > { %v2157_v1 = vmul.f32 %v2155_v58, %v4084_v36  ;;  %v2158_v17 = vmul.f32 %v2153_v10, %v4087_v47  ;;  %v2089_v50 = vmul.f32 %v2086_v46, %v4094_v51  ;;  %v2090_v24 = vmul.f32 %v2084_v28, %v4097_v52 }
 0x584   : > { %v2294_v30 = vpop.permute.xlu0 %2293  ;;  %v2152_v12 = vpop.permute.xlu1 %2151  ;;  %v2162_v5 = vadd.f32 %v2158_v17, %v2088_v61  ;;  %v4942_v17 = vld [vmem:[#allocation8_spill] sm:$0xff] }
 0x585   : > { %v2154_v41 = vsel %vm980_vm4, %v2148_v4, %v2152_v12  ;;  %v2156_v39 = vsel %vm980_vm4, %v2152_v12, %v2148_v4  ;;  %v2161_v4 = vadd.f32 %v2157_v1, %v2087_v15 }
 0x586   : > { %v2159_v59 = vmul.f32 %v2156_v39, %v4084_v36  ;;  %v2160_v7 = vmul.f32 %v2154_v41, %v4087_v47 }
 0x588   : > { %v2296_v53 = vpop.permute.xlu1 %2295  ;;  %v2220_v57 = vpop.permute.xlu0 %2219  ;;  %v2163_v58 = vadd.f32 %v2159_v59, %v2089_v50  ;;  %v2164_v49 = vadd.f32 %v2160_v7, %v2090_v24 }
 0x58c   : > { %v2298_v31 = vpop.permute.xlu0 %2297  ;;  %v2222_v34 = vpop.permute.xlu1 %2221 }
 0x58d   : > { %v2301_v8 = vsel %vm1270_vm8, %v2294_v30, %v2298_v31  ;;  %v2303_v43 = vsel %vm1270_vm8, %v2298_v31, %v2294_v30 }
 0x58e   : > { %v2305_v55 = vmul.f32 %v2303_v43, %v4380_v21  ;;  %v2306_v2 = vmul.f32 %v2301_v8, %v4383_v20  ;;  %v4943_v43 = vld [vmem:[#allocation9_spill] sm:$0xff] }
 0x590   : > { %v2224_v62 = vpop.permute.xlu0 %2223  ;;  %v2300_v29 = vpop.permute.xlu1 %2299  ;;  %v2363_v39 = vadd.f32 %v4639_v63, %v2305_v55  ;;  %v2364_v1 = vadd.f32 %v4643_v40, %v2306_v2 }
 0x591   : > { %v2302_v3 = vsel %vm1270_vm8, %v2296_v53, %v2300_v29  ;;  %v2304_v6 = vsel %vm1270_vm8, %v2300_v29, %v2296_v53  ;;  %v2227_v30 = vsel %vm1104_vm7, %v2220_v57, %v2224_v62  ;;  %v2229_v12 = vsel %vm1104_vm7, %v2224_v62, %v2220_v57 }
 0x592   : > { %v2307_v31 = vmul.f32 %v2304_v6, %v4380_v21  ;;  %v2308_v53 = vmul.f32 %v2302_v3, %v4383_v20  ;;  %v2231_v8 = vmul.f32 %v2229_v12, %v4942_v17  ;;  %v2232_v15 = vmul.f32 %v2227_v30, %v4943_v43 }
 0x594   : > { %v2422_v35 = vpop.permute.xlu0 %2421  ;;  %v2226_v37 = vpop.permute.xlu1 %2225  ;;  %v2365_v63 = vadd.f32 %v4647_v16, %v2307_v31  ;;  %v2366_v40 = vadd.f32 %v4651_v18, %v2308_v53 }
 0x595   : > { %v2228_v25 = vsel %vm1104_vm7, %v2222_v34, %v2226_v37  ;;  %v2230_v41 = vsel %vm1104_vm7, %v2226_v37, %v2222_v34 }
 0x596   : > { %v2233_v37 = vmul.f32 %v2230_v41, %v4942_v17  ;;  %v2234_v28 = vmul.f32 %v2228_v25, %v4943_v43 }
 0x598   : > { %v2426_v9 = vpop.permute.xlu0 %2425  ;;  %v2424_v48 = vpop.permute.xlu1 %2423 }
 0x599   : > { %v2429_v57 = vsel %vm1464_vm12, %v2422_v35, %v2426_v9  ;;  %v2431_v62 = vsel %vm1464_vm12, %v2426_v9, %v2422_v35 }
 0x59a   : > { %v2433_v9 = vmul.f32 %v2429_v57, %v4398_v54  ;;  %v2434_v59 = vmul.f32 %v2431_v62, %v4405_v14 }
 0x59c   : > { %v2428_v0 = vpop.permute.xlu1 %2427  ;;  %v4676_v11 = vpop.permute.xlu0 %2499 }
 0x59d   : > { %v2430_v61 = vsel %vm1464_vm12, %v2424_v48, %v2428_v0  ;;  %v2432_v34 = vsel %vm1464_vm12, %v2428_v0, %v2424_v48 }
 0x59e   : > { %v2435_v16 = vmul.f32 %v2430_v61, %v4398_v54  ;;  %v2436_v18 = vmul.f32 %v2432_v34, %v4405_v14 }
 0x5a0   : > { %v2570_v23 = vpop.permute.xlu0 %2569  ;;  %v4678_v38 = vpop.permute.xlu1 %2501 }
 0x5a4   : > { %v2504_v45 = vpop.permute.xlu0 %2503  ;;  %v2572_v27 = vpop.permute.xlu1 %2571 }
 0x5a5   : > { %v2507_v0 = vsel %vm1612_vm13, %v4676_v11, %v2504_v45  ;;  %v2509_v3 = vsel %vm1612_vm13, %v2504_v45, %v4676_v11 }
 0x5a6   : > { %v2512_v30 = vmul.f32 %v2509_v3, %v4415_v32 }
 0x5a8   : > { %v2574_v60 = vpop.permute.xlu0 %2573  ;;  %v2506_v44 = vpop.permute.xlu1 %2505 }
 0x5a9   : > { %v2577_v7 = vsel %vm1730_vm14, %v2570_v23, %v2574_v60  ;;  %v2579_v48 = vsel %vm1730_vm14, %v2574_v60, %v2570_v23  ;;  %v2508_v11 = vsel %vm1612_vm13, %v4678_v38, %v2506_v44  ;;  %v2510_v45 = vsel %vm1612_vm13, %v2506_v44, %v4678_v38 }
 0x5aa   : > { %v2581_v2 = vmul.f32 %v2577_v7, %v4428_v42  ;;  %v2582_v50 = vmul.f32 %v2579_v48, %v4431_v13  ;;  %v2437_v38 = vadd.f32 %v2433_v9, %v2363_v39  ;;  %v2438_v44 = vadd.f32 %v2434_v59, %v2364_v1 }
 0x5ab   : > { %v2513_v41 = vmul.f32 %v2508_v11, %v4412_v22  ;;  %v2514_v57 = vmul.f32 %v2510_v45, %v4415_v32  ;;  %v2236_v7 = vadd.f32 %v2232_v15, %v2162_v5  ;;  %v2439_v48 = vadd.f32 %v2435_v16, %v2365_v63 }
 0x5ac   : > { %v2576_v29 = vpop.permute.xlu1 %2575  ;;  %v2644_v10 = vpop.permute.xlu0 %2643  ;;  %v2586_v61 = vadd.f32 %v2582_v50, %v2512_v30  ;;  %v2237_v39 = vadd.f32 %v2233_v37, %v2163_v58  ;;  %v2238_v1 = vadd.f32 %v2234_v28, %v2164_v49 }
 0x5ad   : > { %v2578_v6 = vsel %vm1730_vm14, %v2572_v27, %v2576_v29  ;;  %v2580_v55 = vsel %vm1730_vm14, %v2576_v29, %v2572_v27  ;;  %v2511_v27 = vmul.f32 %v2507_v0, %v4412_v22  ;;  %v2440_v0 = vadd.f32 %v2436_v18, %v2366_v40 }
 0x5ae   : > { %v2583_v53 = vmul.f32 %v2578_v6, %v4428_v42  ;;  %v2584_v29 = vmul.f32 %v2580_v55, %v4431_v13  ;;  %v2442_v11 = vadd.f32 %v2438_v44, %v2236_v7  ;;  %v3485_v44 = vld [vmem:[%s4927_s8 + $0x7] sm:$0x1] }
 0x5af   : > { %v2585_v62 = vadd.f32 %v2581_v2, %v2511_v27  ;;  %v2444_v27 = vadd.f32 %v2440_v0, %v2238_v1 }
 0x5b0   : > { %v2648_v46 = vpop.permute.xlu0 %2647  ;;  %v2646_v35 = vpop.permute.xlu1 %2645  ;;  %v2587_v3 = vadd.f32 %v2583_v53, %v2513_v41  ;;  %v2588_v6 = vadd.f32 %v2584_v29, %v2514_v57  ;;  %v3475_v53 = vld [vmem:[%s4927_s8 + $0x2] sm:$0x1]  ;;  %v3477_v29 = vld [vmem:[%s4927_s8 + $0x3] sm:$0x1]  ;;  %v3487_v41 = vld [vmem:[%s4927_s8 + $0x8] sm:$0x1] }
 0x5b1   : > { %v2651_v23 = vsel %vm1854_vm15, %v2644_v10, %v2648_v46  ;;  %v2653_v60 = vsel %vm1854_vm15, %v2648_v46, %v2644_v10 }
 0x5b2   : > { %v2655_v10 = vmul.f32 %v2651_v23, %v4435_v19  ;;  %v2656_v25 = vmul.f32 %v2653_v60, %v4438_v56 }
 0x5b4   : > { %v2650_v24 = vpop.permute.xlu1 %2649  ;;  %v2659_v55 = vadd.f32 %v2655_v10, %v2585_v62  ;;  %v2660_v23 = vadd.f32 %v2656_v25, %v2586_v61  ;;  %v3479_v10 = vld [vmem:[%s4927_s8 + $0x4] sm:$0x1]  ;;  %v3481_v25 = vld [vmem:[%s4927_s8 + $0x5] sm:$0x1] }
 0x5b5   : > { %v2652_v12 = vsel %vm1854_vm15, %v2646_v35, %v2650_v24  ;;  %v2654_v31 = vsel %vm1854_vm15, %v2650_v24, %v2646_v35  ;;  %v2235_v35 = vadd.f32 %v2231_v8, %v2161_v4  ;;  %v2443_v24 = vadd.f32 %v2439_v48, %v2237_v39 }
 0x5b6   : > { %v2657_v34 = vmul.f32 %v2652_v12, %v4435_v19  ;;  %v2658_v46 = vmul.f32 %v2654_v31, %v4438_v56  ;;  %v2664_v45 = vadd.f32 %v2660_v23, %v2442_v11  ;;  %v2703_v12 = vld [vmem:[%s4927_s8] sm:$0x1]  ;;  %v3473_v31 = vld [vmem:[%s4927_s8 + $0x1] sm:$0x1] }
 0x5b7   : > { %v2441_v60 = vadd.f32 %v2437_v38, %v2235_v35  ;;  %v3483_v38 = vld [vmem:[%s4927_s8 + $0x6] sm:$0x1] }
 0x5b8   : > { %v2661_v9 = vadd.f32 %v2657_v34, %v2587_v3  ;;  %v2662_v59 = vadd.f32 %v2658_v46, %v2588_v6 }
 0x5b9   : > { %v2663_v50 = vadd.f32 %v2659_v55, %v2441_v60 }
 0x5ba   : > { %v2665_v5 = vadd.f32 %v2661_v9, %v2443_v24  ;;  %v2666_v8 = vadd.f32 %v2662_v59, %v2444_v27 }
 0x5bd   : > { %v2672_v2 = vpop.permute.xlu0 %2671 }
 0x5be   : > { %v2679_v30 = vadd.f32 %v2672_v2, %v2663_v50  ;;  %v2680_v4 = vadd.f32 %v2672_v2, %v2664_v45 }
 0x5c0   : > { %v2683_v16 = vmax.f32 %v2679_v30, 0.0  ;;  %v2684_v18 = vmax.f32 %v2680_v4, 0.0 }
 0x5c1   : > { %v2677_v15 = vpop.permute.xlu1 %2676 }
 0x5c2   : > { %v2681_v63 = vadd.f32 %v2677_v15, %v2665_v5  ;;  %v2682_v40 = vadd.f32 %v2677_v15, %v2666_v8 }
 0x5c4   : > { %v2685_v58 = vmax.f32 %v2681_v63, 0.0  ;;  %v2686_v49 = vmax.f32 %v2682_v40, 0.0 }
 0x5c6   : > { %v3503_v37 = vpack.c.bf16 %v2685_v58, %v2683_v16  ;;  %v3504_v28 = vpack.c.bf16 %v2686_v49, %v2684_v18  ;;  %v3207_v58 = vld [vmem:[%s4928_s9] sm:$0x3] }
 0x5c8   : > { %2732 = vmatprep.subr.bf16.mxu1 %v3504_v28  ;;  %2786 = vmatprep.subr.bf16.mxu0 %v3504_v28 }
 0x5c9   : > { %2733 = vmatpush1.bf16.msra.mxu1 %v3503_v37  ;;  %2787 = vmatpush1.bf16.msra.mxu0 %v3503_v37 }
 0x5ca   : > { %2842 = vmatprep.subr.bf16.mxu1 %v3504_v28  ;;  %2898 = vmatprep.subr.bf16.mxu0 %v3504_v28 }
 0x5cc   : > { %3472 = vmatmul.mubr.msk.bf16.vlgmr.msra.gmra.mxu1 %vm2714_vm1, %v2703_v12  ;;  %3474 = vmatmul.mubr.msk.bf16.vlgmr.msra.gmra.mxu0 %vm2714_vm1, %v3473_v31 }
 0x5cd   : > { %2843 = vmatpush1.bf16.msra.mxu1 %v3503_v37  ;;  %2899 = vmatpush1.bf16.msra.mxu0 %v3503_v37 }
 0x5ce   : > { %2952 = vmatprep.subr.bf16.mxu1 %v3504_v28  ;;  %3000 = vmatprep.subr.bf16.mxu0 %v3504_v28 }
 0x5cf   : > { %2860 = vmatprep.mubr.bf16.mxu1 %v3696_v26  ;;  %2916 = vmatprep.mubr.bf16.mxu0 %v3696_v26 }
 0x5d4   : > { %3476 = vmatmul.mubr.msk.bf16.vlgmr.msra.gmra.mxu1 %vm2714_vm1, %v3475_v53  ;;  %3478 = vmatmul.mubr.msk.bf16.vlgmr.msra.gmra.mxu0 %vm2714_vm1, %v3477_v29 }
 0x5d5   : > { %2953 = vmatpush1.bf16.msra.mxu1 %v3503_v37  ;;  %3001 = vmatpush1.bf16.msra.mxu0 %v3503_v37 }
 0x5d6   : > { %3058 = vmatprep.subr.bf16.mxu1 %v3504_v28  ;;  %3112 = vmatprep.subr.bf16.mxu0 %v3504_v28 }
 0x5d7   : > { %2970 = vmatprep.mubr.bf16.mxu1 %v3696_v26  ;;  %3018 = vmatprep.mubr.bf16.mxu0 %v3696_v26 }
 0x5dc   : > { %3480 = vmatmul.mubr.msk.bf16.vlgmr.msra.gmra.mxu1 %vm2714_vm1, %v3479_v10  ;;  %3482 = vmatmul.mubr.msk.bf16.vlgmr.msra.gmra.mxu0 %vm2714_vm1, %v3481_v25 }
 0x5dd   : > { %3059 = vmatpush1.bf16.msra.mxu1 %v3503_v37  ;;  %3113 = vmatpush1.bf16.msra.mxu0 %v3503_v37 }
 0x5de   : > { %3168 = vmatprep.subr.bf16.mxu1 %v3504_v28  ;;  %3076 = vmatprep.mubr.bf16.mxu1 %v3696_v26 }
 0x5df   : > { %3130 = vmatprep.mubr.bf16.mxu0 %v3696_v26 }
 0x5e4   : > { %3484 = vmatmul.mubr.msk.bf16.vlgmr.msra.gmra.mxu1 %vm2714_vm1, %v3483_v38  ;;  %3486 = vmatmul.mubr.msk.bf16.vlgmr.msra.gmra.mxu0 %vm2714_vm1, %v3485_v44 }
 0x5e5   : > { %3169 = vmatpush1.bf16.msra.mxu1 %v3503_v37  ;;  %3186 = vmatprep.mubr.bf16.mxu1 %v3696_v26 }
 0x5ec   : > { %3488 = vmatmul.mubr.msk.bf16.vlgmr.msra.gmra.mxu1 %vm2714_vm1, %v3487_v41 }
 0x68c   : > { %v2752_v57 = vpop.f32.mrf.mxu1  ;;  %v2806_v62 = vpop.f32.mrf.mxu0 }
 0x68d   : > { %2759 = vrot.lane.b32.xlu0 %v2752_v57, %s3697_s13 }
 0x68e   : > { %v2808_v61 = vpop.f32.mrf.mxu0  ;;  %v2754_v34 = vpop.f32.mrf.mxu1 }
 0x68f   : > { %2761 = vrot.lane.b32.xlu1 %v2754_v34, %s3697_s13 }
 0x690   : > { %v2756_v46 = vpop.f32.mrf.mxu1  ;;  %v2810_v35 = vpop.f32.mrf.mxu0 }
 0x691   : > { %2813 = vrot.lane.b32.xlu0 %v2806_v62, %s3698_s20 }
 0x692   : > { %v2811_v7 = vpop.f32.mrf.mxu0  ;;  %v2757_v26 = vpop.f32.mrf.mxu1 }
 0x693   : > { %2815 = vrot.lane.b32.xlu1 %v2808_v61, %s3698_s20 }
 0x694   : > { %v2862_v48 = vpop.f32.mrf.mxu1  ;;  %v2918_v0 = vpop.f32.mrf.mxu0 }
 0x695   : > { %2925 = vrot.lane.b32.xlu0 %v2918_v0, %s3699_s27 }
 0x696   : > { %v2920_v3 = vpop.f32.mrf.mxu0  ;;  %v2864_v6 = vpop.f32.mrf.mxu1 }
 0x697   : > { %2927 = vrot.lane.b32.xlu1 %v2920_v3, %s3699_s27 }
 0x698   : > { %v2866_v55 = vpop.f32.mrf.mxu1  ;;  %v2922_v23 = vpop.f32.mrf.mxu0 }
 0x699   : > { %2869 = vrot.lane.b32.xlu0 %v2862_v48, %s3700_s29 }
 0x69a   : > { %v2923_v39 = vpop.f32.mrf.mxu0  ;;  %v2867_v1 = vpop.f32.mrf.mxu1 }
 0x69b   : > { %2871 = vrot.lane.b32.xlu1 %v2864_v6, %s3700_s29 }
 0x69c   : > { %v4835_v9 = vpop.f32.mrf.mxu1  ;;  %v3020_v59 = vpop.f32.mrf.mxu0 }
 0x69d   : > { %3027 = vrot.lane.b32.xlu0 %v3020_v59, %s3701_s25 }
 0x69e   : > { %v2974_v60 = vpop.f32.mrf.mxu1  ;;  %v3022_v11 = vpop.f32.mrf.mxu0 }
 0x69f   : > { %3029 = vrot.lane.b32.xlu1 %v3022_v11, %s3701_s25 }
 0x6a0   : > { %v2976_v2 = vpop.f32.mrf.mxu1  ;;  %v3024_v50 = vpop.f32.mrf.mxu0 }
 0x6a2   : > { %v2977_v45 = vpop.f32.mrf.mxu1  ;;  %v3025_v24 = vpop.f32.mrf.mxu0 }
 0x6a4   : > { %v3078_v27 = vpop.f32.mrf.mxu1  ;;  %v3132_v30 = vpop.f32.mrf.mxu0 }
 0x6a5   : > { %3085 = vrot.lane.b32.xlu0 %v3078_v27, %s3702_s4 }
 0x6a6   : > { %v3080_v4 = vpop.f32.mrf.mxu1  ;;  %v3134_v5 = vpop.f32.mrf.mxu0 }
 0x6a7   : > { %3087 = vrot.lane.b32.xlu1 %v3080_v4, %s3702_s4 }
 0x6a8   : > { %v3082_v8 = vpop.f32.mrf.mxu1  ;;  %v3136_v15 = vpop.f32.mrf.mxu0 }
 0x6a9   : > { %3139 = vrot.lane.b32.xlu0 %v3132_v30, %s3703_s16 }
 0x6aa   : > { %v3083_v63 = vpop.f32.mrf.mxu1  ;;  %v3137_v40 = vpop.f32.mrf.mxu0 }
 0x6ab   : > { %3141 = vrot.lane.b32.xlu1 %v3134_v5, %s3703_s16 }
 0x6ac   : > { %v3188_v16 = vpop.f32.mrf.mxu1 }
 0x6ad   : > { %3195 = vrot.lane.b32.xlu0 %v3188_v16, %s3704_s24 }
 0x6ae   : > { %v3190_v18 = vpop.f32.mrf.mxu1 }
 0x6af   : > { %3197 = vrot.lane.b32.xlu1 %v3190_v18, %s3704_s24 }
 0x6b0   : > { %v3192_v49 = vpop.f32.mrf.mxu1 }
 0x6b1   : > { %3210 = vperm.xlu0 %3618, %v3207_v58  }
 0x6b2   : > { %v3193_v37 = vpop.f32.mrf.mxu1 }
 0x6ff   : > { %v2760_v28 = vpop.permute.xlu0 %2759 }
 0x701   : > { %v2762_v12 = vpop.permute.xlu1 %2761 }
 0x702   : > { %v2763_v46 = vsel %vm861_vm6, %v2760_v28, %v2762_v12  ;;  %v2764_v35 = vsel %vm861_vm6, %v2762_v12, %v2760_v28 }
 0x703   : > { %v2814_v31 = vpop.permute.xlu0 %2813  ;;  %v2765_v6 = vmul.f32 %v2764_v35, %v4094_v51  ;;  %v2766_v55 = vmul.f32 %v2763_v46, %v4097_v52 }
 0x705   : > { %v2816_v53 = vpop.permute.xlu1 %2815 }
 0x706   : > { %v2817_v26 = vsel %vm980_vm4, %v2814_v31, %v2816_v53  ;;  %v2818_v48 = vsel %vm980_vm4, %v2816_v53, %v2814_v31 }
 0x707   : > { %v2926_v29 = vpop.permute.xlu0 %2925 }
 0x709   : > { %v2928_v10 = vpop.permute.xlu1 %2927 }
 0x70a   : > { %v2929_v62 = vsel %vm1270_vm8, %v2926_v29, %v2928_v10  ;;  %v2930_v61 = vsel %vm1270_vm8, %v2928_v10, %v2926_v29 }
 0x70b   : > { %v2870_v25 = vpop.permute.xlu0 %2869  ;;  %v2931_v0 = vmul.f32 %v2930_v61, %v4380_v21  ;;  %v2932_v3 = vmul.f32 %v2929_v62, %v4383_v20  ;;  %v2819_v21 = vmul.f32 %v2818_v48, %v4084_v36  ;;  %v2820_v20 = vmul.f32 %v2817_v26, %v4087_v47 }
 0x70d   : > { %v2872_v38 = vpop.permute.xlu1 %2871  ;;  %v2979_v2 = vadd.f32 %v4835_v9, %v2931_v0  ;;  %v2980_v50 = vadd.f32 %v2974_v60, %v2932_v3  ;;  %v2821_v63 = vadd.f32 %v2819_v21, %v2765_v6  ;;  %v2822_v40 = vadd.f32 %v2820_v20, %v2766_v55 }
 0x70e   : > { %v2873_v51 = vsel %vm1104_vm7, %v2870_v25, %v2872_v38  ;;  %v2874_v52 = vsel %vm1104_vm7, %v2872_v38, %v2870_v25 }
 0x70f   : > { %v3028_v44 = vpop.permute.xlu0 %3027  ;;  %v2875_v8 = vmul.f32 %v2874_v52, %v4942_v17  ;;  %v2876_v9 = vmul.f32 %v2873_v51, %v4943_v43 }
 0x711   : > { %v3030_v41 = vpop.permute.xlu1 %3029  ;;  %v2877_v58 = vadd.f32 %v2875_v8, %v2821_v63  ;;  %v2878_v49 = vadd.f32 %v2876_v9, %v2822_v40 }
 0x712   : > { %v3031_v39 = vsel %vm1464_vm12, %v3028_v44, %v3030_v41  ;;  %v3032_v1 = vsel %vm1464_vm12, %v3030_v41, %v3028_v44 }
 0x713   : > { %v3033_v27 = vmul.f32 %v3031_v39, %v4398_v54  ;;  %v3034_v36 = vmul.f32 %v3032_v1, %v4405_v14 }
 0x715   : > { %v3035_v16 = vadd.f32 %v3033_v27, %v2979_v2  ;;  %v3036_v17 = vadd.f32 %v3034_v36, %v2980_v50 }
 0x717   : > { %v3086_v57 = vpop.permute.xlu0 %3085  ;;  %v3037_v28 = vadd.f32 %v3035_v16, %v2877_v58  ;;  %v3038_v12 = vadd.f32 %v3036_v17, %v2878_v49 }
 0x719   : > { %v3088_v34 = vpop.permute.xlu1 %3087 }
 0x71a   : > { %v3089_v45 = vsel %vm1612_vm13, %v3086_v57, %v3088_v34  ;;  %v3090_v24 = vsel %vm1612_vm13, %v3088_v34, %v3086_v57 }
 0x71b   : > { %v3140_v7 = vpop.permute.xlu0 %3139  ;;  %v3091_v54 = vmul.f32 %v3089_v45, %v4412_v22  ;;  %v3092_v14 = vmul.f32 %v3090_v24, %v4415_v32 }
 0x71d   : > { %v3142_v23 = vpop.permute.xlu1 %3141 }
 0x71e   : > { %v3143_v59 = vsel %vm1730_vm14, %v3140_v7, %v3142_v23  ;;  %v3144_v11 = vsel %vm1730_vm14, %v3142_v23, %v3140_v7 }
 0x71f   : > { %v3145_v47 = vmul.f32 %v3143_v59, %v4428_v42  ;;  %v3146_v30 = vmul.f32 %v3144_v11, %v4431_v13  ;;  %v3196_v4 = vpop.permute.xlu0 %3195 }
 0x721   : > { %v3198_v5 = vpop.permute.xlu1 %3197  ;;  %v3147_v43 = vadd.f32 %v3145_v47, %v3091_v54  ;;  %v3148_v18 = vadd.f32 %v3146_v30, %v3092_v14 }
 0x722   : > { %v3199_v60 = vsel %vm1854_vm15, %v3196_v4, %v3198_v5  ;;  %v3200_v15 = vsel %vm1854_vm15, %v3198_v5, %v3196_v4 }
 0x723   : > { %v3201_v42 = vmul.f32 %v3199_v60, %v4435_v19  ;;  %v3202_v13 = vmul.f32 %v3200_v15, %v4438_v56 }
 0x725   : > { %v3203_v37 = vadd.f32 %v3201_v42, %v3147_v43  ;;  %v3204_v33 = vadd.f32 %v3202_v13, %v3148_v18 }
 0x727   : > { %v3205_v22 = vadd.f32 %v3203_v37, %v3037_v28  ;;  %v3206_v31 = vadd.f32 %v3204_v33, %v3038_v12 }
 0x72c   : > { %v3211_v32 = vpop.permute.xlu0 %3210 }
 0x72d   : > { %v3213_v53 = vadd.f32 %v3211_v32, %v3205_v22  ;;  %v3214_v19 = vadd.f32 %v3211_v32, %v3206_v31 }
 0x72f   : > { %v3217_v29 = vcombine.low %v3213_v53, %v3214_v19 }
 0x731   : > { %3489 = vst.sshfl [vmem:[%s3914_s21] sm:$0x33 pattern:$0x76325410] %v3217_v29 }
 0x732 PF: > { %s20_s19 = sadd.s32 1, %s3683_s19   ;;  %s4944_s27 = sld [smem:[#allocation6_spill]] }
 0x733   : > { %p17_p1 = scmp.ge.s32.totalorder %s20_s19, 6   ;;  %s4945_s29 = sld [smem:[#allocation7_spill]] }
 0x734   : > { %s4946_s13 = smov %s3663_s14  ;;  %s4947_s14 = smov %s3811_s26 }
 0x735   : > { %s4948_s15 = smov %s3675_s17  ;;  %s4949_s16 = smov %s3679_s18 }
 0x736   :  { %19 = sbr.rel (!%p17_p1) target bundleno = 6 (0x6), region = 178 }
 0x738   : > { %s4950_s17 = smov %s4944_s27 }
 0x739   : > { %s4951_s18 = smov %s4945_s29 }

</bundles_post_ra>
